<compile_context>
chip_gen: v7x
topology: tpu7x:2x2x1
jax: 0.10.0
libtpu: 0.0.40
codegen_flags: <defaults>
</compile_context>

<pallas_src>
import math

import jax
import jax.numpy as jnp
from jax.experimental import pallas as pl
from jax.experimental.pallas import tpu as pltpu

NEG_SLOPE = 0.2


def _conv3x3_lrelu_from_padded(pad_ref, w_mat, b_row):
    """3x3 conv (stride 1) over a zero-padded (H+2, W+2, C) VMEM scratch.

    One im2col matmul on the MXU (K = 9*C), bias add, LeakyReLU(0.2).
    Returns an (H*W, Cout) float32 array.
    """
    Hp, Wp, C = pad_ref.shape
    H, W = Hp - 2, Wp - 2
    pad = pad_ref[...]                                        # (H+2, W+2, C)
    # im2col: 9 shifted windows concatenated along channels -> K = 9*C.
    taps = [pad[dy:dy + H, dx:dx + W, :]
            for dy in range(3) for dx in range(3)]            # each (H, W, C)
    col = jnp.concatenate(taps, axis=-1)                      # (H, W, 9*C)
    col = col.reshape(H * W, 9 * C)                           # 8-aligned merge
    y = jnp.dot(col, w_mat, preferred_element_type=jnp.float32)  # (H*W, Cout)
    y = y + b_row                                             # (1, Cout) bcast
    return jnp.where(y >= 0.0, y, NEG_SLOPE * y)              # LeakyReLU(0.2)


def offset_block_kernel(x_ref, w1_ref, b1_ref, w3_ref, b3_ref, o_ref,
                        pad1_ref, pad2_ref):
    # x_ref : (1, Cin,  H*W)  channel-major (flattened NCHW) input, lane-dense
    # w*_ref: (9*C, Coff)     im2col weight matrices (HWIO flattened)
    # b*_ref: (1, Coff)       biases
    # o_ref : (1, Coff, H*W)  channel-major output, lane-dense store
    # pad1_ref: (H+2, W+2, Cin)  zero-padded layer-1 input  (VMEM scratch)
    # pad2_ref: (H+2, W+2, Coff) zero-padded layer-1 output (VMEM scratch)
    Hp, Wp, Cin = pad1_ref.shape
    H, W = Hp - 2, Wp - 2
    Coff = pad2_ref.shape[-1]

    # In-kernel zero padding. Re-zero every grid step: with a "parallel" grid
    # each TensorCore owns its own scratch, so we cannot rely on step 0 only.
    pad1_ref[...] = jnp.zeros_like(pad1_ref)
    pad2_ref[...] = jnp.zeros_like(pad2_ref)

    # NCHW -> pixel-major (H*W, Cin) on the VMEM-resident tile
    # (replaces the wrapper-side XLA transpose over HBM).
    x_pm = x_ref[0].T                                         # (H*W, Cin)
    pad1_ref[1:H + 1, 1:W + 1, :] = x_pm.reshape(H, W, Cin)

    # Layer 1: conv3x3 + LeakyReLU; result stays (padded) in VMEM for layer 2.
    h1 = _conv3x3_lrelu_from_padded(pad1_ref, w1_ref[...], b1_ref[...])
    pad2_ref[1:H + 1, 1:W + 1, :] = h1.reshape(H, W, Coff)

    # Layer 2: conv3x3 + LeakyReLU; channel-major store -> lane-dense (H*W).
    h2 = _conv3x3_lrelu_from_padded(pad2_ref, w3_ref[...], b3_ref[...])
    o_ref[0] = h2.T.astype(o_ref.dtype)                       # (Coff, H*W)


def prepare_params(w1_oihw, b1, w3_oihw, b3):
    """One-time repack of the Conv2d params for the fused kernel.

    OIHW -> im2col matrix (kh*kw*Cin, Cout); row index (dy*3+dx)*Cin + ci,
    matching the kernel's tap concatenation order.
    """
    def to_mat(w):
        cout, cin, kh, kw = w.shape
        return jnp.transpose(w, (2, 3, 1, 0)).reshape(kh * kw * cin, cout)
    return (to_mat(w1_oihw), b1.reshape(1, -1),
            to_mat(w3_oihw), b3.reshape(1, -1))


@jax.jit
def offset_block_forward(x_nchw, params):
    """OffsetBlock.forward(x) with last_offset=None. NCHW in, NCHW out."""
    # TODO(synk): last_offset branch (bilinear F.interpolate + offset_conv2)
    # is not implemented; the default ctor (last_offset=False) never has it.
    w1m, b1r, w3m, b3r = params
    N, Cin, H, W = x_nchw.shape
    Coff = w1m.shape[-1]
    HW = H * W

    x_flat = x_nchw.reshape(N, Cin, HW)          # metadata-only (NCHW is contiguous)

    out = pl.pallas_call(
        offset_block_kernel,
        out_shape=jax.ShapeDtypeStruct((N, Coff, HW), x_nchw.dtype),
        grid=(N,),
        in_specs=[
            pl.BlockSpec((1, Cin, HW), lambda n: (n, 0, 0)),
            pl.BlockSpec((9 * Cin, Coff), lambda n: (0, 0)),
            pl.BlockSpec((1, Coff), lambda n: (0, 0)),
            pl.BlockSpec((9 * Coff, Coff), lambda n: (0, 0)),
            pl.BlockSpec((1, Coff), lambda n: (0, 0)),
        ],
        out_specs=pl.BlockSpec((1, Coff, HW), lambda n: (n, 0, 0)),
        scratch_shapes=[
            pltpu.VMEM((H + 2, W + 2, Cin), jnp.float32),
            pltpu.VMEM((H + 2, W + 2, Coff), jnp.float32),
        ],
        compiler_params=pltpu.CompilerParams(
            dimension_semantics=("parallel",)),
    )(x_flat, w1m, b1r, w3m, b3r)

    return out.reshape(N, Coff, H, W)            # metadata-only -> NCHW


def xavier_uniform(key, shape_oihw):
    """torch.nn.init.xavier_uniform_ for a Conv2d weight (OIHW)."""
    cout, cin, kh, kw = shape_oihw
    fan_in = cin * kh * kw
    fan_out = cout * kh * kw
    bound = math.sqrt(6.0 / (fan_in + fan_out))
    return jax.random.uniform(key, shape_oihw, jnp.float32, -bound, bound)


def _reference(x, w1, b1, w3, b3):
    """Pure-JAX (XLA conv) reference of OffsetBlock.forward for validation."""
    def conv(v, w, b):
        y = jax.lax.conv_general_dilated(
            v, w, window_strides=(1, 1), padding=((1, 1), (1, 1)),
            dimension_numbers=("NCHW", "OIHW", "NCHW"))
        return y + b.reshape(1, -1, 1, 1)
    lrelu = lambda v: jnp.where(v >= 0.0, v, NEG_SLOPE * v)
    h = lrelu(conv(x, w1, b1))
    return lrelu(conv(h, w3, b3))


if __name__ == "__main__":
    key = jax.random.PRNGKey(0)
    k1, k2, kx = jax.random.split(key, 3)

    N, Cin, H, W = 2, 32, 16, 16     # input_channel=32
    Coff = 32                        # offset_channel=32

    # OffsetBlock.initialize_weights(): xavier_uniform weights, zero biases.
    w1 = xavier_uniform(k1, (Coff, Cin, 3, 3))
    b1 = jnp.zeros((Coff,), jnp.float32)
    w3 = xavier_uniform(k2, (Coff, Coff, 3, 3))
    b3 = jnp.zeros((Coff,), jnp.float32)

    x = jax.random.normal(kx, (N, Cin, H, W), jnp.float32)   # NCHW, like PyTorch

    params = prepare_params(w1, b1, w3, b3)   # one-time weight repack
    out = jax.block_until_ready(offset_block_forward(x, params))
    assert out.shape == (N, Coff, H, W), out.shape

    ref = jax.block_until_ready(_reference(x, w1, b1, w3, b3))
    err = float(jnp.max(jnp.abs(out - ref)))
    assert err < 1e-3, f"max abs error vs XLA reference: {err}"

    print("KERNEL_OK")
</pallas_src>

<mosaic_0001>
module attributes {stable_mosaic.version = 11 : i64} {
  func.func @offset_block_kernel(%arg0: i32, %arg1: memref<1x32x256xf32, #tpu.memory_space<vmem>>, %arg2: memref<288x32xf32, #tpu.memory_space<vmem>>, %arg3: memref<1x32xf32, #tpu.memory_space<vmem>>, %arg4: memref<288x32xf32, #tpu.memory_space<vmem>>, %arg5: memref<1x32xf32, #tpu.memory_space<vmem>>, %arg6: memref<1x32x256xf32, #tpu.memory_space<vmem>>, %arg7: memref<18x18x32xf32, #tpu.memory_space<vmem>>, %arg8: memref<18x18x32xf32, #tpu.memory_space<vmem>>) attributes {dimension_semantics = [#tpu.dimension_semantics<parallel>], iteration_bounds = array<i64: 2>, scalar_prefetch = 0 : i64, scratch_operands = 2 : i64, tpu.core_type = #tpu.core_type<tc>, window_params = [{transform_indices = @transform_0, window_bounds = array<i64: 1, 32, 256>}, {pipeline_mode = #tpu.pipeline_mode<synchronous>, transform_indices = @transform_1, window_bounds = array<i64: 288, 32>}, {pipeline_mode = #tpu.pipeline_mode<synchronous>, transform_indices = @transform_2, window_bounds = array<i64: 1, 32>}, {pipeline_mode = #tpu.pipeline_mode<synchronous>, transform_indices = @transform_3, window_bounds = array<i64: 288, 32>}, {pipeline_mode = #tpu.pipeline_mode<synchronous>, transform_indices = @transform_4, window_bounds = array<i64: 1, 32>}, {transform_indices = @transform_5, window_bounds = array<i64: 1, 32, 256>}]} {
    %cst = arith.constant 0.000000e+00 : f32
    %0 = vector.broadcast %cst : f32 to vector<18x18x32xf32>
    %c0 = arith.constant 0 : index
    %c0_0 = arith.constant 0 : index
    %c0_1 = arith.constant 0 : index
    %1 = vector.load %arg7[%c0, %c0_0, %c0_1] : memref<18x18x32xf32, #tpu.memory_space<vmem>>, vector<18x18x32xf32>
    tpu.vector_store %arg7[%c0, %c0_0, %c0_1], %0 {strides = array<i32>} : memref<18x18x32xf32, #tpu.memory_space<vmem>>, vector<18x18x32xf32>,
    %cst_2 = arith.constant 0.000000e+00 : f32
    %2 = vector.broadcast %cst_2 : f32 to vector<18x18x32xf32>
    %c0_3 = arith.constant 0 : index
    %c0_4 = arith.constant 0 : index
    %c0_5 = arith.constant 0 : index
    %3 = vector.load %arg8[%c0_3, %c0_4, %c0_5] : memref<18x18x32xf32, #tpu.memory_space<vmem>>, vector<18x18x32xf32>
    tpu.vector_store %arg8[%c0_3, %c0_4, %c0_5], %2 {strides = array<i32>} : memref<18x18x32xf32, #tpu.memory_space<vmem>>, vector<18x18x32xf32>,
    %c0_6 = arith.constant 0 : index
    %c0_7 = arith.constant 0 : index
    %c0_8 = arith.constant 0 : index
    %4 = vector.load %arg1[%c0_6, %c0_7, %c0_8] : memref<1x32x256xf32, #tpu.memory_space<vmem>>, vector<1x32x256xf32>
    %5 = vector.shape_cast %4 : vector<1x32x256xf32> to vector<32x256xf32>
    %6 = tpu.transpose %5, [1, 0] : vector<32x256xf32> -> vector<256x32xf32>
    %7 = vector.shape_cast %6 : vector<256x32xf32> to vector<16x16x32xf32>
    %c1 = arith.constant 1 : index
    %c1_9 = arith.constant 1 : index
    %c0_10 = arith.constant 0 : index
    %8 = vector.load %arg7[%c1, %c1_9, %c0_10] : memref<18x18x32xf32, #tpu.memory_space<vmem>>, vector<16x16x32xf32>
    tpu.vector_store %arg7[%c1, %c1_9, %c0_10], %7 {strides = array<i32>} : memref<18x18x32xf32, #tpu.memory_space<vmem>>, vector<16x16x32xf32>,
    %c0_11 = arith.constant 0 : index
    %c0_12 = arith.constant 0 : index
    %9 = vector.load %arg2[%c0_11, %c0_12] : memref<288x32xf32, #tpu.memory_space<vmem>>, vector<288x32xf32>
    %c0_13 = arith.constant 0 : index
    %c0_14 = arith.constant 0 : index
    %10 = vector.load %arg3[%c0_13, %c0_14] : memref<1x32xf32, #tpu.memory_space<vmem>>, vector<1x32xf32>
    %c0_15 = arith.constant 0 : index
    %c0_16 = arith.constant 0 : index
    %c0_17 = arith.constant 0 : index
    %11 = vector.load %arg7[%c0_15, %c0_16, %c0_17] : memref<18x18x32xf32, #tpu.memory_space<vmem>>, vector<18x18x32xf32>
    %12 = vector.extract_strided_slice %11 {offsets = [0, 0, 0], sizes = [16, 16, 32], strides = [1, 1, 1]} : vector<18x18x32xf32> to vector<16x16x32xf32>
    %13 = vector.extract_strided_slice %11 {offsets = [0, 1, 0], sizes = [16, 16, 32], strides = [1, 1, 1]} : vector<18x18x32xf32> to vector<16x16x32xf32>
    %14 = vector.extract_strided_slice %11 {offsets = [0, 2, 0], sizes = [16, 16, 32], strides = [1, 1, 1]} : vector<18x18x32xf32> to vector<16x16x32xf32>
    %15 = vector.extract_strided_slice %11 {offsets = [1, 0, 0], sizes = [16, 16, 32], strides = [1, 1, 1]} : vector<18x18x32xf32> to vector<16x16x32xf32>
    %16 = vector.extract_strided_slice %11 {offsets = [1, 1, 0], sizes = [16, 16, 32], strides = [1, 1, 1]} : vector<18x18x32xf32> to vector<16x16x32xf32>
    %17 = vector.extract_strided_slice %11 {offsets = [1, 2, 0], sizes = [16, 16, 32], strides = [1, 1, 1]} : vector<18x18x32xf32> to vector<16x16x32xf32>
    %18 = vector.extract_strided_slice %11 {offsets = [2, 0, 0], sizes = [16, 16, 32], strides = [1, 1, 1]} : vector<18x18x32xf32> to vector<16x16x32xf32>
    %19 = vector.extract_strided_slice %11 {offsets = [2, 1, 0], sizes = [16, 16, 32], strides = [1, 1, 1]} : vector<18x18x32xf32> to vector<16x16x32xf32>
    %20 = vector.extract_strided_slice %11 {offsets = [2, 2, 0], sizes = [16, 16, 32], strides = [1, 1, 1]} : vector<18x18x32xf32> to vector<16x16x32xf32>
    %21 = tpu.concatenate %12, %13, %14, %15, %16, %17, %18, %19, %20 in 2 : vector<16x16x32xf32>, vector<16x16x32xf32>, vector<16x16x32xf32>, vector<16x16x32xf32>, vector<16x16x32xf32>, vector<16x16x32xf32>, vector<16x16x32xf32>, vector<16x16x32xf32>, vector<16x16x32xf32> -> vector<16x16x288xf32>
    %22 = vector.shape_cast %21 : vector<16x16x288xf32> to vector<256x288xf32>
    %cst_18 = arith.constant dense<0.000000e+00> : vector<256x32xf32>
    %23 = tpu.matmul %22, %9, %cst_18 {dimension_numbers = #tpu.dot_dimension_numbers<[1], [0], [0], [1], [0, 0, 1, 1], [], []>} : vector<256x288xf32>, vector<288x32xf32>, vector<256x32xf32> -> vector<256x32xf32>
    %24 = vector.broadcast %10 : vector<1x32xf32> to vector<256x32xf32>
    %25 = arith.addf %23, %24 : vector<256x32xf32>
    %cst_19 = arith.constant 0.000000e+00 : f32
    %26 = vector.broadcast %cst_19 : f32 to vector<256x32xf32>
    %27 = arith.cmpf oge, %25, %26 : vector<256x32xf32>
    %cst_20 = arith.constant 2.000000e-01 : f32
    %28 = vector.broadcast %cst_20 : f32 to vector<256x32xf32>
    %29 = arith.mulf %28, %25 : vector<256x32xf32>
    %30 = arith.select %27, %25, %29 : vector<256x32xi1>, vector<256x32xf32>
    %31 = vector.shape_cast %30 : vector<256x32xf32> to vector<16x16x32xf32>
    %c1_21 = arith.constant 1 : index
    %c1_22 = arith.constant 1 : index
    %c0_23 = arith.constant 0 : index
    %32 = vector.load %arg8[%c1_21, %c1_22, %c0_23] : memref<18x18x32xf32, #tpu.memory_space<vmem>>, vector<16x16x32xf32>
    tpu.vector_store %arg8[%c1_21, %c1_22, %c0_23], %31 {strides = array<i32>} : memref<18x18x32xf32, #tpu.memory_space<vmem>>, vector<16x16x32xf32>,
    %c0_24 = arith.constant 0 : index
    %c0_25 = arith.constant 0 : index
    %33 = vector.load %arg4[%c0_24, %c0_25] : memref<288x32xf32, #tpu.memory_space<vmem>>, vector<288x32xf32>
    %c0_26 = arith.constant 0 : index
    %c0_27 = arith.constant 0 : index
    %34 = vector.load %arg5[%c0_26, %c0_27] : memref<1x32xf32, #tpu.memory_space<vmem>>, vector<1x32xf32>
    %c0_28 = arith.constant 0 : index
    %c0_29 = arith.constant 0 : index
    %c0_30 = arith.constant 0 : index
    %35 = vector.load %arg8[%c0_28, %c0_29, %c0_30] : memref<18x18x32xf32, #tpu.memory_space<vmem>>, vector<18x18x32xf32>
    %36 = vector.extract_strided_slice %35 {offsets = [0, 0, 0], sizes = [16, 16, 32], strides = [1, 1, 1]} : vector<18x18x32xf32> to vector<16x16x32xf32>
    %37 = vector.extract_strided_slice %35 {offsets = [0, 1, 0], sizes = [16, 16, 32], strides = [1, 1, 1]} : vector<18x18x32xf32> to vector<16x16x32xf32>
    %38 = vector.extract_strided_slice %35 {offsets = [0, 2, 0], sizes = [16, 16, 32], strides = [1, 1, 1]} : vector<18x18x32xf32> to vector<16x16x32xf32>
    %39 = vector.extract_strided_slice %35 {offsets = [1, 0, 0], sizes = [16, 16, 32], strides = [1, 1, 1]} : vector<18x18x32xf32> to vector<16x16x32xf32>
    %40 = vector.extract_strided_slice %35 {offsets = [1, 1, 0], sizes = [16, 16, 32], strides = [1, 1, 1]} : vector<18x18x32xf32> to vector<16x16x32xf32>
    %41 = vector.extract_strided_slice %35 {offsets = [1, 2, 0], sizes = [16, 16, 32], strides = [1, 1, 1]} : vector<18x18x32xf32> to vector<16x16x32xf32>
    %42 = vector.extract_strided_slice %35 {offsets = [2, 0, 0], sizes = [16, 16, 32], strides = [1, 1, 1]} : vector<18x18x32xf32> to vector<16x16x32xf32>
    %43 = vector.extract_strided_slice %35 {offsets = [2, 1, 0], sizes = [16, 16, 32], strides = [1, 1, 1]} : vector<18x18x32xf32> to vector<16x16x32xf32>
    %44 = vector.extract_strided_slice %35 {offsets = [2, 2, 0], sizes = [16, 16, 32], strides = [1, 1, 1]} : vector<18x18x32xf32> to vector<16x16x32xf32>
    %45 = tpu.concatenate %36, %37, %38, %39, %40, %41, %42, %43, %44 in 2 : vector<16x16x32xf32>, vector<16x16x32xf32>, vector<16x16x32xf32>, vector<16x16x32xf32>, vector<16x16x32xf32>, vector<16x16x32xf32>, vector<16x16x32xf32>, vector<16x16x32xf32>, vector<16x16x32xf32> -> vector<16x16x288xf32>
    %46 = vector.shape_cast %45 : vector<16x16x288xf32> to vector<256x288xf32>
    %cst_31 = arith.constant dense<0.000000e+00> : vector<256x32xf32>
    %47 = tpu.matmul %46, %33, %cst_31 {dimension_numbers = #tpu.dot_dimension_numbers<[1], [0], [0], [1], [0, 0, 1, 1], [], []>} : vector<256x288xf32>, vector<288x32xf32>, vector<256x32xf32> -> vector<256x32xf32>
    %48 = vector.broadcast %34 : vector<1x32xf32> to vector<256x32xf32>
    %49 = arith.addf %47, %48 : vector<256x32xf32>
    %cst_32 = arith.constant 0.000000e+00 : f32
    %50 = vector.broadcast %cst_32 : f32 to vector<256x32xf32>
    %51 = arith.cmpf oge, %49, %50 : vector<256x32xf32>
    %cst_33 = arith.constant 2.000000e-01 : f32
    %52 = vector.broadcast %cst_33 : f32 to vector<256x32xf32>
    %53 = arith.mulf %52, %49 : vector<256x32xf32>
    %54 = arith.select %51, %49, %53 : vector<256x32xi1>, vector<256x32xf32>
    %55 = tpu.transpose %54, [1, 0] : vector<256x32xf32> -> vector<32x256xf32>
    %c0_34 = arith.constant 0 : index
    %c0_35 = arith.constant 0 : index
    %c0_36 = arith.constant 0 : index
    %56 = vector.load %arg6[%c0_34, %c0_35, %c0_36] : memref<1x32x256xf32, #tpu.memory_space<vmem>>, vector<1x32x256xf32>
    %57 = vector.shape_cast %56 : vector<1x32x256xf32> to vector<32x256xf32>
    %58 = vector.shape_cast %55 : vector<32x256xf32> to vector<1x32x256xf32>
    tpu.vector_store %arg6[%c0_34, %c0_35, %c0_36], %58 {strides = array<i32>} : memref<1x32x256xf32, #tpu.memory_space<vmem>>, vector<1x32x256xf32>,
    return
  }
  func.func @transform_0(%arg0: i32) -> (i32, i32, i32) {
    %c0_i32 = arith.constant 0 : i32
    %c0_i32_0 = arith.constant 0 : i32
    %c0_i32_1 = arith.constant 0 : i32
    return %arg0, %c0_i32, %c0_i32_0 : i32, i32, i32
  }
  func.func @transform_1(%arg0: i32) -> (i32, i32) {
    %c0_i32 = arith.constant 0 : i32
    %c0_i32_0 = arith.constant 0 : i32
    %c0_i32_1 = arith.constant 0 : i32
    return %c0_i32, %c0_i32_0 : i32, i32
  }
  func.func @transform_2(%arg0: i32) -> (i32, i32) {
    %c0_i32 = arith.constant 0 : i32
    %c0_i32_0 = arith.constant 0 : i32
    %c0_i32_1 = arith.constant 0 : i32
    return %c0_i32, %c0_i32_0 : i32, i32
  }
  func.func @transform_3(%arg0: i32) -> (i32, i32) {
    %c0_i32 = arith.constant 0 : i32
    %c0_i32_0 = arith.constant 0 : i32
    %c0_i32_1 = arith.constant 0 : i32
    return %c0_i32, %c0_i32_0 : i32, i32
  }
  func.func @transform_4(%arg0: i32) -> (i32, i32) {
    %c0_i32 = arith.constant 0 : i32
    %c0_i32_0 = arith.constant 0 : i32
    %c0_i32_1 = arith.constant 0 : i32
    return %c0_i32, %c0_i32_0 : i32, i32
  }
  func.func @transform_5(%arg0: i32) -> (i32, i32, i32) {
    %c0_i32 = arith.constant 0 : i32
    %c0_i32_0 = arith.constant 0 : i32
    %c0_i32_1 = arith.constant 0 : i32
    return %arg0, %c0_i32, %c0_i32_0 : i32, i32, i32
  }
}

</mosaic_0001>

<bundles_post_ra>
// kernel: offset_block_forward.1
= control target key start
LH: loop header
LB: loop body
LE: loop exit
PB: predicated region body
PF: predicated region fallthrough
CT: control target
= control target key end

     0   :  { %s5544_s18 = smov 0   ;;  %s8370_s0 = inlined_call_operand.vmem [shape: f32[2,32,256], index: 0, kind: input, shape index: {}]   ;;  %s8371_s1 = inlined_call_operand.vmem [shape: f32[288,32], index: 1, kind: input, shape index: {}]   ;;  %s8372_s2 = inlined_call_operand.vmem [shape: f32[1,32], index: 2, kind: input, shape index: {}]   ;;  %s8373_s3 = inlined_call_operand.vmem [shape: f32[288,32], index: 3, kind: input, shape index: {}]   ;;  %s8374_s4 = inlined_call_operand.vmem [shape: f32[1,32], index: 4, kind: input, shape index: {}]   ;;  %s8375_s5 = inlined_call_operand.vmem [shape: f32[2,32,256], index: 5, kind: output, shape index: {}]  }
   0x1 LB: > { %s4086_s19 = sadd.s32 4294967295, %s5507_s18   ;;  %p4090_p0 = scmp.ge.s32.totalorder %s5507_s18, 1  ;;  %s5507_s18 = sphi %s5544_s18, %s15_s18  }
   0x2   : > { %p187_p1 = scmp.lt.s32.totalorder %s5507_s18, 3 }
   0x4   : > { %p188_p2 = pnand %p4090_p0, %p187_p1 }
   0x6   : > { %191 = sbr.rel (%p188_p2) target bundleno = 1225 (0x4c9), region = 40 }
   0xd   : > { %p5554_p3 = scmp.lt.s32.totalorder %s4086_s19, 1  ;;  %vm225_vm0 = vcmask 261120   ;;  %v5509_v0 = vmov 0.0   ;;  %vm228_vm1 = vcmask 254976   ;;  %v472_v9 = vld [vmem:[%s8371_s1 + $0x100] sm:$0xff]  ;;  %v473_v10 = vld [vmem:[%s8371_s1 + $0x108] sm:$0xff] }
   0xe   : > { %254 = vst.msk [vmem:[#allocation2 + $0xd8] sm:$0xff] %vm225_vm0, %v5509_v0  ;;  %255 = vst.msk [vmem:[#allocation2 + $0xe0] sm:$0xff] %vm225_vm0, %v5509_v0  ;;  %v4397_v11 = vpack.c.bf16 %v473_v10, %v472_v9  ;;  %v474_v12 = vld [vmem:[%s8371_s1 + $0x110] sm:$0xff]  ;;  %v475_v13 = vld [vmem:[%s8371_s1 + $0x118] sm:$0xff]  ;;  %v8376_v15 = vmov 0.0|0.0   ;;  %vm579_vm2 = vcmask 1046528  }
   0xf   : > { %226 = vst.msk [vmem:[#allocation2] sm:$0xff] %vm225_vm0, %v5509_v0  ;;  %227 = vst.msk [vmem:[#allocation2 + $0x8] sm:$0xff] %vm225_vm0, %v5509_v0  ;;  %s8539_s19 = smov (!%p5554_p3, %s4086_s19), 1  ;;  %v4401_v14 = vpack.c.bf16 %v475_v13, %v474_v12  ;;  %4349 = vmatprep.subr.bf16.mxu0 %v8376_v15  ;;  %v440_v16 = vld [vmem:[%s8371_s1] sm:$0xff]  ;;  %v441_v17 = vld [vmem:[%s8371_s1 + $0x8] sm:$0xff]  ;;  %s5511_s6 = smov 32  }
  0x10   : > { %230 = vst.msk [vmem:[#allocation2 + $0x18] sm:$0xff] %vm225_vm0, %v5509_v0  ;;  %231 = vst.msk [vmem:[#allocation2 + $0x20] sm:$0xff] %vm225_vm0, %v5509_v0  ;;  %s4163_s21 = sshll.u32 %s8539_s19, 6  ;;  %4398 = vmatprep.subr.bf16.mxu1 %v4397_v11  ;;  %v4350_v18 = vpack.c.bf16 %v441_v17, %v440_v16  ;;  %v442_v22 = vld [vmem:[%s8371_s1 + $0x10] sm:$0xff]  ;;  %v443_v23 = vld [vmem:[%s8371_s1 + $0x18] sm:$0xff]  ;;  %vm756_vm3 = vcmask 1045504  }
  0x11   : > { %233 = vst.msk [vmem:[#allocation2 + $0x30] sm:$0xff] %vm225_vm0, %v5509_v0  ;;  %234 = vst.msk [vmem:[#allocation2 + $0x38] sm:$0xff] %vm225_vm0, %v5509_v0  ;;  %s5714_s24 = scalar_lea.vmem %s8370_s0, %s4163_s21  ;;  %4400 = vmatpush3.bf16.msra.mxu1 %v4397_v11  ;;  %v4353_v24 = vpack.c.bf16 %v443_v23, %v442_v22  ;;  %v444_v28 = vld [vmem:[%s8371_s1 + $0x20] sm:$0xff]  ;;  %v445_v29 = vld [vmem:[%s8371_s1 + $0x28] sm:$0xff]  ;;  %s5512_s9 = smov 64   ;;  %vm1407_vm4 = vcmask 523264  }
  0x12   : > { %236 = vst.msk [vmem:[#allocation2 + $0x48] sm:$0xff] %vm225_vm0, %v5509_v0  ;;  %237 = vst.msk [vmem:[#allocation2 + $0x50] sm:$0xff] %vm225_vm0, %v5509_v0  ;;  %v336_v1 = vld [vmem:[%s5714_s24 + $0x8] sm:$0xff]  ;;  %v335_v2 = vld [vmem:[%s5714_s24] sm:$0xff]  ;;  %4402 = vmatprep.subr.bf16.mxu1 %v4401_v14  ;;  %4351 = vmatpush1.bf16.msra.mxu0 %v4350_v18  ;;  %v4356_v30 = vpack.c.bf16 %v445_v29, %v444_v28  ;;  %s5513_s10 = smov 96   ;;  %vm1440_vm5 = vcmask 785408   ;;  %s8340_s12 = scalar_lea.vmem %s8375_s5, %s4163_s21 }
  0x13   : > { %239 = vst.msk [vmem:[#allocation2 + $0x60] sm:$0xff] %vm225_vm0, %v5509_v0  ;;  %240 = vst.msk [vmem:[#allocation2 + $0x68] sm:$0xff] %vm225_vm0, %v5509_v0  ;;  %375 = vxpose.xlu1.b32.start [1/4] (short) %v336_v1, 128  ;;  %343 = vxpose.xlu0.b32.start [1/4] (short) %v335_v2, 128  ;;  %v338_v3 = vld [vmem:[%s5714_s24 + $0x18] sm:$0xff]  ;;  %v337_v4 = vld [vmem:[%s5714_s24 + $0x10] sm:$0xff] }
  0x14   : > { %242 = vst.msk [vmem:[#allocation2 + $0x78] sm:$0xff] %vm225_vm0, %v5509_v0  ;;  %243 = vst.msk [vmem:[#allocation2 + $0x80] sm:$0xff] %vm225_vm0, %v5509_v0  ;;  %v340_v5 = vld [vmem:[%s5714_s24 + $0x28] sm:$0xff]  ;;  %v339_v6 = vld [vmem:[%s5714_s24 + $0x20] sm:$0xff]  ;;  %4352 = vmatprep.subr.bf16.mxu0 %v8376_v15 }
  0x15   : > { %245 = vst.msk [vmem:[#allocation2 + $0x90] sm:$0xff] %vm225_vm0, %v5509_v0  ;;  %246 = vst.msk [vmem:[#allocation2 + $0x98] sm:$0xff] %vm225_vm0, %v5509_v0  ;;  %v342_v7 = vld [vmem:[%s5714_s24 + $0x38] sm:$0xff]  ;;  %v341_v8 = vld [vmem:[%s5714_s24 + $0x30] sm:$0xff]  ;;  %4404 = vmatpush3.bf16.msra.mxu1 %v4401_v14 }
  0x16   : > { %248 = vst.msk [vmem:[#allocation2 + $0xa8] sm:$0xff] %vm225_vm0, %v5509_v0  ;;  %249 = vst.msk [vmem:[#allocation2 + $0xb0] sm:$0xff] %vm225_vm0, %v5509_v0  ;;  %4405 = vmatprep.subr.bf16.mxu1 %v8376_v15  ;;  %v5816_v19 = vld [vmem:[#allocation2] sm:$0xff]  ;;  %v5818_v20 = vld [vmem:[#allocation2 + $0x8] sm:$0xff]  ;;  %4354 = vmatpush1.bf16.msra.mxu0 %v4353_v24 }
  0x17   : > { %251 = vst.msk [vmem:[#allocation2 + $0xc0] sm:$0xff] %vm225_vm0, %v5509_v0  ;;  %252 = vst.msk [vmem:[#allocation2 + $0xc8] sm:$0xff] %vm225_vm0, %v5509_v0  ;;  %376 = vxpose.xlu1.b32.cont [2/4] (short) %v338_v3, 128  ;;  %344 = vxpose.xlu0.b32.cont [2/4] (short) %v337_v4, 128  ;;  %v580_v25 = vrot.slane %v5816_v19, 1  ;;  %v581_v26 = vrot.slane %v5818_v20, 1  ;;  %v446_v33 = vld [vmem:[%s8371_s1 + $0x30] sm:$0xff]  ;;  %v447_v34 = vld [vmem:[%s8371_s1 + $0x38] sm:$0xff] }
  0x18   : > { %257 = vst.msk [vmem:[#allocation2 + $0xf0] sm:$0xff] %vm225_vm0, %v5509_v0  ;;  %258 = vst.msk [vmem:[#allocation2 + $0xf8] sm:$0xff] %vm225_vm0, %v5509_v0  ;;  %4355 = vmatprep.subr.bf16.mxu0 %v8376_v15  ;;  %v4359_v35 = vpack.c.bf16 %v447_v34, %v446_v33  ;;  %v448_v37 = vld [vmem:[%s8371_s1 + $0x40] sm:$0xff]  ;;  %v449_v38 = vld [vmem:[%s8371_s1 + $0x48] sm:$0xff]  ;;  %v757_v12 = vrot.slane %v5816_v19, 2  ;;  %v758_v13 = vrot.slane %v5818_v20, 2 }
  0x19   : > { %260 = vst.msk [vmem:[#allocation2 + $0x108] sm:$0xff] %vm225_vm0, %v5509_v0  ;;  %261 = vst.msk [vmem:[#allocation2 + $0x110] sm:$0xff] %vm225_vm0, %v5509_v0  ;;  %v582_v31 = vsel %vm579_vm2, %v580_v25, %v581_v26  ;;  %v4362_v39 = vpack.c.bf16 %v449_v38, %v448_v37  ;;  %v450_v40 = vld [vmem:[%s8371_s1 + $0x50] sm:$0xff]  ;;  %v451_v41 = vld [vmem:[%s8371_s1 + $0x58] sm:$0xff] }
  0x1a   : > { %263 = vst.msk [vmem:[#allocation2 + $0x120] sm:$0xff] %vm225_vm0, %v5509_v0  ;;  %264 = vst.msk [vmem:[#allocation2 + $0x128] sm:$0xff] %vm225_vm0, %v5509_v0  ;;  %4357 = vmatpush1.bf16.msra.mxu0 %v4356_v30  ;;  %v4365_v42 = vpack.c.bf16 %v451_v41, %v450_v40  ;;  %v452_v43 = vld [vmem:[%s8371_s1 + $0x60] sm:$0xff]  ;;  %v453_v44 = vld [vmem:[%s8371_s1 + $0x68] sm:$0xff] }
  0x1b   : > { %266 = vst.msk [vmem:[#allocation2 + $0x138] sm:$0xff] %vm225_vm0, %v5509_v0  ;;  %267 = vst.msk [vmem:[#allocation2 + $0x140] sm:$0xff] %vm225_vm0, %v5509_v0  ;;  %377 = vxpose.xlu1.b32.cont [3/4] (short) %v340_v5, 128  ;;  %345 = vxpose.xlu0.b32.cont [3/4] (short) %v339_v6, 128  ;;  %v4368_v45 = vpack.c.bf16 %v453_v44, %v452_v43  ;;  %v454_v46 = vld [vmem:[%s8371_s1 + $0x70] sm:$0xff]  ;;  %v455_v47 = vld [vmem:[%s8371_s1 + $0x78] sm:$0xff] }
  0x1c   : > { %269 = vst.msk [vmem:[#allocation2 + $0x150] sm:$0xff] %vm225_vm0, %v5509_v0  ;;  %270 = vst.msk [vmem:[#allocation2 + $0x158] sm:$0xff] %vm225_vm0, %v5509_v0  ;;  %4358 = vmatprep.subr.bf16.mxu0 %v8376_v15  ;;  %v4371_v48 = vpack.c.bf16 %v455_v47, %v454_v46  ;;  %v456_v49 = vld [vmem:[%s8371_s1 + $0x80] sm:$0xff]  ;;  %v457_v50 = vld [vmem:[%s8371_s1 + $0x88] sm:$0xff] }
  0x1d   : > { %272 = vst.msk [vmem:[#allocation2 + $0x168] sm:$0xff] %vm225_vm0, %v5509_v0  ;;  %273 = vst.msk [vmem:[#allocation2 + $0x170] sm:$0xff] %vm225_vm0, %v5509_v0  ;;  %v4374_v51 = vpack.c.bf16 %v457_v50, %v456_v49  ;;  %v458_v52 = vld [vmem:[%s8371_s1 + $0x90] sm:$0xff]  ;;  %v459_v53 = vld [vmem:[%s8371_s1 + $0x98] sm:$0xff] }
  0x1e   : > { %275 = vst.msk [vmem:[#allocation2 + $0x180] sm:$0xff] %vm225_vm0, %v5509_v0  ;;  %276 = vst.msk [vmem:[#allocation2 + $0x188] sm:$0xff] %vm225_vm0, %v5509_v0  ;;  %4360 = vmatpush1.bf16.msra.mxu0 %v4359_v35  ;;  %v4377_v54 = vpack.c.bf16 %v459_v53, %v458_v52  ;;  %v460_v55 = vld [vmem:[%s8371_s1 + $0xa0] sm:$0xff]  ;;  %v461_v56 = vld [vmem:[%s8371_s1 + $0xa8] sm:$0xff] }
  0x1f   : > { %278 = vst.msk [vmem:[#allocation2 + $0x198] sm:$0xff] %vm225_vm0, %v5509_v0  ;;  %279 = vst.msk [vmem:[#allocation2 + $0x1a0] sm:$0xff] %vm225_vm0, %v5509_v0  ;;  %378 = vxpose.xlu1.b32.end [4/4] (short) %v342_v7, 128  ;;  %346 = vxpose.xlu0.b32.end [4/4] (short) %v341_v8, 128  ;;  %v4380_v57 = vpack.c.bf16 %v461_v56, %v460_v55  ;;  %v462_v58 = vld [vmem:[%s8371_s1 + $0xb0] sm:$0xff]  ;;  %v463_v59 = vld [vmem:[%s8371_s1 + $0xb8] sm:$0xff] }
  0x20   : > { %281 = vst.msk [vmem:[#allocation3] sm:$0xff] %vm225_vm0, %v5509_v0  ;;  %282 = vst.msk [vmem:[#allocation3 + $0x8] sm:$0xff] %vm225_vm0, %v5509_v0  ;;  %4361 = vmatprep.subr.bf16.mxu0 %v8376_v15  ;;  %v4383_v62 = vpack.c.bf16 %v463_v59, %v462_v58  ;;  %v464_v63 = vld [vmem:[%s8371_s1 + $0xc0] sm:$0xff]  ;;  %v466_v4 = vld [vmem:[%s8371_s1 + $0xd0] sm:$0xff] }
  0x21   : > { %284 = vst.msk [vmem:[#allocation3 + $0x18] sm:$0xff] %vm225_vm0, %v5509_v0  ;;  %285 = vst.msk [vmem:[#allocation3 + $0x20] sm:$0xff] %vm225_vm0, %v5509_v0  ;;  %v467_v5 = vld [vmem:[%s8371_s1 + $0xd8] sm:$0xff]  ;;  %v468_v14 = vld [vmem:[%s8371_s1 + $0xe0] sm:$0xff] }
  0x22   : > { %287 = vst.msk [vmem:[#allocation3 + $0x30] sm:$0xff] %vm225_vm0, %v5509_v0  ;;  %288 = vst.msk [vmem:[#allocation3 + $0x38] sm:$0xff] %vm225_vm0, %v5509_v0  ;;  %4363 = vmatpush1.bf16.msra.mxu0 %v4362_v39  ;;  %v4389_v9 = vpack.c.bf16 %v467_v5, %v466_v4  ;;  %v469_v16 = vld [vmem:[%s8371_s1 + $0xe8] sm:$0xff]  ;;  %v471_v37 = vld [vmem:[%s8371_s1 + $0xf8] sm:$0xff] }
  0x23   : > { %290 = vst.msk [vmem:[#allocation3 + $0x48] sm:$0xff] %vm225_vm0, %v5509_v0  ;;  %291 = vst.msk [vmem:[#allocation3 + $0x50] sm:$0xff] %vm225_vm0, %v5509_v0  ;;  %4364 = vmatprep.subr.bf16.mxu0 %v8376_v15  ;;  %v4392_v25 = vpack.c.bf16 %v469_v16, %v468_v14 }
  0x24   : > { %293 = vst.msk [vmem:[#allocation3 + $0x60] sm:$0xff] %vm225_vm0, %v5509_v0  ;;  %294 = vst.msk [vmem:[#allocation3 + $0x68] sm:$0xff] %vm225_vm0, %v5509_v0 }
  0x25   : > { %296 = vst.msk [vmem:[#allocation3 + $0x78] sm:$0xff] %vm225_vm0, %v5509_v0  ;;  %297 = vst.msk [vmem:[#allocation3 + $0x80] sm:$0xff] %vm225_vm0, %v5509_v0 }
  0x26   : > { %299 = vst.msk [vmem:[#allocation3 + $0x90] sm:$0xff] %vm225_vm0, %v5509_v0  ;;  %300 = vst.msk [vmem:[#allocation3 + $0x98] sm:$0xff] %vm225_vm0, %v5509_v0  ;;  %4366 = vmatpush1.bf16.msra.mxu0 %v4365_v42  ;;  %v759_v42 = vsel %vm756_vm3, %v757_v12, %v758_v13 }
  0x27   : > { %302 = vst.msk [vmem:[#allocation3 + $0xa8] sm:$0xff] %vm225_vm0, %v5509_v0  ;;  %303 = vst.msk [vmem:[#allocation3 + $0xb0] sm:$0xff] %vm225_vm0, %v5509_v0  ;;  %4367 = vmatprep.subr.bf16.mxu0 %v8376_v15 }
  0x28   : > { %305 = vst.msk [vmem:[#allocation3 + $0xc0] sm:$0xff] %vm225_vm0, %v5509_v0  ;;  %306 = vst.msk [vmem:[#allocation3 + $0xc8] sm:$0xff] %vm225_vm0, %v5509_v0 }
  0x29   : > { %308 = vst.msk [vmem:[#allocation3 + $0xd8] sm:$0xff] %vm225_vm0, %v5509_v0  ;;  %309 = vst.msk [vmem:[#allocation3 + $0xe0] sm:$0xff] %vm225_vm0, %v5509_v0 }
  0x2a   : > { %311 = vst.msk [vmem:[#allocation3 + $0xf0] sm:$0xff] %vm225_vm0, %v5509_v0  ;;  %312 = vst.msk [vmem:[#allocation3 + $0xf8] sm:$0xff] %vm225_vm0, %v5509_v0  ;;  %4369 = vmatpush1.bf16.msra.mxu0 %v4368_v45 }
  0x2b   : > { %314 = vst.msk [vmem:[#allocation3 + $0x108] sm:$0xff] %vm225_vm0, %v5509_v0  ;;  %315 = vst.msk [vmem:[#allocation3 + $0x110] sm:$0xff] %vm225_vm0, %v5509_v0  ;;  %4370 = vmatprep.subr.bf16.mxu0 %v8376_v15 }
  0x2c   : > { %317 = vst.msk [vmem:[#allocation3 + $0x120] sm:$0xff] %vm225_vm0, %v5509_v0  ;;  %318 = vst.msk [vmem:[#allocation3 + $0x128] sm:$0xff] %vm225_vm0, %v5509_v0 }
  0x2d   : > { %320 = vst.msk [vmem:[#allocation3 + $0x138] sm:$0xff] %vm225_vm0, %v5509_v0  ;;  %321 = vst.msk [vmem:[#allocation3 + $0x140] sm:$0xff] %vm225_vm0, %v5509_v0 }
  0x2e   : > { %323 = vst.msk [vmem:[#allocation3 + $0x150] sm:$0xff] %vm225_vm0, %v5509_v0  ;;  %324 = vst.msk [vmem:[#allocation3 + $0x158] sm:$0xff] %vm225_vm0, %v5509_v0  ;;  %4372 = vmatpush1.bf16.msra.mxu0 %v4371_v48 }
  0x2f   : > { %326 = vst.msk [vmem:[#allocation3 + $0x168] sm:$0xff] %vm225_vm0, %v5509_v0  ;;  %327 = vst.msk [vmem:[#allocation3 + $0x170] sm:$0xff] %vm225_vm0, %v5509_v0  ;;  %4373 = vmatprep.subr.bf16.mxu0 %v8376_v15 }
  0x30   : > { %329 = vst.msk [vmem:[#allocation3 + $0x180] sm:$0xff] %vm225_vm0, %v5509_v0  ;;  %330 = vst.msk [vmem:[#allocation3 + $0x188] sm:$0xff] %vm225_vm0, %v5509_v0 }
  0x31   : > { %332 = vst.msk [vmem:[#allocation3 + $0x198] sm:$0xff] %vm225_vm0, %v5509_v0  ;;  %333 = vst.msk [vmem:[#allocation3 + $0x1a0] sm:$0xff] %vm225_vm0, %v5509_v0 }
  0x32   : > { %256 = vst.msk [vmem:[#allocation2 + $0xe8] sm:$0x3] %vm228_vm1, %v5509_v0  ;;  %229 = vst.msk [vmem:[#allocation2 + $0x10] sm:$0x3] %vm228_vm1, %v5509_v0  ;;  %4375 = vmatpush1.bf16.msra.mxu0 %v4374_v51 }
  0x33   : > { %232 = vst.msk [vmem:[#allocation2 + $0x28] sm:$0x3] %vm228_vm1, %v5509_v0  ;;  %235 = vst.msk [vmem:[#allocation2 + $0x40] sm:$0x3] %vm228_vm1, %v5509_v0  ;;  %4376 = vmatprep.subr.bf16.mxu0 %v8376_v15 }
  0x34   : > { %238 = vst.msk [vmem:[#allocation2 + $0x58] sm:$0x3] %vm228_vm1, %v5509_v0  ;;  %241 = vst.msk [vmem:[#allocation2 + $0x70] sm:$0x3] %vm228_vm1, %v5509_v0 }
  0x35   : > { %244 = vst.msk [vmem:[#allocation2 + $0x88] sm:$0x3] %vm228_vm1, %v5509_v0  ;;  %247 = vst.msk [vmem:[#allocation2 + $0xa0] sm:$0x3] %vm228_vm1, %v5509_v0 }
  0x36   : > { %250 = vst.msk [vmem:[#allocation2 + $0xb8] sm:$0x3] %vm228_vm1, %v5509_v0  ;;  %253 = vst.msk [vmem:[#allocation2 + $0xd0] sm:$0x3] %vm228_vm1, %v5509_v0  ;;  %4378 = vmatpush1.bf16.msra.mxu0 %v4377_v54 }
  0x37   : > { %259 = vst.msk [vmem:[#allocation2 + $0x100] sm:$0x3] %vm228_vm1, %v5509_v0  ;;  %262 = vst.msk [vmem:[#allocation2 + $0x118] sm:$0x3] %vm228_vm1, %v5509_v0  ;;  %4379 = vmatprep.subr.bf16.mxu0 %v8376_v15 }
  0x38   : > { %265 = vst.msk [vmem:[#allocation2 + $0x130] sm:$0x3] %vm228_vm1, %v5509_v0  ;;  %268 = vst.msk [vmem:[#allocation2 + $0x148] sm:$0x3] %vm228_vm1, %v5509_v0 }
  0x39   : > { %271 = vst.msk [vmem:[#allocation2 + $0x160] sm:$0x3] %vm228_vm1, %v5509_v0  ;;  %274 = vst.msk [vmem:[#allocation2 + $0x178] sm:$0x3] %vm228_vm1, %v5509_v0  ;;  %v5821_v21 = vld [vmem:[#allocation2 + $0x10] sm:$0x3] }
  0x3a   : > { %277 = vst.msk [vmem:[#allocation2 + $0x190] sm:$0x3] %vm228_vm1, %v5509_v0  ;;  %280 = vst.msk [vmem:[#allocation2 + $0x1a8] sm:$0x3] %vm228_vm1, %v5509_v0  ;;  %v583_v27 = vrot.slane %v5821_v21, 1  ;;  %4381 = vmatpush1.bf16.msra.mxu0 %v4380_v57  ;;  %v760_v20 = vrot.slane %v5821_v21, 2 }
  0x3b   : > { %283 = vst.msk [vmem:[#allocation3 + $0x10] sm:$0x3] %vm228_vm1, %v5509_v0  ;;  %286 = vst.msk [vmem:[#allocation3 + $0x28] sm:$0x3] %vm228_vm1, %v5509_v0  ;;  %4382 = vmatprep.subr.bf16.mxu0 %v8376_v15 }
  0x3c   : > { %289 = vst.msk [vmem:[#allocation3 + $0x40] sm:$0x3] %vm228_vm1, %v5509_v0  ;;  %292 = vst.msk [vmem:[#allocation3 + $0x58] sm:$0x3] %vm228_vm1, %v5509_v0  ;;  %v584_v32 = vsel %vm579_vm2, %v581_v26, %v583_v27  ;;  %v761_v43 = vsel %vm756_vm3, %v758_v13, %v760_v20 }
  0x3d   : > { %295 = vst.msk [vmem:[#allocation3 + $0x70] sm:$0x3] %vm228_vm1, %v5509_v0  ;;  %298 = vst.msk [vmem:[#allocation3 + $0x88] sm:$0x3] %vm228_vm1, %v5509_v0  ;;  %v4478_v36 = vpack.i.bf16 %v584_v32, %v582_v31  ;;  %v4493_v49 = vpack.i.bf16 %v761_v43, %v759_v42 }
  0x3e   : > { %301 = vst.msk [vmem:[#allocation3 + $0xa0] sm:$0x3] %vm228_vm1, %v5509_v0  ;;  %304 = vst.msk [vmem:[#allocation3 + $0xb8] sm:$0x3] %vm228_vm1, %v5509_v0  ;;  %4384 = vmatpush1.bf16.msra.mxu0 %v4383_v62 }
  0x3f   : > { %307 = vst.msk [vmem:[#allocation3 + $0xd0] sm:$0x3] %vm228_vm1, %v5509_v0  ;;  %310 = vst.msk [vmem:[#allocation3 + $0xe8] sm:$0x3] %vm228_vm1, %v5509_v0  ;;  %4385 = vmatprep.subr.bf16.mxu0 %v8376_v15 }
  0x40   : > { %313 = vst.msk [vmem:[#allocation3 + $0x100] sm:$0x3] %vm228_vm1, %v5509_v0  ;;  %316 = vst.msk [vmem:[#allocation3 + $0x118] sm:$0x3] %vm228_vm1, %v5509_v0 }
  0x41   : > { %319 = vst.msk [vmem:[#allocation3 + $0x130] sm:$0x3] %vm228_vm1, %v5509_v0  ;;  %322 = vst.msk [vmem:[#allocation3 + $0x148] sm:$0x3] %vm228_vm1, %v5509_v0 }
  0x42   : > { %325 = vst.msk [vmem:[#allocation3 + $0x160] sm:$0x3] %vm228_vm1, %v5509_v0  ;;  %328 = vst.msk [vmem:[#allocation3 + $0x178] sm:$0x3] %vm228_vm1, %v5509_v0 }
  0x43   : > { %331 = vst.msk [vmem:[#allocation3 + $0x190] sm:$0x3] %vm228_vm1, %v5509_v0  ;;  %334 = vst.msk [vmem:[#allocation3 + $0x1a8] sm:$0x3] %vm228_vm1, %v5509_v0  ;;  %v465_v0 = vld [vmem:[%s8371_s1 + $0xc8] sm:$0xff] }
  0x44   : > { %v4386_v3 = vpack.c.bf16 %v465_v0, %v464_v63 }
  0x46   : > { %4387 = vmatpush1.bf16.msra.mxu0 %v4386_v3 }
  0x47   : > { %4388 = vmatprep.subr.bf16.mxu0 %v8376_v15 }
  0x4a   : > { %4390 = vmatpush1.bf16.msra.mxu0 %v4389_v9 }
  0x4b   : > { %4391 = vmatprep.subr.bf16.mxu0 %v8376_v15 }
  0x4e   : > { %4393 = vmatpush1.bf16.msra.mxu0 %v4392_v25 }
  0x4f   : > { %4394 = vmatprep.subr.bf16.mxu0 %v8376_v15 }
  0x78   : > { %4479 = vrot.lane.b32.xlu0 %v4478_v36, %s5511_s6  ;;  %v470_v36 = vld [vmem:[%s8371_s1 + $0xf0] sm:$0xff] }
  0x79   : > { %v4395_v48 = vpack.c.bf16 %v471_v37, %v470_v36 }
  0x7b   : > { %4396 = vmatpush1.bf16.msra.mxu0 %v4395_v48 }
  0x93   : > { %v391_v60 = vpop.trf.xlu1  ;;  %v359_v61 = vpop.trf.xlu0 }
  0x94   : > { %424 = vst.msk [vmem:[#allocation2 + $0xd9] sm:$0xff] %vm225_vm0, %v391_v60  ;;  %408 = vst.msk [vmem:[#allocation2 + $0x19] sm:$0xff] %vm225_vm0, %v359_v61 }
  0x97   : > { %v392_v1 = vpop.trf.xlu1  ;;  %v360_v2 = vpop.trf.xlu0 }
  0x98   : > { %425 = vst.msk [vmem:[#allocation2 + $0xe1] sm:$0xff] %vm225_vm0, %v392_v1  ;;  %409 = vst.msk [vmem:[#allocation2 + $0x21] sm:$0xff] %vm225_vm0, %v360_v2 }
  0x9b   : > { %v393_v6 = vpop.trf.xlu1  ;;  %v361_v7 = vpop.trf.xlu0  ;;  %v5923_v8 = vld [vmem:[#allocation2 + $0xd8] sm:$0xff] }
  0x9c   : > { %426 = vst.msk [vmem:[#allocation2 + $0xf1] sm:$0xff] %vm225_vm0, %v393_v6  ;;  %410 = vst.msk [vmem:[#allocation2 + $0x31] sm:$0xff] %vm225_vm0, %v361_v7  ;;  %v5927_v10 = vld [vmem:[#allocation2 + $0x18] sm:$0xff]  ;;  %v625_v11 = vrot.slane %v5923_v8, 1 }
  0x9d   : > { %8444 = vst [vmem:[#allocation4_spill] sm:$0xff] %v5927_v10  ;;  %v585_v19 = vrot.slane %v5927_v10, 1  ;;  %v762_v35 = vrot.slane %v5927_v10, 2 }
  0x9f   : > { %v394_v17 = vpop.trf.xlu1  ;;  %v362_v18 = vpop.trf.xlu0  ;;  %v5939_v22 = vld [vmem:[#allocation2 + $0xe0] sm:$0xff]  ;;  %v5941_v23 = vld [vmem:[#allocation2 + $0xe8] sm:$0x3] }
  0xa0   : > { %v5943_v24 = vld [vmem:[#allocation2 + $0x20] sm:$0xff]  ;;  %427 = vst.msk [vmem:[#allocation2 + $0xf9] sm:$0xff] %vm225_vm0, %v394_v17  ;;  %411 = vst.msk [vmem:[#allocation2 + $0x39] sm:$0xff] %vm225_vm0, %v362_v18  ;;  %v626_v26 = vrot.slane %v5939_v22, 1  ;;  %v628_v27 = vrot.slane %v5941_v23, 1 }
  0xa1   : > { %v482_v28 = vld [vmem:[#allocation2 + $0x28] sm:$0x3]  ;;  %v586_v29 = vrot.slane %v5943_v24, 1  ;;  %v763_v30 = vrot.slane %v5943_v24, 2 }
  0xa2   : > { %v588_v31 = vrot.slane %v482_v28, 1  ;;  %v765_v32 = vrot.slane %v482_v28, 2  ;;  %v5954_v21 = vsel %vm579_vm2, %v625_v11, %v626_v26  ;;  %v5957_v33 = vsel %vm579_vm2, %v626_v26, %v628_v27 }
  0xa3   : > { %8445 = vst [vmem:[#allocation5_spill] sm:$0xff] %v5957_v33  ;;  %v5960_v34 = vsel %vm579_vm2, %v585_v19, %v586_v29  ;;  %v395_v38 = vpop.trf.xlu1  ;;  %v363_v39 = vpop.trf.xlu0  ;;  %v4488_v40 = vpack.i.bf16 %v5957_v33, %v5954_v21  ;;  %v5977_v44 = vld [vmem:[#allocation2 + $0x30] sm:$0xff]  ;;  %v5984_v46 = vsel %vm756_vm3, %v762_v35, %v763_v30 }
  0xa4   : > { %8446 = vst [vmem:[#allocation6_spill] sm:$0xff] %v5960_v34  ;;  %v5973_v41 = vsel %vm579_vm2, %v586_v29, %v588_v31  ;;  %428 = vst.msk [vmem:[#allocation2 + $0x109] sm:$0xff] %vm225_vm0, %v395_v38  ;;  %v5987_v47 = vsel %vm756_vm3, %v763_v30, %v765_v32  ;;  %v767_v50 = vrot.slane %v5977_v44, 2  ;;  %v590_v56 = vrot.slane %v5977_v44, 1  ;;  %v6014_v2 = vld [vmem:[#allocation2 + $0xf0] sm:$0xff] }
  0xa5   : > { %8447 = vst [vmem:[#allocation7_spill] sm:$0xff] %v5973_v41  ;;  %412 = vst.msk [vmem:[#allocation2 + $0x49] sm:$0xff] %vm225_vm0, %v363_v39  ;;  %v4483_v45 = vpack.i.bf16 %v5973_v41, %v5960_v34  ;;  %4489 = vrot.lane.b32.xlu0 %v4488_v40, %s5511_s6  ;;  %v4498_v53 = vpack.i.bf16 %v5987_v47, %v5984_v46  ;;  %v630_v14 = vrot.slane %v6014_v2, 1 }
  0xa7   : > { %4484 = vrot.lane.b32.xlu1 %v4483_v45, %s5511_s6  ;;  %v396_v51 = vpop.trf.xlu1  ;;  %v364_v52 = vpop.trf.xlu0  ;;  %v5994_v54 = vld [vmem:[#allocation2 + $0x38] sm:$0xff]  ;;  %v485_v55 = vld [vmem:[#allocation2 + $0x40] sm:$0x3] }
  0xa8   : > { %429 = vst.msk [vmem:[#allocation2 + $0x111] sm:$0xff] %vm225_vm0, %v396_v51  ;;  %413 = vst.msk [vmem:[#allocation2 + $0x51] sm:$0xff] %vm225_vm0, %v364_v52  ;;  %v768_v57 = vrot.slane %v5994_v54, 2  ;;  %v770_v58 = vrot.slane %v485_v55, 2  ;;  %v593_v59 = vrot.slane %v485_v55, 1  ;;  %v591_v60 = vrot.slane %v5994_v54, 1 }
  0xa9   : > { %4499 = vrot.lane.b32.xlu0 %v4498_v53, %s5511_s6  ;;  %v4503_v3 = vpack.i.bf16 %v5994_v54, %v5977_v44  ;;  %v6024_v5 = vld [vmem:[#allocation2 + $0xf8] sm:$0xff]  ;;  %v6026_v6 = vld [vmem:[#allocation2 + $0x100] sm:$0x3] }
  0xaa   : > { %v6004_v61 = vsel %vm756_vm3, %v767_v50, %v768_v57  ;;  %v6007_v62 = vsel %vm756_vm3, %v768_v57, %v770_v58  ;;  %v6012_v1 = vsel %vm579_vm2, %v590_v56, %v591_v60  ;;  %8449 = vst [vmem:[#allocation9_spill] sm:$0xff] %v6024_v5  ;;  %v6029_v7 = vsel %vm579_vm2, %v591_v60, %v593_v59 }
  0xab   : > { %4494 = vrot.lane.b32.xlu1 %v4493_v49, %s5512_s9  ;;  %v397_v63 = vpop.trf.xlu1  ;;  %4245 = vmatprep.mubr.msk.f32.mxu1 %vm225_vm0, %v6004_v61  ;;  %v365_v0 = vpop.trf.xlu0  ;;  %8448 = vst [vmem:[#allocation8_spill] sm:$0xff] %v6012_v1  ;;  %v4518_v4 = vpack.i.bf16 %v5927_v10, %v6012_v1  ;;  %8450 = vst [vmem:[#allocation10_spill] sm:$0xff] %v6029_v7  ;;  %v6033_v11 = vld [vmem:[#allocation2 + $0x108] sm:$0xff]  ;;  %v631_v25 = vrot.slane %v6024_v5, 1  ;;  %v633_v26 = vrot.slane %v6026_v6, 1 }
  0xac   : > { %430 = vst.msk [vmem:[#allocation2 + $0x121] sm:$0xff] %vm225_vm0, %v397_v63  ;;  %414 = vst.msk [vmem:[#allocation2 + $0x61] sm:$0xff] %vm225_vm0, %v365_v0  ;;  %4246 = vmatmul.mubr.msk.f32.vlgmr.msra.gmra.mrb[0].mxu1 %vm225_vm0, %v6007_v62  ;;  %v6031_v9 = vld [vmem:[#allocation2 + $0x48] sm:$0xff]  ;;  %v635_v13 = vrot.slane %v6033_v11, 1  ;;  %v4508_v27 = vpack.i.bf16 %v6029_v7, %v6012_v1  ;;  %v4538_v57 = vpack.i.bf16 %v6007_v62, %v6004_v61 }
  0xad   : > { %8451 = vst [vmem:[#allocation11_spill] sm:$0xff] %v6033_v11  ;;  %4519 = vrot.lane.b32.xlu0 %v4518_v4, %s5513_s10  ;;  %v772_v12 = vrot.slane %v6031_v9, 2  ;;  %v6071_v42 = vsel %vm579_vm2, %v630_v14, %v631_v25  ;;  %v6074_v43 = vsel %vm579_vm2, %v631_v25, %v633_v26  ;;  %v595_v51 = vrot.slane %v6031_v9, 1 }
  0xae   : > { %8455 = vst [vmem:[#allocation15_spill] sm:$0xff] %v6071_v42  ;;  %8456 = vst [vmem:[#allocation16_spill] sm:$0xff] %v6074_v43  ;;  %v4513_v48 = vpack.i.bf16 %v6074_v43, %v6071_v42  ;;  %v4523_v58 = vpack.i.bf16 %v5943_v24, %v6029_v7 }
  0xaf   : > { %4504 = vrot.lane.b32.xlu1 %v4503_v3, %s5512_s9  ;;  %v398_v16 = vpop.trf.xlu1  ;;  %v366_v17 = vpop.trf.xlu0  ;;  %v6040_v18 = vld [vmem:[#allocation2 + $0x50] sm:$0xff]  ;;  %v488_v19 = vld [vmem:[#allocation2 + $0x58] sm:$0x3]  ;;  %v812_v3 = vrot.slane %v6033_v11, 2 }
  0xb0   : > { %v6042_v20 = vld [vmem:[#allocation2 + $0x110] sm:$0xff]  ;;  %431 = vst.msk [vmem:[#allocation2 + $0x129] sm:$0xff] %vm225_vm0, %v398_v16  ;;  %415 = vst.msk [vmem:[#allocation2 + $0x69] sm:$0xff] %vm225_vm0, %v366_v17  ;;  %v773_v28 = vrot.slane %v6040_v18, 2  ;;  %v775_v29 = vrot.slane %v488_v19, 2  ;;  %v598_v49 = vrot.slane %v488_v19, 1 }
  0xb1   : > { %8452 = vst [vmem:[#allocation12_spill] sm:$0xff] %v6042_v20  ;;  %v6051_v30 = vld [vmem:[#allocation2 + $0x118] sm:$0x3]  ;;  %v636_v31 = vrot.slane %v6042_v20, 1  ;;  %v596_v52 = vrot.slane %v6040_v18, 1  ;;  %v813_v4 = vrot.slane %v6042_v20, 2 }
  0xb2   : > { %v638_v32 = vrot.slane %v6051_v30, 1  ;;  %v6057_v35 = vsel %vm756_vm3, %v772_v12, %v773_v28  ;;  %v6060_v36 = vsel %vm756_vm3, %v773_v28, %v775_v29  ;;  %v815_v16 = vrot.slane %v6051_v30, 2 }
  0xb3   : > { %4509 = vrot.lane.b32.xlu1 %v4508_v27, %s5511_s6  ;;  %v6063_v37 = vsel %vm579_vm2, %v635_v13, %v636_v31  ;;  %v399_v38 = vpop.trf.xlu1  ;;  %4248 = vmatprep.mubr.msk.f32.mxu1 %vm225_vm0, %v6057_v35  ;;  %v367_v39 = vpop.trf.xlu0  ;;  %v6084_v50 = vld [vmem:[#allocation2 + $0x60] sm:$0xff]  ;;  %v6103_v12 = vsel %vm579_vm2, %v595_v51, %v596_v52  ;;  %v6106_v13 = vsel %vm579_vm2, %v596_v52, %v598_v49 }
  0xb4   : > { %8453 = vst [vmem:[#allocation13_spill] sm:$0xff] %v6063_v37  ;;  %v6068_v40 = vsel %vm579_vm2, %v636_v31, %v638_v32  ;;  %432 = vst.msk [vmem:[#allocation2 + $0x139] sm:$0xff] %vm225_vm0, %v399_v38  ;;  %4249 = vmatmul.mubr.msk.f32.gmra.mrb[2].mxu1 %vm225_vm0, %v6060_v36  ;;  %v777_v53 = vrot.slane %v6084_v50, 2  ;;  %v600_v26 = vrot.slane %v6084_v50, 1  ;;  %v4548_v28 = vpack.i.bf16 %v5977_v44, %v6103_v12  ;;  %v6129_v30 = vld [vmem:[#allocation2 + $0x120] sm:$0xff] }
  0xb5   : > { %8454 = vst [vmem:[#allocation14_spill] sm:$0xff] %v6068_v40  ;;  %416 = vst.msk [vmem:[#allocation2 + $0x79] sm:$0xff] %vm225_vm0, %v367_v39  ;;  %v4533_v45 = vpack.i.bf16 %v6068_v40, %v6063_v37  ;;  %v4528_v29 = vpack.i.bf16 %v6106_v13, %v6103_v12  ;;  %v6134_v32 = vsel %vm756_vm3, %v812_v3, %v813_v4 }
  0xb6   : > { %8457 = vst [vmem:[#allocation17_spill] sm:$0xff] %v6103_v12  ;;  %8458 = vst [vmem:[#allocation18_spill] sm:$0xff] %v6106_v13  ;;  %v4543_v38 = vpack.i.bf16 %v5984_v46, %v6031_v9 }
  0xb7   : > { %4534 = vrot.lane.b32.xlu0 %v4533_v45, %s5511_s6  ;;  %4514 = vrot.lane.b32.xlu1 %v4513_v48, %s5511_s6  ;;  %v400_v55 = vpop.trf.xlu1  ;;  %v368_v56 = vpop.trf.xlu0  ;;  %v6095_v59 = vld [vmem:[#allocation2 + $0x68] sm:$0xff]  ;;  %v491_v60 = vld [vmem:[#allocation2 + $0x70] sm:$0x3]  ;;  %8459 = vst [vmem:[#allocation19_spill] sm:$0xff] %v6129_v30  ;;  %v817_v48 = vrot.slane %v6129_v30, 2 }
  0xb8   : > { %433 = vst.msk [vmem:[#allocation2 + $0x141] sm:$0xff] %vm225_vm0, %v400_v55  ;;  %417 = vst.msk [vmem:[#allocation2 + $0x81] sm:$0xff] %vm225_vm0, %v368_v56  ;;  %v778_v63 = vrot.slane %v6095_v59, 2  ;;  %v780_v0 = vrot.slane %v491_v60, 2  ;;  %v603_v25 = vrot.slane %v491_v60, 1  ;;  %v601_v27 = vrot.slane %v6095_v59, 1 }
  0xb9   : > { %v6131_v31 = vld [vmem:[#allocation2 + $0x128] sm:$0xff]  ;;  %v515_v45 = vld [vmem:[#allocation2 + $0x130] sm:$0x3] }
  0xba   : > { %v6111_v24 = vsel %vm756_vm3, %v777_v53, %v778_v63  ;;  %v6114_v14 = vsel %vm756_vm3, %v778_v63, %v780_v0  ;;  %8460 = vst [vmem:[#allocation20_spill] sm:$0xff] %v6131_v31  ;;  %v818_v44 = vrot.slane %v6131_v31, 2  ;;  %v6149_v53 = vsel %vm756_vm3, %v813_v4, %v815_v16 }
  0xbb   : > { %4539 = vrot.lane.b32.xlu0 %v4538_v57, %s5511_s6  ;;  %4524 = vrot.lane.b32.xlu1 %v4523_v58, %s5513_s10  ;;  %v401_v17 = vpop.trf.xlu1  ;;  %v369_v19 = vpop.trf.xlu0  ;;  %v6146_v52 = vld [vmem:[#allocation2 + $0x138] sm:$0xff]  ;;  %v820_v46 = vrot.slane %v515_v45, 2  ;;  %v6154_v60 = vsel %vm579_vm2, %v600_v26, %v601_v27  ;;  %v6157_v63 = vsel %vm579_vm2, %v601_v27, %v603_v25 }
  0xbc   : > { %4251 = vmatprep.mubr.msk.f32.mxu1 %vm225_vm0, %v6111_v24  ;;  %434 = vst.msk [vmem:[#allocation2 + $0x151] sm:$0xff] %vm225_vm0, %v401_v17  ;;  %418 = vst.msk [vmem:[#allocation2 + $0x91] sm:$0xff] %vm225_vm0, %v369_v19  ;;  %v6138_v39 = vld [vmem:[#allocation2 + $0x78] sm:$0xff]  ;;  %v645_v3 = vrot.slane %v6146_v52, 1 }
  0xbd   : > { %4252 = vmatmul.mubr.msk.f32.gmra.mrb[4].mxu1 %vm225_vm0, %v6114_v14  ;;  %v782_v49 = vrot.slane %v6138_v39, 2  ;;  %v605_v51 = vrot.slane %v6138_v39, 1  ;;  %8461 = vst [vmem:[#allocation21_spill] sm:$0xff] %v6146_v52  ;;  %8462 = vst [vmem:[#allocation22_spill] sm:$0xff] %v6154_v60  ;;  %v6173_v15 = vsel %vm756_vm3, %v818_v44, %v820_v46  ;;  %v643_v46 = vrot.slane %v515_v45, 1 }
  0xbf   : > { %4549 = vrot.lane.b32.xlu0 %v4548_v28, %s5513_s10  ;;  %4529 = vrot.lane.b32.xlu1 %v4528_v29, %s5511_s6  ;;  %v402_v55 = vpop.trf.xlu1  ;;  %v370_v56 = vpop.trf.xlu0  ;;  %v6151_v57 = vld [vmem:[#allocation2 + $0x80] sm:$0xff]  ;;  %v494_v58 = vld [vmem:[#allocation2 + $0x88] sm:$0x3]  ;;  %v6170_v29 = vsel %vm756_vm3, %v817_v48, %v818_v44  ;;  %v640_v44 = vrot.slane %v6129_v30, 1 }
  0xc0   : > { %v6159_v0 = vld [vmem:[#allocation2 + $0x140] sm:$0xff]  ;;  %435 = vst.msk [vmem:[#allocation2 + $0x159] sm:$0xff] %vm225_vm0, %v402_v55  ;;  %419 = vst.msk [vmem:[#allocation2 + $0x99] sm:$0xff] %vm225_vm0, %v370_v56  ;;  %v783_v16 = vrot.slane %v6151_v57, 2  ;;  %v608_v17 = vrot.slane %v494_v58, 1  ;;  %v785_v19 = vrot.slane %v494_v58, 2 }
  0xc1   : > { %8463 = vst [vmem:[#allocation23_spill] sm:$0xff] %v6159_v0  ;;  %v606_v26 = vrot.slane %v6151_v57, 1  ;;  %v518_v28 = vld [vmem:[#allocation2 + $0x148] sm:$0x3]  ;;  %v646_v25 = vrot.slane %v6159_v0, 1 }
  0xc2   : > { %v648_v27 = vrot.slane %v518_v28, 1  ;;  %v6177_v55 = vsel %vm756_vm3, %v782_v49, %v783_v16  ;;  %v6180_v56 = vsel %vm756_vm3, %v783_v16, %v785_v19  ;;  %v641_v49 = vrot.slane %v6131_v31, 1 }
  0xc3   : > { %4544 = vrot.lane.b32.xlu1 %v4543_v38, %s5512_s9  ;;  %v6183_v58 = vsel %vm579_vm2, %v605_v51, %v606_v26  ;;  %v6186_v4 = vsel %vm579_vm2, %v606_v26, %v608_v17  ;;  %v403_v12 = vpop.trf.xlu1  ;;  %4254 = vmatprep.mubr.msk.f32.mxu1 %vm225_vm0, %v6177_v55  ;;  %v371_v48 = vpop.trf.xlu0  ;;  %v4553_v51 = vpack.i.bf16 %v6157_v63, %v6154_v60  ;;  %v825_v19 = vrot.slane %v518_v28, 2 }
  0xc4   : > { %v4568_v38 = vpack.i.bf16 %v6186_v4, %v6183_v58  ;;  %436 = vst.msk [vmem:[#allocation2 + $0x169] sm:$0xff] %vm225_vm0, %v403_v12  ;;  %420 = vst.msk [vmem:[#allocation2 + $0xa9] sm:$0xff] %vm225_vm0, %v371_v48  ;;  %4255 = vmatmul.mubr.msk.f32.gmra.mrb[6].mxu1 %vm225_vm0, %v6180_v56  ;;  %v6201_v16 = vsel %vm579_vm2, %v645_v3, %v646_v25  ;;  %v6204_v17 = vsel %vm579_vm2, %v646_v25, %v648_v27  ;;  %v6209_v12 = vld [vmem:[#allocation2 + $0x90] sm:$0xff] }
  0xc5   : > { %8464 = vst [vmem:[#allocation24_spill] sm:$0xff] %v6201_v16  ;;  %8465 = vst [vmem:[#allocation25_spill] sm:$0xff] %v6204_v17  ;;  %v4573_v45 = vpack.i.bf16 %v6204_v17, %v6201_v16  ;;  %v787_v26 = vrot.slane %v6209_v12, 2  ;;  %v822_v3 = vrot.slane %v6146_v52, 2  ;;  %v823_v48 = vrot.slane %v6159_v0, 2 }
  0xc6   : > { %4569 = vrot.lane.b32.xlu0 %v4568_v38, %s5511_s6  ;;  %v6218_v38 = vsel %vm579_vm2, %v640_v44, %v641_v49  ;;  %v6221_v7 = vsel %vm579_vm2, %v641_v49, %v643_v46  ;;  %v4578_v28 = vpack.i.bf16 %v5994_v54, %v6106_v13  ;;  %v6240_v46 = vld [vmem:[#allocation2 + $0x150] sm:$0xff]  ;;  %v4563_v54 = vpack.i.bf16 %v5987_v47, %v6040_v18 }
  0xc7   : > { %4554 = vrot.lane.b32.xlu1 %v4553_v51, %s5511_s6  ;;  %v404_v25 = vpop.trf.xlu1  ;;  %v372_v27 = vpop.trf.xlu0  ;;  %8466 = vst [vmem:[#allocation26_spill] sm:$0xff] %v6218_v38  ;;  %8467 = vst [vmem:[#allocation27_spill] sm:$0xff] %v6221_v7  ;;  %v6223_v17 = vld [vmem:[#allocation2 + $0x98] sm:$0xff]  ;;  %v497_v10 = vld [vmem:[#allocation2 + $0xa0] sm:$0x3]  ;;  %v4558_v51 = vpack.i.bf16 %v6221_v7, %v6218_v38 }
  0xc8   : > { %437 = vst.msk [vmem:[#allocation2 + $0x171] sm:$0xff] %vm225_vm0, %v404_v25  ;;  %421 = vst.msk [vmem:[#allocation2 + $0xb1] sm:$0xff] %vm225_vm0, %v372_v27  ;;  %v788_v0 = vrot.slane %v6223_v17, 2  ;;  %v790_v52 = vrot.slane %v497_v10, 2  ;;  %v6243_v25 = vsel %vm756_vm3, %v822_v3, %v823_v48  ;;  %v4583_v3 = vpack.i.bf16 %v6060_v36, %v6057_v35  ;;  %v6261_v13 = vld [vmem:[#allocation2 + $0x158] sm:$0xff] }
  0xc9   : > { %8468 = vst [vmem:[#allocation28_spill] sm:$0xff] %v6240_v46  ;;  %8469 = vst [vmem:[#allocation29_spill] sm:$0xff] %v6261_v13  ;;  %v613_v1 = vrot.slane %v497_v10, 1  ;;  %v828_v7 = vrot.slane %v6261_v13, 2  ;;  %v650_v10 = vrot.slane %v6240_v46, 1  ;;  %v651_v30 = vrot.slane %v6261_v13, 1 }
  0xca   : > { %4574 = vrot.lane.b32.xlu0 %v4573_v45, %s5511_s6  ;;  %v6233_v44 = vsel %vm756_vm3, %v787_v26, %v788_v0  ;;  %v6236_v49 = vsel %vm756_vm3, %v788_v0, %v790_v52  ;;  %v611_v26 = vrot.slane %v6223_v17, 1  ;;  %v6250_v52 = vsel %vm756_vm3, %v823_v48, %v825_v19 }
  0xcb   : > { %4559 = vrot.lane.b32.xlu1 %v4558_v51, %s5511_s6  ;;  %v405_v27 = vpop.trf.xlu1  ;;  %4257 = vmatprep.mubr.msk.f32.mxu1 %vm225_vm0, %v6233_v44  ;;  %v373_v45 = vpop.trf.xlu0  ;;  %v610_v51 = vrot.slane %v6209_v12, 1  ;;  %v827_v0 = vrot.slane %v6240_v46, 2  ;;  %v4588_v19 = vpack.i.bf16 %v6004_v61, %v6084_v50  ;;  %v6266_v48 = vld [vmem:[#allocation2 + $0xa8] sm:$0xff] }
  0xcc   : > { %438 = vst.msk [vmem:[#allocation2 + $0x181] sm:$0xff] %vm225_vm0, %v405_v27  ;;  %422 = vst.msk [vmem:[#allocation2 + $0xc1] sm:$0xff] %vm225_vm0, %v373_v45  ;;  %4258 = vmatmul.mubr.msk.f32.gmra.mrb[8].mxu1 %vm225_vm0, %v6236_v49  ;;  %v521_v27 = vld [vmem:[#allocation2 + $0x160] sm:$0x3]  ;;  %v792_v47 = vrot.slane %v6266_v48, 2  ;;  %v615_v16 = vrot.slane %v6266_v48, 1  ;;  %v6295_v13 = vsel %vm579_vm2, %v611_v26, %v613_v1 }
  0xcd   : > { %v830_v38 = vrot.slane %v521_v27, 2  ;;  %v6280_v45 = vsel %vm579_vm2, %v610_v51, %v611_v26  ;;  %v6287_v40 = vsel %vm756_vm3, %v827_v0, %v828_v7 }
  0xce   : > { %4579 = vrot.lane.b32.xlu0 %v4578_v28, %s5513_s10  ;;  %v6275_v28 = vld [vmem:[#allocation2 + $0x168] sm:$0xff] }
  0xcf   : > { %4564 = vrot.lane.b32.xlu1 %v4563_v54, %s5512_s9  ;;  %8470 = vst [vmem:[#allocation30_spill] sm:$0xff] %v6275_v28  ;;  %v406_v61 = vpop.trf.xlu1  ;;  %v374_v41 = vpop.trf.xlu0  ;;  %v6277_v31 = vld [vmem:[#allocation2 + $0xb0] sm:$0xff]  ;;  %v500_v20 = vld [vmem:[#allocation2 + $0xb8] sm:$0x3]  ;;  %v655_v11 = vrot.slane %v6275_v28, 1  ;;  %v6299_v33 = vsel %vm756_vm3, %v828_v7, %v830_v38  ;;  %v653_v38 = vrot.slane %v521_v27, 1 }
  0xd0   : > { %v6283_v54 = vld [vmem:[#allocation2 + $0x170] sm:$0xff]  ;;  %439 = vst.msk [vmem:[#allocation2 + $0x189] sm:$0xff] %vm225_vm0, %v406_v61  ;;  %423 = vst.msk [vmem:[#allocation2 + $0xc9] sm:$0xff] %vm225_vm0, %v374_v41  ;;  %v793_v46 = vrot.slane %v6277_v31, 2  ;;  %v618_v34 = vrot.slane %v500_v20, 1  ;;  %v795_v43 = vrot.slane %v500_v20, 2 }
  0xd1   : > { %8471 = vst [vmem:[#allocation31_spill] sm:$0xff] %v6283_v54  ;;  %v616_v51 = vrot.slane %v6277_v31, 1  ;;  %v524_v37 = vld [vmem:[#allocation2 + $0x178] sm:$0x3]  ;;  %v656_v42 = vrot.slane %v6283_v54, 1 }
  0xd2   : > { %4589 = vrot.lane.b32.xlu0 %v4588_v19, %s5512_s9  ;;  %v658_v0 = vrot.slane %v524_v37, 1  ;;  %v6303_v41 = vsel %vm756_vm3, %v792_v47, %v793_v46  ;;  %v6306_v20 = vsel %vm756_vm3, %v793_v46, %v795_v43  ;;  %v832_v43 = vrot.slane %v6275_v28, 2 }
  0xd3   : > { %4584 = vrot.lane.b32.xlu1 %v4583_v3, %s5511_s6  ;;  %v6309_v61 = vsel %vm579_vm2, %v615_v16, %v616_v51  ;;  %v6312_v1 = vsel %vm579_vm2, %v616_v51, %v618_v34  ;;  %4260 = vmatprep.mubr.msk.f32.mxu1 %vm225_vm0, %v6303_v41  ;;  %v6318_v26 = vld [vmem:[#allocation2 + $0x180] sm:$0xff]  ;;  %v4593_v34 = vpack.i.bf16 %v6295_v13, %v6280_v45  ;;  %v833_v51 = vrot.slane %v6283_v54, 2 }
  0xd4   : > { %v4608_v7 = vpack.i.bf16 %v6312_v1, %v6309_v61  ;;  %4261 = vmatmul.mubr.msk.f32.gmra.mrb[10].mxu1 %vm225_vm0, %v6306_v20  ;;  %v6328_v16 = vsel %vm579_vm2, %v655_v11, %v656_v42  ;;  %v6331_v46 = vsel %vm579_vm2, %v656_v42, %v658_v0  ;;  %v6338_v47 = vld [vmem:[#allocation2 + $0xc0] sm:$0xff]  ;;  %v835_v3 = vrot.slane %v524_v37, 2 }
  0xd5   : > { %8472 = vst [vmem:[#allocation32_spill] sm:$0xff] %v6328_v16  ;;  %8473 = vst [vmem:[#allocation33_spill] sm:$0xff] %v6331_v46  ;;  %v4613_v27 = vpack.i.bf16 %v6331_v46, %v6328_v16  ;;  %v797_v11 = vrot.slane %v6338_v47, 2  ;;  %v802_v42 = vrot.slane %v5923_v8, 2  ;;  %v6345_v0 = vsel %vm579_vm2, %v650_v10, %v651_v30 }
  0xd6   : > { %4609 = vrot.lane.b32.xlu0 %v4608_v7, %s5511_s6  ;;  %8474 = vst [vmem:[#allocation34_spill] sm:$0xff] %v6345_v0  ;;  %v6348_v19 = vsel %vm579_vm2, %v651_v30, %v653_v38  ;;  %v6355_v54 = vsel %vm756_vm3, %v832_v43, %v833_v51  ;;  %v6358_v37 = vsel %vm756_vm3, %v833_v51, %v835_v3  ;;  %v803_v30 = vrot.slane %v5939_v22, 2 }
  0xd7   : > { %4594 = vrot.lane.b32.xlu1 %v4593_v34, %s5511_s6  ;;  %8475 = vst [vmem:[#allocation35_spill] sm:$0xff] %v6348_v19  ;;  %v6350_v7 = vld [vmem:[#allocation2 + $0xc8] sm:$0xff]  ;;  %v503_v28 = vld [vmem:[#allocation2 + $0xd0] sm:$0x3]  ;;  %v4598_v34 = vpack.i.bf16 %v6348_v19, %v6345_v0  ;;  %v805_v19 = vrot.slane %v5941_v23, 2  ;;  %v808_v23 = vrot.slane %v6024_v5, 2 }
  0xd8   : > { %v6352_v46 = vld [vmem:[#allocation2 + $0x188] sm:$0xff]  ;;  %v798_v10 = vrot.slane %v6350_v7, 2  ;;  %v800_v16 = vrot.slane %v503_v28, 2  ;;  %v527_v0 = vld [vmem:[#allocation2 + $0x190] sm:$0x3] }
  0xd9   : > { %v1035_v43 = vrot.slane %v527_v0, 1  ;;  %v1072_v38 = vrot.slane %v527_v0, 2  ;;  %v1033_v0 = vrot.slane %v6352_v46, 1 }
  0xda   : > { %4614 = vrot.lane.b32.xlu0 %v4613_v27, %s5511_s6  ;;  %v6371_v3 = vsel %vm756_vm3, %v797_v11, %v798_v10  ;;  %v6374_v51 = vsel %vm756_vm3, %v798_v10, %v800_v16  ;;  %v4618_v27 = vpack.i.bf16 %v6007_v62, %v6095_v59  ;;  %v6386_v11 = vsel %vm756_vm3, %v802_v42, %v803_v30 }
  0xdb   : > { %4599 = vrot.lane.b32.xlu1 %v4598_v34, %s5511_s6  ;;  %4263 = vmatprep.mubr.msk.f32.mxu1 %vm225_vm0, %v6371_v3  ;;  %v4603_v34 = vpack.i.bf16 %v6031_v9, %v6154_v60  ;;  %8476 = vst [vmem:[#allocation36_spill] sm:$0xff] %v6386_v11  ;;  %v807_v16 = vrot.slane %v6014_v2, 2  ;;  %v1069_v62 = vrot.slane %v6318_v26, 2  ;;  %v1070_v10 = vrot.slane %v6352_v46, 2 }
  0xdc   : > { %4264 = vmatmul.mubr.msk.f32.gmra.mrb[12].mxu1 %vm225_vm0, %v6374_v51  ;;  %v6397_v9 = vsel %vm756_vm3, %v803_v30, %v805_v19  ;;  %v810_v42 = vrot.slane %v6026_v6, 2  ;;  %v1032_v60 = vrot.slane %v6318_v26, 1  ;;  %v4623_v19 = vpack.i.bf16 %v6040_v18, %v6157_v63 }
  0xdd   : > { %4266 = vmatprep.mubr.msk.f32.mxu1 %vm225_vm0, %v6386_v11  ;;  %v6404_v11 = vsel %vm756_vm3, %v1069_v62, %v1070_v10  ;;  %v6407_v5 = vsel %vm756_vm3, %v1070_v10, %v1072_v38  ;;  %v6415_v6 = vsel %vm756_vm3, %v807_v16, %v808_v23  ;;  %v623_v16 = vrot.slane %v503_v28, 1 }
  0xde   : > { %4619 = vrot.lane.b32.xlu0 %v4618_v27, %s5512_s9  ;;  %v4628_v27 = vpack.i.bf16 %v6114_v14, %v6111_v24  ;;  %v6423_v38 = vsel %vm579_vm2, %v1032_v60, %v1033_v0  ;;  %v6430_v18 = vsel %vm756_vm3, %v808_v23, %v810_v42  ;;  %v4638_v62 = vpack.i.bf16 %v6084_v50, %v6183_v58 }
  0xdf   : > { %4604 = vrot.lane.b32.xlu1 %v4603_v34, %s5513_s10  ;;  %v6426_v34 = vsel %vm579_vm2, %v1033_v0, %v1035_v43  ;;  %v620_v10 = vrot.slane %v6338_v47, 1  ;;  %v4633_v60 = vpack.i.bf16 %v6057_v35, %v6138_v39  ;;  %v4653_v50 = vpack.i.bf16 %v6095_v59, %v6186_v4 }
  0xe0   : > { %4267 = vmatmul.mubr.msk.f32.gmra.mrb[14].mxu1 %vm225_vm0, %v6397_v9  ;;  %v4663_v59 = vpack.i.bf16 %v6111_v24, %v6209_v12  ;;  %v4648_v23 = vpack.i.bf16 %v6060_v36, %v6151_v57  ;;  %v4673_v42 = vpack.i.bf16 %v6114_v14, %v6223_v17  ;;  %v4658_v24 = vpack.i.bf16 %v6180_v56, %v6177_v55 }
  0xe1   : > { %4269 = vmatprep.mubr.msk.f32.mxu1 %vm225_vm0, %v6415_v6  ;;  %v4683_v36 = vpack.i.bf16 %v6236_v49, %v6233_v44  ;;  %v4668_v14 = vpack.i.bf16 %v6138_v39, %v6280_v45  ;;  %v4693_v0 = vpack.i.bf16 %v6209_v12, %v6309_v61  ;;  %v4703_v39 = vpack.i.bf16 %v6223_v17, %v6312_v1 }
  0xe2   : > { %4629 = vrot.lane.b32.xlu0 %v4628_v27, %s5511_s6  ;;  %v621_v27 = vrot.slane %v6350_v7, 1  ;;  %v4698_v12 = vpack.i.bf16 %v6180_v56, %v6277_v31  ;;  %v4708_v17 = vpack.i.bf16 %v6306_v20, %v6303_v41 }
  0xe3   : > { %4624 = vrot.lane.b32.xlu1 %v4623_v19, %s5513_s10  ;;  %v4678_v19 = vpack.i.bf16 %v6151_v57, %v6295_v13  ;;  %v4713_v57 = vpack.i.bf16 %v6233_v44, %v6338_v47  ;;  %v4733_v44 = vpack.i.bf16 %v6374_v51, %v6371_v3 }
  0xe4   : > { %4270 = vmatmul.mubr.msk.f32.gmra.mrb[16].mxu1 %vm225_vm0, %v6430_v18  ;;  %v6447_v28 = vsel %vm579_vm2, %v620_v10, %v621_v27  ;;  %v6450_v43 = vsel %vm579_vm2, %v621_v27, %v623_v16  ;;  %v4688_v16 = vpack.i.bf16 %v6177_v55, %v6266_v48  ;;  %v4723_v55 = vpack.i.bf16 %v6236_v49, %v6350_v7  ;;  %v8477_v10 = vld [vmem:[#allocation5_spill] sm:$0xff] }
  0xe5   : > { %4272 = vmatprep.mubr.msk.f32.mxu1 %vm225_vm0, %v6134_v32  ;;  %v4643_v35 = vpack.i.bf16 %v6450_v43, %v6447_v28  ;;  %v4718_v56 = vpack.i.bf16 %v6266_v48, %v6447_v28  ;;  %v4743_v49 = vpack.i.bf16 %v6338_v47, %v5954_v21  ;;  %v4753_v27 = vpack.i.bf16 %v6350_v7, %v8477_v10  ;;  %v8478_v7 = vld [vmem:[#allocation9_spill] sm:$0xff] }
  0xe6   : > { %4639 = vrot.lane.b32.xlu0 %v4638_v62, %s5513_s10  ;;  %v4728_v62 = vpack.i.bf16 %v6277_v31, %v6450_v43  ;;  %v4738_v48 = vpack.i.bf16 %v6303_v41, %v5923_v8  ;;  %v4763_v47 = vpack.i.bf16 %v6371_v3, %v6014_v2  ;;  %v4748_v31 = vpack.i.bf16 %v6306_v20, %v5939_v22 }
  0xe7   : > { %4634 = vrot.lane.b32.xlu1 %v4633_v60, %s5512_s9  ;;  %v4773_v41 = vpack.i.bf16 %v6374_v51, %v8478_v7  ;;  %v4783_v20 = vpack.i.bf16 %v6430_v18, %v6415_v6 }
  0xe8   : > { %4273 = vmatmul.mubr.msk.f32.gmra.mrb[18].mxu1 %vm225_vm0, %v6149_v53 }
  0xe9   : > { %4275 = vmatprep.mubr.msk.f32.mxu1 %vm225_vm0, %v6170_v29 }
  0xea   : > { %4654 = vrot.lane.b32.xlu0 %v4653_v50, %s5513_s10  ;;  %v4480_v60 = vpop.permute.xlu0 %4479 }
  0xeb   : > { %4644 = vrot.lane.b32.xlu1 %v4643_v35, %s5511_s6 }
  0xec   : > { %4276 = vmatmul.mubr.msk.f32.gmra.mrb[20].mxu1 %vm225_vm0, %v6173_v15 }
  0xed   : > { %4278 = vmatprep.mubr.msk.f32.mxu1 %vm225_vm0, %v6243_v25 }
  0xee   : > { %4664 = vrot.lane.b32.xlu0 %v4663_v59, %s5512_s9  ;;  %v8479_v59 = vld [vmem:[#allocation36_spill] sm:$0xff] }
  0xef   : > { %4649 = vrot.lane.b32.xlu1 %v4648_v23, %s5512_s9  ;;  %v4758_v23 = vpack.i.bf16 %v6397_v9, %v8479_v59 }
  0xf0   : > { %4279 = vmatmul.mubr.msk.f32.gmra.mrb[22].mxu1 %vm225_vm0, %v6250_v52 }
  0xf1   : > { %4281 = vmatprep.mubr.msk.f32.mxu1 %vm225_vm0, %v6287_v40 }
  0xf2   : > { %4674 = vrot.lane.b32.xlu0 %v4673_v42, %s5512_s9 }
  0xf3   : > { %4659 = vrot.lane.b32.xlu1 %v4658_v24, %s5511_s6  ;;  %v8480_v24 = vld [vmem:[#allocation15_spill] sm:$0xff] }
  0xf4   : > { %4282 = vmatmul.mubr.msk.f32.gmra.mrb[24].mxu1 %vm225_vm0, %v6299_v33 }
  0xf5   : > { %4284 = vmatprep.mubr.msk.f32.mxu1 %vm225_vm0, %v6355_v54 }
  0xf6   : > { %4684 = vrot.lane.b32.xlu0 %v4683_v36, %s5511_s6  ;;  %v4768_v36 = vpack.i.bf16 %v5923_v8, %v8480_v24 }
  0xf7   : > { %4669 = vrot.lane.b32.xlu1 %v4668_v14, %s5513_s10  ;;  %v4481_v14 = vunpack.i.l.bf16 %v4480_v60 }
  0xf8   : > { %4285 = vmatmul.mubr.msk.f32.gmra.mrb[26].mxu1 %vm225_vm0, %v6358_v37 }
  0xf9   : > { %4287 = vmatprep.mubr.msk.f32.mxu1 %vm225_vm0, %v6404_v11 }
  0xfa   : > { %4694 = vrot.lane.b32.xlu0 %v4693_v0, %s5513_s10  ;;  %v8481_v0 = vld [vmem:[#allocation13_spill] sm:$0xff] }
  0xfb   : > { %4679 = vrot.lane.b32.xlu1 %v4678_v19, %s5513_s10  ;;  %v4793_v19 = vpack.i.bf16 %v6014_v2, %v8481_v0 }
  0xfc   : > { %4288 = vmatmul.mubr.msk.f32.gmra.mrb[28].mxu1 %vm225_vm0, %v6407_v5 }
  0xfe   : > { %4704 = vrot.lane.b32.xlu0 %v4703_v39, %s5513_s10 }
  0xff   : > { %4689 = vrot.lane.b32.xlu1 %v4688_v16, %s5512_s9 }
 0x102   : > { %4714 = vrot.lane.b32.xlu0 %v4713_v57, %s5512_s9 }
 0x103   : > { %4699 = vrot.lane.b32.xlu1 %v4698_v12, %s5512_s9  ;;  %v8482_v12 = vld [vmem:[#allocation16_spill] sm:$0xff] }
 0x106   : > { %4724 = vrot.lane.b32.xlu0 %v4723_v55, %s5512_s9  ;;  %v4778_v55 = vpack.i.bf16 %v5939_v22, %v8482_v12 }
 0x107   : > { %4709 = vrot.lane.b32.xlu1 %v4708_v17, %s5511_s6 }
 0x10a   : > { %4734 = vrot.lane.b32.xlu0 %v4733_v44, %s5511_s6 }
 0x10b   : > { %4719 = vrot.lane.b32.xlu1 %v4718_v56, %s5513_s10  ;;  %v5438_v56 = vld [vmem:[#allocation2] sm:$0xff] }
 0x10e   : > { %4744 = vrot.lane.b32.xlu0 %v4743_v49, %s5513_s10  ;;  %v1375_v49 = vsel %vm225_vm0, %v5438_v56, %v4481_v14  ;;  %v4482_v14 = vunpack.i.h.bf16 %v4480_v60  ;;  %v5439_v56 = vld [vmem:[#allocation2 + $0x8] sm:$0xff] }
 0x10f   : > { %4729 = vrot.lane.b32.xlu1 %v4728_v62, %s5513_s10  ;;  %v8483_v62 = vld [vmem:[#allocation6_spill] sm:$0xff] }
 0x112   : > { %4754 = vrot.lane.b32.xlu0 %v4753_v27, %s5513_s10 }
 0x113   : > { %4739 = vrot.lane.b32.xlu1 %v4738_v48, %s5512_s9  ;;  %v8484_v48 = vld [vmem:[#allocation14_spill] sm:$0xff] }
 0x114   : > { %v4803_v22 = vpack.i.bf16 %v8478_v7, %v8484_v48 }
 0x116   : > { %4764 = vrot.lane.b32.xlu0 %v4763_v47, %s5512_s9 }
 0x117   : > { %4749 = vrot.lane.b32.xlu1 %v4748_v31, %s5512_s9  ;;  %v6544_v50 = vpop.permute.xlu0 %4489 }
 0x119   : > { %v6548_v35 = vpop.permute.xlu1 %4484 }
 0x11a   : > { %4774 = vrot.lane.b32.xlu0 %v4773_v41, %s5512_s9  ;;  %v8485_v41 = vld [vmem:[#allocation11_spill] sm:$0xff] }
 0x11b   : > { %4759 = vrot.lane.b32.xlu1 %v4758_v23, %s5511_s6  ;;  %v4500_v3 = vpop.permute.xlu0 %4499  ;;  %v4788_v23 = vpack.i.bf16 %v8479_v59, %v8485_v41 }
 0x11c   : > { %v4501_v51 = vunpack.i.l.bf16 %v4500_v3 }
 0x11d   : > { %v4495_v42 = vpop.permute.xlu1 %4494 }
 0x11e   : > { %4784 = vrot.lane.b32.xlu0 %v4783_v20, %s5511_s6  ;;  %v4496_v39 = vunpack.i.l.bf16 %v4495_v42  ;;  %v1473_v2 = vsel %vm225_vm0, %v8483_v62, %v4501_v51  ;;  %v8486_v51 = vld [vmem:[#allocation19_spill] sm:$0xff] }
 0x11f   : > { %4769 = vrot.lane.b32.xlu1 %v4768_v36, %s5513_s10  ;;  %v4520_v57 = vpop.permute.xlu0 %4519  ;;  %v4813_v7 = vpack.i.bf16 %v6415_v6, %v8486_v51  ;;  %v1376_v6 = vsel %vm225_vm0, %v5439_v56, %v4482_v14  ;;  %v8492_v14 = vpack.i.bf16 %v6173_v15, %v6170_v29  ;;  %v8494_v56 = vld [vmem:[#allocation27_spill] sm:$0xff] }
 0x120   : > { %v4522_v44 = vunpack.i.h.bf16 %v4520_v57  ;;  %v4521_v8 = vunpack.i.l.bf16 %v4520_v57  ;;  %v1408_v20 = vsel %vm1407_vm4, %v1375_v49, %v4496_v39  ;;  %v4502_v39 = vunpack.i.h.bf16 %v4500_v3 }
 0x121   : > { %v4505_v16 = vpop.permute.xlu1 %4504 }
 0x122   : > { %v4506_v17 = vunpack.i.l.bf16 %v4505_v16  ;;  %4794 = vrot.lane.b32.xlu0 %v4793_v19, %s5513_s10  ;;  %v1441_v36 = vsel %vm1440_vm5, %v1408_v20, %v4522_v44  ;;  %v8487_v19 = vld [vmem:[#allocation12_spill] sm:$0xff]  ;;  %v8491_v20 = vld [vmem:[#allocation26_spill] sm:$0xff] }
 0x123   : > { %4779 = vrot.lane.b32.xlu1 %v4778_v55, %s5513_s10  ;;  %v4798_v57 = vpack.i.bf16 %v6397_v9, %v8487_v19  ;;  %v8488_v44 = vld [vmem:[#allocation20_spill] sm:$0xff] }
 0x124   : > { %v1505_v27 = vsel %vm1407_vm4, %v1473_v2, %v4506_v17  ;;  %v4497_v17 = vunpack.i.h.bf16 %v4495_v42  ;;  %v4823_v60 = vpack.i.bf16 %v6430_v18, %v8488_v44  ;;  %v8490_v42 = vpack.i.bf16 %v6149_v53, %v6134_v32 }
 0x125   : > { %v6572_v47 = vpop.permute.xlu1 %4509  ;;  %v1537_v31 = vsel %vm1440_vm5, %v1505_v27, %v4521_v8  ;;  %v4507_v8 = vunpack.i.h.bf16 %v4505_v16  ;;  %v8489_v27 = vld [vmem:[#allocation7_spill] sm:$0xff] }
 0x126   : > { %1703 = vmatprep.mubr.f32.mxu0 %v1537_v31  ;;  %4804 = vrot.lane.b32.xlu0 %v4803_v22, %s5513_s10  ;;  %v1474_v3 = vsel %vm225_vm0, %v8489_v27, %v4502_v39  ;;  %v1409_v18 = vsel %vm1407_vm4, %v1376_v6, %v4497_v17  ;;  %v8493_v17 = vld [vmem:[#allocation24_spill] sm:$0xff]  ;;  %v4828_v6 = vpack.i.bf16 %v8487_v19, %v8494_v56 }
 0x127   : > { %4789 = vrot.lane.b32.xlu1 %v4788_v23, %s5512_s9  ;;  %1704 = vmatmul.mubr.f32.vlgmr.msra.gmra.mrb[0].mxu0 %v1441_v36  ;;  %v1506_v16 = vsel %vm1407_vm4, %v1474_v3, %v4507_v8  ;;  %v4818_v36 = vpack.i.bf16 %v8485_v41, %v8491_v20  ;;  %v4843_v8 = vpack.i.bf16 %v8486_v51, %v8493_v17  ;;  %v8495_v27 = vld [vmem:[#allocation8_spill] sm:$0xff] }
 0x129   : > { %v6585_v55 = vpop.permute.xlu1 %4514  ;;  %v6587_v59 = vpop.permute.xlu0 %4534 }
 0x12a   : > { %4814 = vrot.lane.b32.xlu0 %v4813_v7, %s5512_s9  ;;  %v4486_v7 = vunpack.i.l.bf16 %v6548_v35 }
 0x12b   : > { %4799 = vrot.lane.b32.xlu1 %v4798_v57, %s5512_s9 }
 0x12d   : > { %v4525_v49 = vpop.permute.xlu1 %4524  ;;  %v4540_v2 = vpop.permute.xlu0 %4539 }
 0x12e   : > { %v4527_v62 = vunpack.i.h.bf16 %v4525_v49  ;;  %v4526_v9 = vunpack.i.l.bf16 %v4525_v49  ;;  %4824 = vrot.lane.b32.xlu0 %v4823_v60, %s5512_s9  ;;  %v4541_v57 = vunpack.i.l.bf16 %v4540_v2 }
 0x12f   : > { %4809 = vrot.lane.b32.xlu1 %v8490_v42, %s5511_s6  ;;  %v8496_v42 = vld [vmem:[#allocation4_spill] sm:$0xff] }
 0x130   : > { %v1538_v22 = vsel %vm1440_vm5, %v1506_v16, %v4526_v9  ;;  %v1442_v31 = vsel %vm1440_vm5, %v1409_v18, %v4527_v62  ;;  %v1475_v3 = vsel %vm225_vm0, %v8495_v27, %v4541_v57  ;;  %v1377_v16 = vsel %vm225_vm0, %v8496_v42, %v4486_v7  ;;  %v8499_v7 = vld [vmem:[#allocation28_spill] sm:$0xff] }
 0x131   : > { %v6605_v23 = vpop.permute.xlu1 %4529  ;;  %1708 = vmatprep.mubr.f32.mxu0 %v1538_v22  ;;  %v4550_v39 = vpop.permute.xlu0 %4549  ;;  %v8497_v22 = vld [vmem:[#allocation25_spill] sm:$0xff] }
 0x132   : > { %1709 = vmatmul.mubr.f32.gmra.mrb[2].mxu0 %v1442_v31  ;;  %4834 = vrot.lane.b32.xlu0 %v8492_v14, %s5511_s6  ;;  %v4552_v62 = vunpack.i.h.bf16 %v4550_v39  ;;  %v4551_v9 = vunpack.i.l.bf16 %v4550_v39  ;;  %v4853_v19 = vpack.i.bf16 %v8488_v44, %v8497_v22  ;;  %v4863_v44 = vpack.i.bf16 %v6170_v29, %v8499_v7 }
 0x133   : > { %4819 = vrot.lane.b32.xlu1 %v4818_v36, %s5513_s10  ;;  %v8498_v36 = vld [vmem:[#allocation21_spill] sm:$0xff] }
 0x134   : > { %v4838_v14 = vpack.i.bf16 %v6134_v32, %v8498_v36 }
 0x135   : > { %v4545_v60 = vpop.permute.xlu1 %4544 }
 0x136   : > { %v4547_v41 = vunpack.i.h.bf16 %v4545_v60  ;;  %v4546_v49 = vunpack.i.l.bf16 %v4545_v60  ;;  %4844 = vrot.lane.b32.xlu0 %v4843_v8, %s5513_s10 }
 0x137   : > { %4829 = vrot.lane.b32.xlu1 %v4828_v6, %s5513_s10  ;;  %v8501_v6 = vld [vmem:[#allocation23_spill] sm:$0xff] }
 0x138   : > { %v6625_v18 = vpop.permute.xlu0 %4569  ;;  %v1507_v51 = vsel %vm1407_vm4, %v1475_v3, %v4546_v49  ;;  %v1410_v31 = vsel %vm1407_vm4, %v1377_v16, %v4547_v41  ;;  %v4848_v32 = vpack.i.bf16 %v6149_v53, %v8501_v6  ;;  %v4487_v49 = vunpack.i.h.bf16 %v6548_v35  ;;  %v8504_v35 = vld [vmem:[#allocation10_spill] sm:$0xff] }
 0x139   : > { %v6633_v39 = vpop.permute.xlu1 %4554  ;;  %v1539_v8 = vsel %vm1440_vm5, %v1507_v51, %v4551_v9  ;;  %v1443_v57 = vsel %vm1440_vm5, %v1410_v31, %v4552_v62  ;;  %v4542_v62 = vunpack.i.h.bf16 %v4540_v2  ;;  %v8502_v9 = vld [vmem:[#allocation29_spill] sm:$0xff]  ;;  %v8503_v53 = vpack.i.bf16 %v6250_v52, %v6243_v25  ;;  %v5440_v31 = vld [vmem:[#allocation2 + $0x20] sm:$0xff] }
 0x13a   : > { %1713 = vmatprep.mubr.f32.mxu0 %v1539_v8  ;;  %4854 = vrot.lane.b32.xlu0 %v4853_v19, %s5513_s10  ;;  %v4873_v27 = vpack.i.bf16 %v6173_v15, %v8502_v9 }
 0x13b   : > { %4839 = vrot.lane.b32.xlu1 %v4838_v14, %s5512_s9  ;;  %1714 = vmatmul.mubr.f32.gmra.mrb[4].mxu0 %v1443_v57  ;;  %v1476_v2 = vsel %vm225_vm0, %v8504_v35, %v4542_v62  ;;  %v1378_v14 = vsel %vm225_vm0, %v5440_v31, %v4487_v49  ;;  %v8506_v62 = vpack.i.bf16 %v6299_v33, %v6287_v40 }
 0x13c   : > { %v6641_v60 = vpop.permute.xlu0 %4574 }
 0x13d   : > { %8500 = vst [vmem:[#allocation5_spill] sm:$0xff] %v6641_v60  ;;  %v6645_v41 = vpop.permute.xlu1 %4559 }
 0x13e   : > { %4864 = vrot.lane.b32.xlu0 %v4863_v44, %s5512_s9 }
 0x13f   : > { %4849 = vrot.lane.b32.xlu1 %v4848_v32, %s5512_s9 }
 0x140   : > { %v4580_v3 = vpop.permute.xlu0 %4579 }
 0x141   : > { %v4565_v42 = vpop.permute.xlu1 %4564  ;;  %v4582_v29 = vunpack.i.h.bf16 %v4580_v3  ;;  %v4581_v16 = vunpack.i.l.bf16 %v4580_v3 }
 0x142   : > { %v4567_v51 = vunpack.i.h.bf16 %v4565_v42  ;;  %v4566_v19 = vunpack.i.l.bf16 %v4565_v42  ;;  %4874 = vrot.lane.b32.xlu0 %v4873_v27, %s5512_s9  ;;  %v8505_v27 = vld [vmem:[#allocation34_spill] sm:$0xff] }
 0x143   : > { %4859 = vrot.lane.b32.xlu1 %v8503_v53, %s5511_s6  ;;  %v4868_v3 = vpack.i.bf16 %v8498_v36, %v8505_v27  ;;  %v8508_v53 = vld [vmem:[#allocation35_spill] sm:$0xff] }
 0x144   : > { %v4590_v15 = vpop.permute.xlu0 %4589  ;;  %v1508_v8 = vsel %vm1407_vm4, %v1476_v2, %v4566_v19  ;;  %v1411_v57 = vsel %vm1407_vm4, %v1378_v14, %v4567_v51  ;;  %v8507_v51 = vld [vmem:[#allocation32_spill] sm:$0xff]  ;;  %v4878_v36 = vpack.i.bf16 %v8501_v6, %v8508_v53  ;;  %v8510_v2 = vld [vmem:[#allocation33_spill] sm:$0xff]  ;;  %v8511_v14 = vld [vmem:[#allocation30_spill] sm:$0xff] }
 0x145   : > { %v4585_v44 = vpop.permute.xlu1 %4584  ;;  %v1540_v32 = vsel %vm1440_vm5, %v1508_v8, %v4581_v16  ;;  %v1444_v42 = vsel %vm1440_vm5, %v1411_v57, %v4582_v29  ;;  %v4893_v19 = vpack.i.bf16 %v8499_v7, %v8507_v51  ;;  %v4903_v31 = vpack.i.bf16 %v8502_v9, %v8510_v2  ;;  %v6702_v51 = vld [vmem:[#allocation2 + $0x198] sm:$0xff] }
 0x146   : > { %1718 = vmatprep.mubr.f32.mxu0 %v1540_v32  ;;  %4884 = vrot.lane.b32.xlu0 %v8506_v62, %s5511_s6  ;;  %v4586_v29 = vunpack.i.l.bf16 %v4585_v44  ;;  %v4888_v8 = vpack.i.bf16 %v6243_v25, %v8511_v14  ;;  %v4511_v7 = vunpack.i.l.bf16 %v6572_v47  ;;  %v4592_v6 = vunpack.i.h.bf16 %v4590_v15  ;;  %v5442_v53 = vld [vmem:[#allocation2 + $0x38] sm:$0xff] }
 0x147   : > { %4869 = vrot.lane.b32.xlu1 %v4868_v3, %s5513_s10  ;;  %1719 = vmatmul.mubr.f32.gmra.mrb[6].mxu0 %v1444_v42  ;;  %v4591_v32 = vunpack.i.l.bf16 %v4590_v15  ;;  %v8513_v42 = vld [vmem:[#allocation17_spill] sm:$0xff]  ;;  %v4587_v30 = vunpack.i.h.bf16 %v4585_v44  ;;  %v5441_v15 = vld [vmem:[#allocation2 + $0x30] sm:$0xff]  ;;  %v4918_v27 = vpack.i.bf16 %v8511_v14, %v6423_v38 }
 0x148   : > { %v6671_v49 = vpop.permute.xlu0 %4609  ;;  %v1477_v62 = vsel %vm225_vm0, %v8513_v42, %v4586_v29  ;;  %v6704_v29 = vld [vmem:[#allocation2 + $0x1a0] sm:$0xff] }
 0x149   : > { %v6675_v16 = vpop.permute.xlu1 %4594  ;;  %v1371_v14 = vrot.slane %v6704_v29, 2 }
 0x14a   : > { %4894 = vrot.lane.b32.xlu0 %v4893_v19, %s5513_s10  ;;  %v8514_v19 = vld [vmem:[#allocation31_spill] sm:$0xff] }
 0x14b   : > { %4879 = vrot.lane.b32.xlu1 %v4878_v36, %s5513_s10  ;;  %v4898_v9 = vpack.i.bf16 %v6250_v52, %v8514_v19  ;;  %v4512_v36 = vunpack.i.h.bf16 %v6572_v47  ;;  %v1509_v47 = vsel %vm1407_vm4, %v1477_v62, %v4591_v32 }
 0x14c   : > { %v6681_v35 = vpop.permute.xlu0 %4614 }
 0x14d   : > { %8509 = vst [vmem:[#allocation9_spill] sm:$0xff] %v6681_v35  ;;  %v6687_v57 = vpop.permute.xlu1 %4599 }
 0x14e   : > { %8512 = vst [vmem:[#allocation36_spill] sm:$0xff] %v6687_v57  ;;  %4904 = vrot.lane.b32.xlu0 %v4903_v31, %s5513_s10  ;;  %v8515_v31 = vpack.i.bf16 %v6287_v40, %v6318_v26  ;;  %v1270_v40 = vrot.slane %v6704_v29, 1 }
 0x14f   : > { %4889 = vrot.lane.b32.xlu1 %v4888_v8, %s5512_s9  ;;  %v1379_v8 = vsel %vm225_vm0, %v5441_v15, %v4511_v7 }
 0x150   : > { %v4620_v3 = vpop.permute.xlu0 %4619  ;;  %v1412_v44 = vsel %vm1407_vm4, %v1379_v8, %v4592_v6  ;;  %v8516_v6 = vpack.i.bf16 %v6299_v33, %v6352_v46  ;;  %v8517_v8 = vld [vmem:[#allocation18_spill] sm:$0xff] }
 0x151   : > { %v4605_v25 = vpop.permute.xlu1 %4604  ;;  %v4622_v42 = vunpack.i.h.bf16 %v4620_v3  ;;  %v4621_v52 = vunpack.i.l.bf16 %v4620_v3  ;;  %v1380_v3 = vsel %vm225_vm0, %v5442_v53, %v4512_v36  ;;  %v8518_v53 = vpack.i.bf16 %v6358_v37, %v6355_v54 }
 0x152   : > { %v4607_v35 = vunpack.i.h.bf16 %v4605_v25  ;;  %v4606_v2 = vunpack.i.l.bf16 %v4605_v25  ;;  %4914 = vrot.lane.b32.xlu0 %v8515_v31, %s5512_s9  ;;  %v1269_v25 = vrot.slane %v6702_v51, 1 }
 0x153   : > { %4899 = vrot.lane.b32.xlu1 %v4898_v9, %s5512_s9  ;;  %v4531_v9 = vunpack.i.l.bf16 %v6605_v23 }
 0x154   : > { %v6711_v31 = vpop.permute.xlu0 %4629  ;;  %v1541_v7 = vsel %vm1440_vm5, %v1509_v47, %v4606_v2  ;;  %v1445_v15 = vsel %vm1440_vm5, %v1412_v44, %v4607_v35  ;;  %v1478_v2 = vsel %vm225_vm0, %v8517_v8, %v4587_v30  ;;  %v530_v47 = vld [vmem:[#allocation2 + $0x1a8] sm:$0x3] }
 0x155   : > { %v4625_v57 = vpop.permute.xlu1 %4624  ;;  %1723 = vmatprep.mubr.f32.mxu0 %v1541_v7  ;;  %v4631_v35 = vunpack.i.l.bf16 %v6711_v31  ;;  %v1510_v36 = vsel %vm1407_vm4, %v1478_v2, %v4621_v52  ;;  %v1272_v60 = vrot.slane %v530_v47, 1  ;;  %v5443_v52 = vld [vmem:[#allocation2 + $0x48] sm:$0xff]  ;;  %v1373_v2 = vrot.slane %v530_v47, 2 }
 0x156   : > { %v4627_v32 = vunpack.i.h.bf16 %v4625_v57  ;;  %v4626_v62 = vunpack.i.l.bf16 %v4625_v57  ;;  %1724 = vmatmul.mubr.f32.gmra.mrb[8].mxu0 %v1445_v15  ;;  %4924 = vrot.lane.b32.xlu0 %v8516_v6, %s5512_s9  ;;  %v1413_v57 = vsel %vm1407_vm4, %v1380_v3, %v4622_v42  ;;  %v1271_v15 = vsel %vm579_vm2, %v1269_v25, %v1270_v40  ;;  %v8520_v25 = vld [vmem:[#allocation22_spill] sm:$0xff] }
 0x157   : > { %4909 = vrot.lane.b32.xlu1 %v8518_v53, %s5511_s6  ;;  %v8519_v42 = vpack.i.bf16 %v6407_v5, %v6404_v11  ;;  %v1381_v3 = vsel %vm225_vm0, %v5443_v52, %v4531_v9  ;;  %v4532_v47 = vunpack.i.h.bf16 %v6605_v23  ;;  %v4948_v52 = vpack.i.bf16 %v6358_v37, %v6704_v29 }
 0x158   : > { %v4640_v44 = vpop.permute.xlu0 %4639  ;;  %v1542_v7 = vsel %vm1440_vm5, %v1510_v36, %v4626_v62  ;;  %v1446_v33 = vsel %vm1440_vm5, %v1413_v57, %v4627_v32  ;;  %v1479_v32 = vsel %vm225_vm0, %v8520_v25, %v4631_v35  ;;  %v1370_v62 = vrot.slane %v6702_v51, 2 }
 0x159   : > { %v4635_v30 = vpop.permute.xlu1 %4634  ;;  %v4642_v6 = vunpack.i.h.bf16 %v4640_v44  ;;  %v4641_v8 = vunpack.i.l.bf16 %v4640_v44  ;;  %1728 = vmatprep.mubr.f32.mxu0 %v1542_v7  ;;  %v4943_v44 = vpack.i.bf16 %v6318_v26, %v1271_v15  ;;  %v1273_v7 = vsel %vm579_vm2, %v1270_v40, %v1272_v60 }
 0x15a   : > { %v4637_v53 = vunpack.i.h.bf16 %v4635_v30  ;;  %v4636_v22 = vunpack.i.l.bf16 %v4635_v30  ;;  %1729 = vmatmul.mubr.f32.gmra.mrb[10].mxu0 %v1446_v33  ;;  %4934 = vrot.lane.b32.xlu0 %v8519_v42, %s5511_s6  ;;  %v1374_v26 = vsel %vm756_vm3, %v1371_v14, %v1373_v2  ;;  %v4632_v33 = vunpack.i.h.bf16 %v6711_v31 }
 0x15b   : > { %4919 = vrot.lane.b32.xlu1 %v4918_v27, %s5513_s10  ;;  %v4928_v27 = vpack.i.bf16 %v8514_v19, %v6426_v34  ;;  %v4953_v19 = vpack.i.bf16 %v6352_v46, %v1273_v7  ;;  %v4938_v60 = vpack.i.bf16 %v6355_v54, %v6702_v51  ;;  %v5444_v46 = vld [vmem:[#allocation2 + $0x50] sm:$0xff]  ;;  %v4557_v29 = vunpack.i.h.bf16 %v6633_v39 }
 0x15c   : > { %v4655_v36 = vpop.permute.xlu0 %4654  ;;  %v1511_v57 = vsel %vm1407_vm4, %v1479_v32, %v4636_v22  ;;  %v1414_v5 = vsel %vm1407_vm4, %v1381_v3, %v4637_v53  ;;  %v1372_v22 = vsel %vm756_vm3, %v1370_v62, %v1371_v14  ;;  %v1382_v53 = vsel %vm225_vm0, %v5444_v46, %v4532_v47 }
 0x15d   : > { %v6748_v11 = vpop.permute.xlu1 %4644  ;;  %v1543_v9 = vsel %vm1440_vm5, %v1511_v57, %v4641_v8  ;;  %v1447_v35 = vsel %vm1440_vm5, %v1414_v5, %v4642_v6  ;;  %4290 = vmatprep.mubr.msk.f32.mxu1 %vm225_vm0, %v1372_v22  ;;  %v4657_v23 = vunpack.i.h.bf16 %v4655_v36  ;;  %v4656_v31 = vunpack.i.l.bf16 %v4655_v36 }
 0x15e   : > { %1733 = vmatprep.mubr.f32.mxu0 %v1543_v9  ;;  %4944 = vrot.lane.b32.xlu0 %v4943_v44, %s5513_s10  ;;  %v1480_v8 = vsel %vm225_vm0, %v6157_v63, %v4632_v33  ;;  %v4556_v62 = vunpack.i.l.bf16 %v6633_v39 }
 0x15f   : > { %4929 = vrot.lane.b32.xlu1 %v4928_v27, %s5513_s10  ;;  %1734 = vmatmul.mubr.f32.gmra.mrb[12].mxu0 %v1447_v35  ;;  %v5445_v27 = vld [vmem:[#allocation2 + $0x60] sm:$0xff] }
 0x160   : > { %v4665_v15 = vpop.permute.xlu0 %4664  ;;  %4291 = vmatmul.mubr.msk.f32.gmra.mrb[30].mxu1 %vm225_vm0, %v1374_v26  ;;  %v1383_v35 = vsel %vm225_vm0, %v5445_v27, %v4556_v62 }
 0x161   : > { %v4650_v40 = vpop.permute.xlu1 %4649  ;;  %v4667_v63 = vunpack.i.h.bf16 %v4665_v15  ;;  %v4666_v44 = vunpack.i.l.bf16 %v4665_v15 }
 0x162   : > { %v4652_v30 = vunpack.i.h.bf16 %v4650_v40  ;;  %v4651_v6 = vunpack.i.l.bf16 %v4650_v40  ;;  %4954 = vrot.lane.b32.xlu0 %v4953_v19, %s5513_s10 }
 0x163   : > { %4939 = vrot.lane.b32.xlu1 %v4938_v60, %s5512_s9  ;;  %v1416_v47 = vsel %vm1407_vm4, %v1383_v35, %v4667_v63  ;;  %v4571_v60 = vunpack.i.l.bf16 %v6625_v18 }
 0x164   : > { %v4675_v42 = vpop.permute.xlu0 %4674  ;;  %v1512_v54 = vsel %vm1407_vm4, %v1480_v8, %v4651_v6  ;;  %v1415_v51 = vsel %vm1407_vm4, %v1382_v53, %v4652_v30  ;;  %v5446_v6 = vld [vmem:[#allocation2 + $0x68] sm:$0xff] }
 0x165   : > { %v4660_v3 = vpop.permute.xlu1 %4659  ;;  %v1544_v25 = vsel %vm1440_vm5, %v1512_v54, %v4656_v31  ;;  %v1448_v32 = vsel %vm1440_vm5, %v1415_v51, %v4657_v23  ;;  %v4677_v7 = vunpack.i.h.bf16 %v4675_v42  ;;  %v4676_v22 = vunpack.i.l.bf16 %v4675_v42 }
 0x166   : > { %v4661_v14 = vunpack.i.l.bf16 %v4660_v3  ;;  %1738 = vmatprep.mubr.f32.mxu0 %v1544_v25  ;;  %v4662_v2 = vunpack.i.h.bf16 %v4660_v3  ;;  %v1384_v23 = vsel %vm225_vm0, %v5446_v6, %v4557_v29  ;;  %v4572_v51 = vunpack.i.h.bf16 %v6625_v18  ;;  %v5447_v25 = vld [vmem:[#allocation2 + $0x78] sm:$0xff] }
 0x167   : > { %4949 = vrot.lane.b32.xlu1 %v4948_v52, %s5512_s9  ;;  %1739 = vmatmul.mubr.f32.gmra.mrb[14].mxu0 %v1448_v32  ;;  %v1417_v46 = vsel %vm1407_vm4, %v1384_v23, %v4677_v7  ;;  %v1385_v32 = vsel %vm225_vm0, %v5447_v25, %v4571_v60 }
 0x168   : > { %v4685_v36 = vpop.permute.xlu0 %4684  ;;  %v1481_v57 = vsel %vm225_vm0, %v6183_v58, %v4661_v14  ;;  %v1482_v15 = vsel %vm225_vm0, %v6186_v4, %v4662_v2 }
 0x169   : > { %v4670_v37 = vpop.permute.xlu1 %4669  ;;  %v1513_v26 = vsel %vm1407_vm4, %v1481_v57, %v4666_v44  ;;  %v4686_v31 = vunpack.i.l.bf16 %v4685_v36  ;;  %v1514_v8 = vsel %vm1407_vm4, %v1482_v15, %v4676_v22  ;;  %v4687_v62 = vunpack.i.h.bf16 %v4685_v36 }
 0x16a   : > { %v4672_v5 = vunpack.i.h.bf16 %v4670_v37  ;;  %v4671_v9 = vunpack.i.l.bf16 %v4670_v37 }
 0x16b   : > { %v1483_v2 = vsel %vm225_vm0, %v6280_v45, %v4686_v31  ;;  %v1484_v7 = vsel %vm225_vm0, %v6295_v13, %v4687_v62  ;;  %v5448_v45 = vld [vmem:[#allocation2 + $0x80] sm:$0xff] }
 0x16c   : > { %v4695_v33 = vpop.permute.xlu0 %4694  ;;  %v1545_v19 = vsel %vm1440_vm5, %v1513_v26, %v4671_v9  ;;  %v1449_v58 = vsel %vm1440_vm5, %v1416_v47, %v4672_v5  ;;  %v1386_v22 = vsel %vm225_vm0, %v5448_v45, %v4572_v51 }
 0x16d   : > { %v4680_v39 = vpop.permute.xlu1 %4679  ;;  %1743 = vmatprep.mubr.f32.mxu0 %v1545_v19  ;;  %v4697_v14 = vunpack.i.h.bf16 %v4695_v33  ;;  %v4696_v63 = vunpack.i.l.bf16 %v4695_v33 }
 0x16e   : > { %v4682_v40 = vunpack.i.h.bf16 %v4680_v39  ;;  %v4681_v30 = vunpack.i.l.bf16 %v4680_v39  ;;  %1744 = vmatmul.mubr.f32.gmra.mrb[16].mxu0 %v1449_v58  ;;  %v4596_v39 = vunpack.i.l.bf16 %v6675_v16 }
 0x170   : > { %v4705_v53 = vpop.permute.xlu0 %4704  ;;  %v1546_v42 = vsel %vm1440_vm5, %v1514_v8, %v4681_v30  ;;  %v1450_v4 = vsel %vm1440_vm5, %v1417_v46, %v4682_v40  ;;  %v4597_v8 = vunpack.i.h.bf16 %v6675_v16 }
 0x171   : > { %v4690_v54 = vpop.permute.xlu1 %4689  ;;  %1748 = vmatprep.mubr.f32.mxu0 %v1546_v42  ;;  %v4707_v35 = vunpack.i.h.bf16 %v4705_v53  ;;  %v4706_v36 = vunpack.i.l.bf16 %v4705_v53  ;;  %v5449_v42 = vld [vmem:[#allocation2 + $0x90] sm:$0xff] }
 0x172   : > { %v4692_v52 = vunpack.i.h.bf16 %v4690_v54  ;;  %v4691_v3 = vunpack.i.l.bf16 %v4690_v54  ;;  %1749 = vmatmul.mubr.f32.gmra.mrb[18].mxu0 %v1450_v4  ;;  %v1387_v4 = vsel %vm225_vm0, %v5449_v42, %v4596_v39  ;;  %v5452_v42 = vld [vmem:[#allocation2 + $0xb0] sm:$0xff] }
 0x174   : > { %v4715_v57 = vpop.permute.xlu0 %4714  ;;  %v1515_v44 = vsel %vm1407_vm4, %v1483_v2, %v4691_v3  ;;  %v1418_v37 = vsel %vm1407_vm4, %v1385_v32, %v4692_v52  ;;  %v4611_v2 = vunpack.i.l.bf16 %v6671_v49 }
 0x175   : > { %v4700_v29 = vpop.permute.xlu1 %4699  ;;  %v1547_v18 = vsel %vm1440_vm5, %v1515_v44, %v4696_v63  ;;  %v1451_v5 = vsel %vm1440_vm5, %v1418_v37, %v4697_v14  ;;  %v4717_v40 = vunpack.i.h.bf16 %v4715_v57  ;;  %v4716_v23 = vunpack.i.l.bf16 %v4715_v57  ;;  %v5450_v37 = vld [vmem:[#allocation2 + $0x98] sm:$0xff] }
 0x176   : > { %v4702_v9 = vunpack.i.h.bf16 %v4700_v29  ;;  %v4701_v27 = vunpack.i.l.bf16 %v4700_v29  ;;  %1753 = vmatprep.mubr.f32.mxu0 %v1547_v18  ;;  %v1388_v29 = vsel %vm225_vm0, %v5450_v37, %v4597_v8 }
 0x177   : > { %1754 = vmatmul.mubr.f32.gmra.mrb[20].mxu0 %v1451_v5  ;;  %v1420_v3 = vsel %vm1407_vm4, %v1387_v4, %v4717_v40 }
 0x178   : > { %v4725_v26 = vpop.permute.xlu0 %4724  ;;  %v1516_v47 = vsel %vm1407_vm4, %v1484_v7, %v4701_v27  ;;  %v1419_v33 = vsel %vm1407_vm4, %v1386_v22, %v4702_v9  ;;  %v4612_v7 = vunpack.i.h.bf16 %v6671_v49 }
 0x179   : > { %v4710_v19 = vpop.permute.xlu1 %4709  ;;  %v1548_v58 = vsel %vm1440_vm5, %v1516_v47, %v4706_v36  ;;  %v1452_v15 = vsel %vm1440_vm5, %v1419_v33, %v4707_v35  ;;  %v4727_v54 = vunpack.i.h.bf16 %v4725_v26  ;;  %v4726_v51 = vunpack.i.l.bf16 %v4725_v26  ;;  %v5451_v26 = vld [vmem:[#allocation2 + $0xa8] sm:$0xff] }
 0x17a   : > { %v4711_v60 = vunpack.i.l.bf16 %v4710_v19  ;;  %1758 = vmatprep.mubr.f32.mxu0 %v1548_v58  ;;  %v4712_v13 = vunpack.i.h.bf16 %v4710_v19  ;;  %v1389_v47 = vsel %vm225_vm0, %v5451_v26, %v4611_v2  ;;  %v1390_v4 = vsel %vm225_vm0, %v5452_v42, %v4612_v7 }
 0x17b   : > { %1759 = vmatmul.mubr.f32.gmra.mrb[22].mxu0 %v1452_v15  ;;  %v1421_v9 = vsel %vm1407_vm4, %v1388_v29, %v4727_v54 }
 0x17c   : > { %v4735_v30 = vpop.permute.xlu0 %4734  ;;  %v1485_v6 = vsel %vm225_vm0, %v6309_v61, %v4711_v60  ;;  %v1486_v16 = vsel %vm225_vm0, %v6312_v1, %v4712_v13 }
 0x17d   : > { %v4720_v31 = vpop.permute.xlu1 %4719  ;;  %v1517_v52 = vsel %vm1407_vm4, %v1485_v6, %v4716_v23  ;;  %v4736_v18 = vunpack.i.l.bf16 %v4735_v30  ;;  %v1518_v5 = vsel %vm1407_vm4, %v1486_v16, %v4726_v51  ;;  %v4737_v33 = vunpack.i.h.bf16 %v4735_v30 }
 0x17e   : > { %v4722_v46 = vunpack.i.h.bf16 %v4720_v31  ;;  %v4721_v53 = vunpack.i.l.bf16 %v4720_v31 }
 0x17f   : > { %v6817_v25 = vpop.f32.mrb[0].mxu1  ;;  %v1487_v15 = vsel %vm225_vm0, %v6447_v28, %v4736_v18  ;;  %v1488_v28 = vsel %vm225_vm0, %v6450_v43, %v4737_v33 }
 0x180   : > { %v4745_v32 = vpop.permute.xlu0 %4744  ;;  %v1549_v61 = vsel %vm1440_vm5, %v1517_v52, %v4721_v53  ;;  %v1453_v62 = vsel %vm1440_vm5, %v1420_v3, %v4722_v46  ;;  %v6823_v63 = vpop.f32.mrb[1].mxu1 }
 0x181   : > { %v4730_v14 = vpop.permute.xlu1 %4729  ;;  %1763 = vmatprep.mubr.f32.mxu0 %v1549_v61  ;;  %v4747_v19 = vunpack.i.h.bf16 %v4745_v32  ;;  %v4746_v58 = vunpack.i.l.bf16 %v4745_v32 }
 0x182   : > { %v4732_v57 = vunpack.i.h.bf16 %v4730_v14  ;;  %v4731_v44 = vunpack.i.l.bf16 %v4730_v14  ;;  %1764 = vmatmul.mubr.f32.gmra.mrb[24].mxu0 %v1453_v62  ;;  %v4646_v62 = vunpack.i.l.bf16 %v6748_v11 }
 0x184   : > { %v4755_v27 = vpop.permute.xlu0 %4754  ;;  %v1550_v1 = vsel %vm1440_vm5, %v1518_v5, %v4731_v44  ;;  %v1454_v35 = vsel %vm1440_vm5, %v1421_v9, %v4732_v57  ;;  %v4647_v5 = vunpack.i.h.bf16 %v6748_v11 }
 0x185   : > { %v4740_v36 = vpop.permute.xlu1 %4739  ;;  %1768 = vmatprep.mubr.f32.mxu0 %v1550_v1  ;;  %v4757_v46 = vunpack.i.h.bf16 %v4755_v27  ;;  %v4756_v53 = vunpack.i.l.bf16 %v4755_v27  ;;  %v5453_v1 = vld [vmem:[#allocation2 + $0xc0] sm:$0xff] }
 0x186   : > { %v4742_v45 = vunpack.i.h.bf16 %v4740_v36  ;;  %v4741_v22 = vunpack.i.l.bf16 %v4740_v36  ;;  %1769 = vmatmul.mubr.f32.gmra.mrb[26].mxu0 %v1454_v35  ;;  %v1391_v35 = vsel %vm225_vm0, %v5453_v1, %v4646_v62 }
 0x187   : > { %v6835_v39 = vpop.f32.mrb[2].mxu1 }
 0x188   : > { %v4765_v60 = vpop.permute.xlu0 %4764  ;;  %v1519_v40 = vsel %vm1407_vm4, %v1487_v15, %v4741_v22  ;;  %v1422_v13 = vsel %vm1407_vm4, %v1389_v47, %v4742_v45  ;;  %v6840_v23 = vpop.f32.mrb[3].mxu1 }
 0x189   : > { %v4750_v49 = vpop.permute.xlu1 %4749  ;;  %v1551_v6 = vsel %vm1440_vm5, %v1519_v40, %v4746_v58  ;;  %v1455_v31 = vsel %vm1440_vm5, %v1422_v13, %v4747_v19  ;;  %v4767_v14 = vunpack.i.h.bf16 %v4765_v60  ;;  %v4766_v37 = vunpack.i.l.bf16 %v4765_v60  ;;  %v5454_v60 = vld [vmem:[#allocation2 + $0xc8] sm:$0xff] }
 0x18a   : > { %v4752_v30 = vunpack.i.h.bf16 %v4750_v49  ;;  %v4751_v8 = vunpack.i.l.bf16 %v4750_v49  ;;  %1773 = vmatprep.mubr.f32.mxu0 %v1551_v6  ;;  %v4491_v19 = vunpack.i.l.bf16 %v6544_v50  ;;  %v1392_v40 = vsel %vm225_vm0, %v5454_v60, %v4647_v5  ;;  %v2251_v60 = vld [vmem:[%s8373_s3 + $0x108] sm:$0xff] }
 0x18b   : > { %1774 = vmatmul.mubr.f32.gmra.mrb[28].mxu0 %v1455_v31  ;;  %v1424_v22 = vsel %vm1407_vm4, %v1391_v35, %v4767_v14 }
 0x18c   : > { %v4775_v54 = vpop.permute.xlu0 %4774  ;;  %v1520_v51 = vsel %vm1407_vm4, %v1488_v28, %v4751_v8  ;;  %v1423_v52 = vsel %vm1407_vm4, %v1390_v4, %v4752_v30  ;;  %v4492_v28 = vunpack.i.h.bf16 %v6544_v50 }
 0x18d   : > { %v4760_v3 = vpop.permute.xlu1 %4759  ;;  %v1552_v32 = vsel %vm1440_vm5, %v1520_v51, %v4756_v53  ;;  %v1456_v61 = vsel %vm1440_vm5, %v1423_v52, %v4757_v46  ;;  %v4777_v36 = vunpack.i.h.bf16 %v4775_v54  ;;  %v4776_v7 = vunpack.i.l.bf16 %v4775_v54  ;;  %v5455_v54 = vld [vmem:[#allocation2 + $0xd8] sm:$0xff] }
 0x18e   : > { %v4761_v16 = vunpack.i.l.bf16 %v4760_v3  ;;  %1778 = vmatprep.mubr.f32.mxu0 %v1552_v32  ;;  %v4762_v43 = vunpack.i.h.bf16 %v4760_v3  ;;  %v1393_v51 = vsel %vm225_vm0, %v5455_v54, %v4491_v19 }
 0x18f   : > { %1779 = vmatmul.mubr.f32.gmra.mrb[30].mxu0 %v1456_v61  ;;  %v1425_v6 = vsel %vm1407_vm4, %v1392_v40, %v4777_v36 }
 0x190   : > { %v6851_v2 = vpop.f32.mrb[4].mxu1  ;;  %v4785_v57 = vpop.permute.xlu0 %4784  ;;  %v1489_v44 = vsel %vm225_vm0, %v5954_v21, %v4761_v16  ;;  %v1490_v33 = vsel %vm225_vm0, %v8477_v10, %v4762_v43 }
 0x191   : > { %v4770_v29 = vpop.permute.xlu1 %4769  ;;  %v6855_v18 = vpop.f32.mrb[5].mxu1  ;;  %v1521_v45 = vsel %vm1407_vm4, %v1489_v44, %v4766_v37  ;;  %v4786_v13 = vunpack.i.l.bf16 %v4785_v57  ;;  %v1522_v49 = vsel %vm1407_vm4, %v1490_v33, %v4776_v7  ;;  %v4787_v52 = vunpack.i.h.bf16 %v4785_v57 }
 0x192   : > { %v4772_v9 = vunpack.i.h.bf16 %v4770_v29  ;;  %v4771_v27 = vunpack.i.l.bf16 %v4770_v29 }
 0x193   : > { %v1491_v61 = vsel %vm225_vm0, %v8480_v24, %v4786_v13  ;;  %v5456_v24 = vld [vmem:[#allocation2 + $0xe0] sm:$0xff] }
 0x194   : > { %v4795_v26 = vpop.permute.xlu0 %4794  ;;  %v1553_v21 = vsel %vm1440_vm5, %v1521_v45, %v4771_v27  ;;  %v1457_v47 = vsel %vm1440_vm5, %v1424_v22, %v4772_v9  ;;  %v1492_v9 = vsel %vm225_vm0, %v8482_v12, %v4787_v52  ;;  %v1394_v27 = vsel %vm225_vm0, %v5456_v24, %v4492_v28 }
 0x195   : > { %v4780_v11 = vpop.permute.xlu1 %4779  ;;  %1783 = vmatprep.mubr.f32.mxu0 %v1553_v21  ;;  %v4797_v3 = vunpack.i.h.bf16 %v4795_v26  ;;  %v4796_v32 = vunpack.i.l.bf16 %v4795_v26  ;;  %v4516_v45 = vunpack.i.l.bf16 %v6585_v55  ;;  %v4537_v24 = vunpack.i.h.bf16 %v6587_v59 }
 0x196   : > { %v4782_v58 = vunpack.i.h.bf16 %v4780_v11  ;;  %v4781_v15 = vunpack.i.l.bf16 %v4780_v11  ;;  %1784 = vmatmul.mubr.f32.gmra.mrb[32].mxu0 %v1457_v47 }
 0x197   : > { %v6869_v31 = vpop.f32.mrb[6].mxu1 }
 0x198   : > { %v4805_v30 = vpop.permute.xlu0 %4804  ;;  %v1554_v10 = vsel %vm1440_vm5, %v1522_v49, %v4781_v15  ;;  %v1458_v8 = vsel %vm1440_vm5, %v1425_v6, %v4782_v58  ;;  %v6873_v53 = vpop.f32.mrb[7].mxu1  ;;  %v2250_v15 = vld [vmem:[%s8373_s3 + $0x100] sm:$0xff]  ;;  %v5457_v49 = vld [vmem:[#allocation2 + $0xf0] sm:$0xff] }
 0x199   : > { %v4790_v46 = vpop.permute.xlu1 %4789  ;;  %1788 = vmatprep.mubr.f32.mxu0 %v1554_v10  ;;  %v4807_v5 = vunpack.i.h.bf16 %v4805_v30  ;;  %v4806_v57 = vunpack.i.l.bf16 %v4805_v30  ;;  %v1395_v6 = vsel %vm225_vm0, %v5457_v49, %v4516_v45  ;;  %v4517_v30 = vunpack.i.h.bf16 %v6585_v55 }
 0x19a   : > { %v4792_v42 = vunpack.i.h.bf16 %v4790_v46  ;;  %v4791_v4 = vunpack.i.l.bf16 %v4790_v46  ;;  %1789 = vmatmul.mubr.f32.gmra.mrb[34].mxu0 %v1458_v8 }
 0x19c   : > { %v4815_v62 = vpop.permute.xlu0 %4814  ;;  %v1523_v16 = vsel %vm1407_vm4, %v1491_v61, %v4791_v4  ;;  %v1426_v14 = vsel %vm1407_vm4, %v1393_v51, %v4792_v42  ;;  %v6909_v4 = vpack.c.bf16 %v2251_v60, %v2250_v15 }
 0x19d   : > { %v4800_v43 = vpop.permute.xlu1 %4799  ;;  %v1555_v50 = vsel %vm1440_vm5, %v1523_v16, %v4796_v32  ;;  %v1459_v44 = vsel %vm1440_vm5, %v1426_v14, %v4797_v3  ;;  %v4817_v12 = vunpack.i.h.bf16 %v4815_v62  ;;  %v4816_v40 = vunpack.i.l.bf16 %v4815_v62 }
 0x19e   : > { %v4802_v37 = vunpack.i.h.bf16 %v4800_v43  ;;  %v4801_v29 = vunpack.i.l.bf16 %v4800_v43  ;;  %1793 = vmatprep.mubr.f32.mxu0 %v1555_v50  ;;  %4454 = vmatprep.subr.bf16.mxu0 %v6909_v4  ;;  %v4536_v62 = vunpack.i.l.bf16 %v6587_v59  ;;  %v5458_v43 = vld [vmem:[#allocation2 + $0xf8] sm:$0xff] }
 0x19f   : > { %1794 = vmatmul.mubr.f32.gmra.mrb[36].mxu0 %v1459_v44  ;;  %v6886_v1 = vpop.f32.mrb[8].mxu1  ;;  %v1428_v46 = vsel %vm1407_vm4, %v1395_v6, %v4817_v12  ;;  %v1396_v50 = vsel %vm225_vm0, %v5458_v43, %v4517_v30 }
 0x1a0   : > { %v4825_v35 = vpop.permute.xlu0 %4824  ;;  %v1524_v36 = vsel %vm1407_vm4, %v1492_v9, %v4801_v29  ;;  %v1427_v7 = vsel %vm1407_vm4, %v1394_v27, %v4802_v37  ;;  %v6892_v21 = vpop.f32.mrb[9].mxu1  ;;  %4456 = vmatpush3.bf16.msra.mxu0 %v6909_v4 }
 0x1a1   : > { %v4810_v22 = vpop.permute.xlu1 %4809  ;;  %v1556_v26 = vsel %vm1440_vm5, %v1524_v36, %v4806_v57  ;;  %v1460_v47 = vsel %vm1440_vm5, %v1427_v7, %v4807_v5  ;;  %v4826_v28 = vunpack.i.l.bf16 %v4825_v35  ;;  %v5459_v36 = vld [vmem:[#allocation2 + $0x108] sm:$0xff] }
 0x1a2   : > { %v4811_v33 = vunpack.i.l.bf16 %v4810_v22  ;;  %1798 = vmatprep.mubr.f32.mxu0 %v1556_v26  ;;  %v4812_v11 = vunpack.i.h.bf16 %v4810_v22  ;;  %v1397_v7 = vsel %vm225_vm0, %v5459_v36, %v4536_v62 }
 0x1a3   : > { %1799 = vmatmul.mubr.f32.gmra.mrb[38].mxu0 %v1460_v47 }
 0x1a4   : > { %v6895_v19 = vpop.permute.xlu0 %4834  ;;  %v1493_v58 = vsel %vm225_vm0, %v8481_v0, %v4811_v33  ;;  %v4827_v0 = vunpack.i.h.bf16 %v4825_v35  ;;  %v1494_v55 = vsel %vm225_vm0, %v8484_v48, %v4812_v11 }
 0x1a5   : > { %v4820_v13 = vpop.permute.xlu1 %4819  ;;  %v1525_v42 = vsel %vm1407_vm4, %v1493_v58, %v4816_v40  ;;  %v4836_v44 = vunpack.i.l.bf16 %v6895_v19  ;;  %v1526_v37 = vsel %vm1407_vm4, %v1494_v55, %v4826_v28  ;;  %v4837_v45 = vunpack.i.h.bf16 %v6895_v19  ;;  %v2252_v19 = vld [vmem:[%s8373_s3 + $0x110] sm:$0xff] }
 0x1a6   : > { %v4822_v10 = vunpack.i.h.bf16 %v4820_v13  ;;  %v4821_v8 = vunpack.i.l.bf16 %v4820_v13  ;;  %v1429_v48 = vsel %vm1407_vm4, %v1396_v50, %v4827_v0 }
 0x1a7   : > { %v6911_v54 = vpop.f32.mrb[10].mxu1  ;;  %v1495_v47 = vsel %vm225_vm0, %v8491_v20, %v4836_v44  ;;  %v2253_v20 = vld [vmem:[%s8373_s3 + $0x118] sm:$0xff] }
 0x1a8   : > { %v4845_v51 = vpop.permute.xlu0 %4844  ;;  %v1557_v52 = vsel %vm1440_vm5, %v1525_v42, %v4821_v8  ;;  %v1461_v3 = vsel %vm1440_vm5, %v1428_v46, %v4822_v10  ;;  %v6917_v61 = vpop.f32.mrb[11].mxu1  ;;  %v6947_v6 = vpack.c.bf16 %v2253_v20, %v2252_v19  ;;  %v1496_v8 = vsel %vm225_vm0, %v8494_v56, %v4837_v45  ;;  %v5460_v46 = vld [vmem:[#allocation2 + $0x110] sm:$0xff] }
 0x1a9   : > { %v4830_v32 = vpop.permute.xlu1 %4829  ;;  %1803 = vmatprep.mubr.f32.mxu0 %v1557_v52  ;;  %v4847_v22 = vunpack.i.h.bf16 %v4845_v51  ;;  %v4846_v26 = vunpack.i.l.bf16 %v4845_v51  ;;  %v1398_v0 = vsel %vm225_vm0, %v5460_v46, %v4537_v24  ;;  %v4561_v56 = vunpack.i.l.bf16 %v6645_v41 }
 0x1aa   : > { %v4832_v16 = vunpack.i.h.bf16 %v4830_v32  ;;  %v4831_v14 = vunpack.i.l.bf16 %v4830_v32  ;;  %1804 = vmatmul.mubr.f32.gmra.mrb[40].mxu0 %v1461_v3  ;;  %4458 = vmatprep.subr.bf16.mxu0 %v6947_v6 }
 0x1ab   : > { %4460 = vmatpush3.bf16.msra.mxu0 %v6947_v6 }
 0x1ac   : > { %v4855_v29 = vpop.permute.xlu0 %4854  ;;  %v1558_v5 = vsel %vm1440_vm5, %v1526_v37, %v4831_v14  ;;  %v1462_v57 = vsel %vm1440_vm5, %v1429_v48, %v4832_v16 }
 0x1ad   : > { %v4840_v9 = vpop.permute.xlu1 %4839  ;;  %1808 = vmatprep.mubr.f32.mxu0 %v1558_v5  ;;  %v4857_v30 = vunpack.i.h.bf16 %v4855_v29  ;;  %v4856_v10 = vunpack.i.l.bf16 %v4855_v29 }
 0x1ae   : > { %v4842_v27 = vunpack.i.h.bf16 %v4840_v9  ;;  %v4841_v35 = vunpack.i.l.bf16 %v4840_v9  ;;  %1809 = vmatmul.mubr.f32.gmra.mrb[42].mxu0 %v1462_v57  ;;  %v4562_v57 = vunpack.i.h.bf16 %v6645_v41 }
 0x1af   : > { %v6935_v58 = vpop.f32.mrb[12].mxu1 }
 0x1b0   : > { %v4865_v12 = vpop.permute.xlu0 %4864  ;;  %v1527_v33 = vsel %vm1407_vm4, %v1495_v47, %v4841_v35  ;;  %v1430_v11 = vsel %vm1407_vm4, %v1397_v7, %v4842_v27  ;;  %v6939_v40 = vpop.f32.mrb[13].mxu1  ;;  %v5461_v27 = vld [vmem:[#allocation2 + $0x120] sm:$0xff] }
 0x1b1   : > { %v4850_v59 = vpop.permute.xlu1 %4849  ;;  %v1559_v15 = vsel %vm1440_vm5, %v1527_v33, %v4846_v26  ;;  %v1463_v60 = vsel %vm1440_vm5, %v1430_v11, %v4847_v22  ;;  %v4867_v14 = vunpack.i.h.bf16 %v4865_v12  ;;  %v4866_v48 = vunpack.i.l.bf16 %v4865_v12  ;;  %v8521_v33 = vld [vmem:[#allocation25_spill] sm:$0xff] }
 0x1b2   : > { %v4852_v13 = vunpack.i.h.bf16 %v4850_v59  ;;  %v4851_v49 = vunpack.i.l.bf16 %v4850_v59  ;;  %1813 = vmatprep.mubr.f32.mxu0 %v1559_v15  ;;  %v1399_v35 = vsel %vm225_vm0, %v5461_v27, %v4561_v56  ;;  %v8522_v15 = vld [vmem:[#allocation5_spill] sm:$0xff] }
 0x1b3   : > { %1814 = vmatmul.mubr.f32.gmra.mrb[44].mxu0 %v1463_v60  ;;  %v6952_v28 = vpop.f32.mrb[14].mxu1  ;;  %v1432_v22 = vsel %vm1407_vm4, %v1399_v35, %v4867_v14  ;;  %v4576_v60 = vunpack.i.l.bf16 %v8522_v15 }
 0x1b4   : > { %v4875_v42 = vpop.permute.xlu0 %4874  ;;  %v1528_v51 = vsel %vm1407_vm4, %v1496_v8, %v4851_v49  ;;  %v1431_v52 = vsel %vm1407_vm4, %v1398_v0, %v4852_v13  ;;  %v6958_v32 = vpop.f32.mrb[15].mxu1  ;;  %v5462_v13 = vld [vmem:[#allocation2 + $0x128] sm:$0xff] }
 0x1b5   : > { %v4860_v3 = vpop.permute.xlu1 %4859  ;;  %v1560_v55 = vsel %vm1440_vm5, %v1528_v51, %v4856_v10  ;;  %v1464_v62 = vsel %vm1440_vm5, %v1431_v52, %v4857_v30  ;;  %v4877_v36 = vunpack.i.h.bf16 %v4875_v42  ;;  %v4876_v7 = vunpack.i.l.bf16 %v4875_v42 }
 0x1b6   : > { %v4861_v16 = vunpack.i.l.bf16 %v4860_v3  ;;  %1818 = vmatprep.mubr.f32.mxu0 %v1560_v55  ;;  %v4862_v43 = vunpack.i.h.bf16 %v4860_v3  ;;  %v1400_v49 = vsel %vm225_vm0, %v5462_v13, %v4562_v57  ;;  %v4577_v55 = vunpack.i.h.bf16 %v8522_v15 }
 0x1b7   : > { %1819 = vmatmul.mubr.f32.gmra.mrb[46].mxu0 %v1464_v62  ;;  %v6963_v50 = vpop.f32.mrb[16].mxu1  ;;  %v1433_v8 = vsel %vm1407_vm4, %v1400_v49, %v4877_v36 }
 0x1b8   : > { %v6965_v44 = vpop.permute.xlu0 %4884  ;;  %v1497_v37 = vsel %vm225_vm0, %v8493_v17, %v4861_v16  ;;  %v6969_v5 = vpop.f32.mrb[17].mxu1  ;;  %v1498_v41 = vsel %vm225_vm0, %v8521_v33, %v4862_v43  ;;  %v5463_v16 = vld [vmem:[#allocation2 + $0x138] sm:$0xff] }
 0x1b9   : > { %v4870_v29 = vpop.permute.xlu1 %4869  ;;  %v1529_v45 = vsel %vm1407_vm4, %v1497_v37, %v4866_v48  ;;  %v4886_v30 = vunpack.i.l.bf16 %v6965_v44  ;;  %v1530_v10 = vsel %vm1407_vm4, %v1498_v41, %v4876_v7  ;;  %v1401_v14 = vsel %vm225_vm0, %v5463_v16, %v4576_v60  ;;  %v8524_v33 = vld [vmem:[#allocation35_spill] sm:$0xff]  ;;  %v8526_v16 = vld [vmem:[#allocation32_spill] sm:$0xff] }
 0x1ba   : > { %v4872_v9 = vunpack.i.h.bf16 %v4870_v29  ;;  %v4871_v24 = vunpack.i.l.bf16 %v4870_v29  ;;  %v4887_v43 = vunpack.i.h.bf16 %v6965_v44  ;;  %v8523_v29 = vld [vmem:[#allocation34_spill] sm:$0xff] }
 0x1bb   : > { %v6975_v26 = vpop.f32.mrb[18].mxu1  ;;  %v1499_v57 = vsel %vm225_vm0, %v8523_v29, %v4886_v30 }
 0x1bc   : > { %v4895_v17 = vpop.permute.xlu0 %4894  ;;  %v1561_v47 = vsel %vm1440_vm5, %v1529_v45, %v4871_v24  ;;  %v1465_v12 = vsel %vm1440_vm5, %v1432_v22, %v4872_v9  ;;  %v6981_v59 = vpop.f32.mrb[19].mxu1  ;;  %v1500_v41 = vsel %vm225_vm0, %v8524_v33, %v4887_v43 }
 0x1bd   : > { %v4880_v11 = vpop.permute.xlu1 %4879  ;;  %1823 = vmatprep.mubr.f32.mxu0 %v1561_v47  ;;  %v4897_v37 = vunpack.i.h.bf16 %v4895_v17  ;;  %v4896_v48 = vunpack.i.l.bf16 %v4895_v17 }
 0x1be   : > { %v4882_v19 = vunpack.i.h.bf16 %v4880_v11  ;;  %v4881_v20 = vunpack.i.l.bf16 %v4880_v11  ;;  %1824 = vmatmul.mubr.f32.gmra.mrb[48].mxu0 %v1465_v12  ;;  %v5464_v11 = vld [vmem:[#allocation2 + $0x140] sm:$0xff] }
 0x1bf   : > { %v6988_v46 = vpop.f32.mrb[20].mxu1  ;;  %v1402_v15 = vsel %vm225_vm0, %v5464_v11, %v4577_v55 }
 0x1c0   : > { %v4905_v0 = vpop.permute.xlu0 %4904  ;;  %v1562_v42 = vsel %vm1440_vm5, %v1530_v10, %v4881_v20  ;;  %v1466_v51 = vsel %vm1440_vm5, %v1433_v8, %v4882_v19  ;;  %v6992_v3 = vpop.f32.mrb[21].mxu1 }
 0x1c1   : > { %v4890_v52 = vpop.permute.xlu1 %4889  ;;  %1828 = vmatprep.mubr.f32.mxu0 %v1562_v42  ;;  %v4907_v17 = vunpack.i.h.bf16 %v4905_v0  ;;  %v4906_v12 = vunpack.i.l.bf16 %v4905_v0  ;;  %v8525_v0 = vld [vmem:[#allocation36_spill] sm:$0xff] }
 0x1c2   : > { %v4892_v62 = vunpack.i.h.bf16 %v4890_v52  ;;  %v4891_v56 = vunpack.i.l.bf16 %v4890_v52  ;;  %1829 = vmatmul.mubr.f32.gmra.mrb[50].mxu0 %v1466_v51  ;;  %v4601_v42 = vunpack.i.l.bf16 %v8525_v0  ;;  %v4602_v29 = vunpack.i.h.bf16 %v8525_v0 }
 0x1c3   : > { %v6999_v9 = vpop.f32.mrb[22].mxu1 }
 0x1c4   : > { %v4915_v24 = vpop.permute.xlu0 %4914  ;;  %v1531_v27 = vsel %vm1407_vm4, %v1499_v57, %v4891_v56  ;;  %v1434_v35 = vsel %vm1407_vm4, %v1401_v14, %v4892_v62  ;;  %v7004_v45 = vpop.f32.mrb[23].mxu1 }
 0x1c5   : > { %v4900_v36 = vpop.permute.xlu1 %4899  ;;  %v1563_v7 = vsel %vm1440_vm5, %v1531_v27, %v4896_v48  ;;  %v1467_v22 = vsel %vm1440_vm5, %v1434_v35, %v4897_v37  ;;  %v4917_v52 = vunpack.i.h.bf16 %v4915_v24  ;;  %v4916_v43 = vunpack.i.l.bf16 %v4915_v24  ;;  %v5465_v35 = vld [vmem:[#allocation2 + $0x150] sm:$0xff] }
 0x1c6   : > { %v4902_v44 = vunpack.i.h.bf16 %v4900_v36  ;;  %v4901_v47 = vunpack.i.l.bf16 %v4900_v36  ;;  %1833 = vmatprep.mubr.f32.mxu0 %v1563_v7  ;;  %v1403_v36 = vsel %vm225_vm0, %v5465_v35, %v4601_v42 }
 0x1c7   : > { %1834 = vmatmul.mubr.f32.gmra.mrb[52].mxu0 %v1467_v22  ;;  %v7010_v60 = vpop.f32.mrb[24].mxu1 }
 0x1c8   : > { %v4925_v19 = vpop.permute.xlu0 %4924  ;;  %v1532_v20 = vsel %vm1407_vm4, %v1500_v41, %v4901_v47  ;;  %v1435_v13 = vsel %vm1407_vm4, %v1402_v15, %v4902_v44  ;;  %v7015_v10 = vpop.f32.mrb[25].mxu1  ;;  %v1436_v47 = vsel %vm1407_vm4, %v1403_v36, %v4917_v52 }
 0x1c9   : > { %v4910_v49 = vpop.permute.xlu1 %4909  ;;  %v1564_v30 = vsel %vm1440_vm5, %v1532_v20, %v4906_v12  ;;  %v1468_v8 = vsel %vm1440_vm5, %v1435_v13, %v4907_v17  ;;  %v4927_v7 = vunpack.i.h.bf16 %v4925_v19  ;;  %v4926_v22 = vunpack.i.l.bf16 %v4925_v19  ;;  %v8527_v12 = vld [vmem:[#allocation33_spill] sm:$0xff] }
 0x1ca   : > { %v4911_v51 = vunpack.i.l.bf16 %v4910_v49  ;;  %1838 = vmatprep.mubr.f32.mxu0 %v1564_v30  ;;  %v4912_v55 = vunpack.i.h.bf16 %v4910_v49  ;;  %v8528_v20 = vld [vmem:[#allocation9_spill] sm:$0xff] }
 0x1cb   : > { %1839 = vmatmul.mubr.f32.gmra.mrb[54].mxu0 %v1468_v8  ;;  %v7019_v62 = vpop.f32.mrb[26].mxu1  ;;  %v4616_v13 = vunpack.i.l.bf16 %v8528_v20  ;;  %v5466_v8 = vld [vmem:[#allocation2 + $0x158] sm:$0xff] }
 0x1cc   : > { %v4935_v56 = vpop.permute.xlu0 %4934  ;;  %v1501_v14 = vsel %vm225_vm0, %v8526_v16, %v4911_v51  ;;  %v7023_v48 = vpop.f32.mrb[27].mxu1  ;;  %v1502_v33 = vsel %vm225_vm0, %v8527_v12, %v4912_v55  ;;  %v1404_v0 = vsel %vm225_vm0, %v5466_v8, %v4602_v29 }
 0x1cd   : > { %v4920_v37 = vpop.permute.xlu1 %4919  ;;  %v1533_v44 = vsel %vm1407_vm4, %v1501_v14, %v4916_v43  ;;  %v4936_v42 = vunpack.i.l.bf16 %v4935_v56  ;;  %v1534_v51 = vsel %vm1407_vm4, %v1502_v33, %v4926_v22  ;;  %v1437_v52 = vsel %vm1407_vm4, %v1404_v0, %v4927_v7 }
 0x1ce   : > { %v4922_v57 = vunpack.i.h.bf16 %v4920_v37  ;;  %v4921_v27 = vunpack.i.l.bf16 %v4920_v37  ;;  %v4617_v43 = vunpack.i.h.bf16 %v8528_v20  ;;  %v4937_v29 = vunpack.i.h.bf16 %v4935_v56 }
 0x1cf   : > { %v7033_v41 = vpop.f32.mrb[28].mxu1  ;;  %v1503_v7 = vsel %vm225_vm0, %v6423_v38, %v4936_v42  ;;  %v5468_v38 = vld [vmem:[#allocation2 + $0x170] sm:$0xff] }
 0x1d0   : > { %v1565_v17 = vsel %vm1440_vm5, %v1533_v44, %v4921_v27  ;;  %v1469_v24 = vsel %vm1440_vm5, %v1436_v47, %v4922_v57  ;;  %v7035_v15 = vpop.f32.mrb[29].mxu1  ;;  %v4945_v30 = vpop.permute.xlu0 %4944  ;;  %v5467_v27 = vld [vmem:[#allocation2 + $0x168] sm:$0xff] }
 0x1d1   : > { %v4930_v11 = vpop.permute.xlu1 %4929  ;;  %1843 = vmatprep.mubr.f32.mxu0 %v1565_v17  ;;  %v1405_v35 = vsel %vm225_vm0, %v5467_v27, %v4616_v13  ;;  %v4947_v36 = vunpack.i.h.bf16 %v4945_v30  ;;  %v4946_v44 = vunpack.i.l.bf16 %v4945_v30 }
 0x1d2   : > { %v4932_v19 = vunpack.i.h.bf16 %v4930_v11  ;;  %v4931_v49 = vunpack.i.l.bf16 %v4930_v11  ;;  %1844 = vmatmul.mubr.f32.gmra.mrb[56].mxu0 %v1469_v24 }
 0x1d4   : > { %v1566_v55 = vsel %vm1440_vm5, %v1534_v51, %v4931_v49  ;;  %v1470_v16 = vsel %vm1440_vm5, %v1437_v52, %v4932_v19  ;;  %v4955_v22 = vpop.permute.xlu0 %4954  ;;  %v1504_v19 = vsel %vm225_vm0, %v6426_v34, %v4937_v29  ;;  %v1406_v49 = vsel %vm225_vm0, %v5468_v38, %v4617_v43  ;;  %v2218_v51 = vld [vmem:[%s8373_s3] sm:$0xff]  ;;  %v2219_v34 = vld [vmem:[%s8373_s3 + $0x8] sm:$0xff]  ;;  %v2220_v52 = vld [vmem:[%s8373_s3 + $0x10] sm:$0xff] }
 0x1d5   : > { %v4940_v14 = vpop.permute.xlu1 %4939  ;;  %1848 = vmatprep.mubr.f32.mxu0 %v1566_v55  ;;  %v4957_v13 = vunpack.i.h.bf16 %v4955_v22  ;;  %v4956_v56 = vunpack.i.l.bf16 %v4955_v22  ;;  %v4406_v55 = vpack.c.bf16 %v2219_v34, %v2218_v51  ;;  %v8529_v43 = vmov 0.0|0.0   ;;  %v2229_v38 = vld [vmem:[%s8373_s3 + $0x58] sm:$0xff] }
 0x1d6   : > { %v4942_v37 = vunpack.i.h.bf16 %v4940_v14  ;;  %v4941_v57 = vunpack.i.l.bf16 %v4940_v14  ;;  %1849 = vmatmul.mubr.f32.gmra.mrb[58].mxu0 %v1470_v16  ;;  %v2221_v16 = vld [vmem:[%s8373_s3 + $0x18] sm:$0xff] }
 0x1d7   : > { %4407 = vmatpush1.bf16.msra.mxu1 %v4406_v55  ;;  %v4409_v14 = vpack.c.bf16 %v2221_v16, %v2220_v52  ;;  %v7116_v34 = vld [vmem:[#allocation3 + $0x8] sm:$0xff]  ;;  %v2255_v52 = vld [vmem:[#allocation3] sm:$0xff] }
 0x1d8   : > { %v1535_v47 = vsel %vm1407_vm4, %v1503_v7, %v4941_v57  ;;  %v1438_v17 = vsel %vm1407_vm4, %v1405_v35, %v4942_v37  ;;  %4408 = vmatprep.subr.bf16.mxu1 %v8529_v43  ;;  %v7074_v37 = vld [vmem:[%s8372_s2] ss:$0 sm:$0xff]  ;;  %v2224_v7 = vld [vmem:[%s8373_s3 + $0x30] sm:$0xff] }
 0x1d9   : > { %v4950_v24 = vpop.permute.xlu1 %4949  ;;  %v1567_v12 = vsel %vm1440_vm5, %v1535_v47, %v4946_v44  ;;  %v1471_v33 = vsel %vm1440_vm5, %v1438_v17, %v4947_v36  ;;  %v2222_v36 = vld [vmem:[%s8373_s3 + $0x20] sm:$0xff]  ;;  %v2223_v44 = vld [vmem:[%s8373_s3 + $0x28] sm:$0xff]  ;;  %v2225_v47 = vld [vmem:[%s8373_s3 + $0x38] sm:$0xff] }
 0x1da   : > { %v4952_v11 = vunpack.i.h.bf16 %v4950_v24  ;;  %v4951_v20 = vunpack.i.l.bf16 %v4950_v24  ;;  %1853 = vmatprep.mubr.f32.mxu0 %v1567_v12  ;;  %v4412_v22 = vpack.c.bf16 %v2223_v44, %v2222_v36 }
 0x1db   : > { %1854 = vmatmul.mubr.f32.gmra.mrb[60].mxu0 %v1471_v33  ;;  %4410 = vmatpush1.bf16.msra.mxu1 %v4409_v14 }
 0x1dc   : > { %v1536_v30 = vsel %vm1407_vm4, %v1504_v19, %v4951_v20  ;;  %v1439_v8 = vsel %vm1407_vm4, %v1406_v49, %v4952_v11  ;;  %4411 = vmatprep.subr.bf16.mxu1 %v8529_v43  ;;  %v2226_v20 = vld [vmem:[%s8373_s3 + $0x40] sm:$0xff] }
 0x1dd   : > { %v1568_v0 = vsel %vm1440_vm5, %v1536_v30, %v4956_v56  ;;  %v1472_v42 = vsel %vm1440_vm5, %v1439_v8, %v4957_v13  ;;  %v2227_v13 = vld [vmem:[%s8373_s3 + $0x48] sm:$0xff]  ;;  %v2228_v56 = vld [vmem:[%s8373_s3 + $0x50] sm:$0xff] }
 0x1de   : > { %1858 = vmatprep.mubr.f32.mxu0 %v1568_v0  ;;  %v4418_v19 = vpack.c.bf16 %v2227_v13, %v2226_v20  ;;  %v4421_v30 = vpack.c.bf16 %v2229_v38, %v2228_v56  ;;  %v2230_v0 = vld [vmem:[%s8373_s3 + $0x60] sm:$0xff] }
 0x1df   : > { %1859 = vmatmul.mubr.f32.gmra.mrb[62].mxu0 %v1472_v42  ;;  %4413 = vmatpush1.bf16.msra.mxu1 %v4412_v22  ;;  %v2231_v42 = vld [vmem:[%s8373_s3 + $0x68] sm:$0xff]  ;;  %v2233_v22 = vld [vmem:[%s8373_s3 + $0x78] sm:$0xff] }
 0x1e0   : > { %4414 = vmatprep.subr.bf16.mxu1 %v8529_v43  ;;  %v4424_v55 = vpack.c.bf16 %v2231_v42, %v2230_v0  ;;  %v2534_v0 = vrot.slane %v7116_v34, 2 }
 0x1fa   : > { %v1705_v57 = vpop.f32.mrb[0].mxu0 }
 0x1fb   : > { %v1706_v27 = vadd.f32 %v7074_v37, %v1705_v57  ;;  %v1707_v35 = vpop.f32.mrb[1].mxu0 }
 0x1fd   : > { %v1931_v29 = vadd.f32 %v6823_v63, %v1706_v27  ;;  %v4415_v63 = vpack.c.bf16 %v2225_v47, %v2224_v7  ;;  %v2358_v27 = vrot.slane %v7116_v34, 1  ;;  %v2232_v7 = vld [vmem:[%s8373_s3 + $0x70] sm:$0xff] }
 0x1fe   : > { %v4427_v47 = vpack.c.bf16 %v2233_v22, %v2232_v7 }
 0x1ff   : > { %vm2089_vm6 = vcmp.ge.f32.partialorder %v1931_v29, 0.0  ;;  %v2121_v17 = vmul.f32 0.2, %v1931_v29  ;;  %4416 = vmatpush1.bf16.msra.mxu1 %v4415_v63 }
 0x200   : > { %4417 = vmatprep.subr.bf16.mxu1 %v8529_v43 }
 0x201   : > { %v2153_v24 = vsel %vm2089_vm6, %v1931_v29, %v2121_v17  ;;  %v2357_v29 = vrot.slane %v2255_v52, 1  ;;  %v2234_v17 = vld [vmem:[%s8373_s3 + $0x80] sm:$0xff] }
 0x202   : > { %2186 = vst.msk [vmem:[#allocation3 + $0x19] sm:$0xff] %vm225_vm0, %v2153_v24 }
 0x203   : > { %4419 = vmatpush1.bf16.msra.mxu1 %v4418_v19 }
 0x204   : > { %4420 = vmatprep.subr.bf16.mxu1 %v8529_v43 }
 0x205   : > { %v1710_v12 = vpop.f32.mrb[2].mxu0 }
 0x206   : > { %v1711_v33 = vadd.f32 %v7074_v37, %v1710_v12  ;;  %v1712_v11 = vpop.f32.mrb[3].mxu0 }
 0x207   : > { %4422 = vmatpush1.bf16.msra.mxu1 %v4421_v30  ;;  %v2359_v11 = vsel %vm579_vm2, %v2357_v29, %v2358_v27  ;;  %v2239_v29 = vld [vmem:[%s8373_s3 + $0xa8] sm:$0xff] }
 0x208   : > { %v1936_v49 = vadd.f32 %v6817_v25, %v1711_v33  ;;  %v7118_v25 = vld [vmem:[#allocation3 + $0x10] sm:$0x3]  ;;  %4423 = vmatprep.subr.bf16.mxu1 %v8529_v43 }
 0x209   : > { %v2360_v35 = vrot.slane %v7118_v25, 1  ;;  %v7125_v44 = vld [vmem:[#allocation3 + $0x18] sm:$0xff] }
 0x20a   : > { %vm2090_vm7 = vcmp.ge.f32.partialorder %v1936_v49, 0.0  ;;  %v2122_v8 = vmul.f32 0.2, %v1936_v49  ;;  %v2538_v20 = vrot.slane %v7125_v44, 2 }
 0x20b   : > { %4425 = vmatpush1.bf16.msra.mxu1 %v4424_v55  ;;  %v2361_v33 = vsel %vm579_vm2, %v2358_v27, %v2360_v35  ;;  %v2238_v35 = vld [vmem:[%s8373_s3 + $0xa0] sm:$0xff] }
 0x20c   : > { %v2154_v51 = vsel %vm2090_vm7, %v1936_v49, %v2122_v8  ;;  %4426 = vmatprep.subr.bf16.mxu1 %v8529_v43  ;;  %v2533_v8 = vrot.slane %v2255_v52, 2  ;;  %v2237_v52 = vld [vmem:[%s8373_s3 + $0x98] sm:$0xff]  ;;  %v4436_v22 = vpack.c.bf16 %v2239_v29, %v2238_v35  ;;  %v2247_v35 = vld [vmem:[%s8373_s3 + $0xe8] sm:$0xff] }
 0x20d   : > { %2187 = vst.msk [vmem:[#allocation3 + $0x21] sm:$0xff] %vm225_vm0, %v2154_v51 }
 0x20e   : > { %v1715_v16 = vpop.f32.mrb[4].mxu0 }
 0x20f   : > { %v1716_v14 = vadd.f32 %v7074_v37, %v1715_v16  ;;  %v1717_v57 = vpop.f32.mrb[5].mxu0  ;;  %4428 = vmatpush1.bf16.msra.mxu1 %v4427_v47  ;;  %v2236_v16 = vld [vmem:[%s8373_s3 + $0x90] sm:$0xff] }
 0x210   : > { %4429 = vmatprep.subr.bf16.mxu1 %v8529_v43  ;;  %v2535_v57 = vsel %vm756_vm3, %v2533_v8, %v2534_v0  ;;  %v4433_v27 = vpack.c.bf16 %v2237_v52, %v2236_v16 }
 0x211   : > { %v1941_v36 = vadd.f32 %v6840_v23, %v1716_v14  ;;  %v2235_v23 = vld [vmem:[%s8373_s3 + $0x88] sm:$0xff] }
 0x212   : > { %v4430_v38 = vpack.c.bf16 %v2235_v23, %v2234_v17  ;;  %v2240_v17 = vld [vmem:[%s8373_s3 + $0xb0] sm:$0xff]  ;;  %v2241_v23 = vld [vmem:[%s8373_s3 + $0xb8] sm:$0xff] }
 0x213   : > { %vm2091_vm8 = vcmp.ge.f32.partialorder %v1941_v36, 0.0  ;;  %v2123_v63 = vmul.f32 0.2, %v1941_v36 }
 0x214   : > { %v7140_v24 = vld [vmem:[#allocation3 + $0x20] sm:$0xff]  ;;  %v7142_v12 = vld [vmem:[#allocation3 + $0x28] sm:$0x3]  ;;  %4431 = vmatpush1.bf16.msra.mxu1 %v4430_v38 }
 0x215   : > { %v2155_v13 = vsel %vm2091_vm8, %v1941_v36, %v2123_v63  ;;  %v2539_v56 = vrot.slane %v7140_v24, 2  ;;  %v2541_v19 = vrot.slane %v7142_v12, 2  ;;  %4432 = vmatprep.subr.bf16.mxu1 %v8529_v43  ;;  %v2245_v38 = vld [vmem:[%s8373_s3 + $0xd8] sm:$0xff] }
 0x216   : > { %2188 = vst.msk [vmem:[#allocation3 + $0x31] sm:$0xff] %vm225_vm0, %v2155_v13  ;;  %v2536_v13 = vrot.slane %v7118_v25, 2 }
 0x217   : > { %v7152_v49 = vsel %vm756_vm3, %v2539_v56, %v2541_v19  ;;  %v7155_v30 = vsel %vm756_vm3, %v2538_v20, %v2539_v56  ;;  %v2243_v20 = vld [vmem:[%s8373_s3 + $0xc8] sm:$0xff]  ;;  %v2244_v19 = vld [vmem:[%s8373_s3 + $0xd0] sm:$0xff] }
 0x218   : > { %v4963_v42 = vpack.i.bf16 %v2361_v33, %v7152_v49  ;;  %v4958_v51 = vpack.i.bf16 %v2359_v11, %v7155_v30  ;;  %4434 = vmatpush1.bf16.msra.mxu1 %v4433_v27  ;;  %v4439_v33 = vpack.c.bf16 %v2241_v23, %v2240_v17  ;;  %v2242_v11 = vld [vmem:[%s8373_s3 + $0xc0] sm:$0xff]  ;;  %v2537_v8 = vsel %vm756_vm3, %v2534_v0, %v2536_v13 }
 0x219   : > { %4435 = vmatprep.subr.bf16.mxu1 %v8529_v43  ;;  %v4442_v56 = vpack.c.bf16 %v2243_v20, %v2242_v11  ;;  %v4445_v16 = vpack.c.bf16 %v2245_v38, %v2244_v19  ;;  %v2246_v0 = vld [vmem:[%s8373_s3 + $0xe0] sm:$0xff]  ;;  %v2363_v17 = vrot.slane %v7140_v24, 1 }
 0x21a   : > { %v1720_v55 = vpop.f32.mrb[6].mxu0  ;;  %4964 = vrot.lane.b32.xlu0 %v4963_v42, %s5511_s6  ;;  %4959 = vrot.lane.b32.xlu1 %v4958_v51, %s5511_s6  ;;  %v4448_v20 = vpack.c.bf16 %v2247_v35, %v2246_v0 }
 0x21b   : > { %v1721_v34 = vadd.f32 %v7074_v37, %v1720_v55  ;;  %v1722_v14 = vpop.f32.mrb[7].mxu0 }
 0x21c   : > { %4437 = vmatpush1.bf16.msra.mxu1 %v4436_v22 }
 0x21d   : > { %v1946_v36 = vadd.f32 %v6835_v39, %v1721_v34  ;;  %v7178_v7 = vld [vmem:[#allocation3 + $0x30] sm:$0xff]  ;;  %4438 = vmatprep.subr.bf16.mxu1 %v8529_v43 }
 0x21e   : > { %v4968_v47 = vpack.i.bf16 %v2535_v57, %v7178_v7  ;;  %v2543_v55 = vrot.slane %v7178_v7, 2  ;;  %v2367_v22 = vrot.slane %v7178_v7, 1 }
 0x21f   : > { %vm2092_vm9 = vcmp.ge.f32.partialorder %v1946_v36, 0.0  ;;  %v2124_v63 = vmul.f32 0.2, %v1946_v36 }
 0x220   : > { %4969 = vrot.lane.b32.xlu0 %v4968_v47, %s5512_s9  ;;  %4440 = vmatpush1.bf16.msra.mxu1 %v4439_v33 }
 0x221   : > { %v2156_v39 = vsel %vm2092_vm9, %v1946_v36, %v2124_v63  ;;  %4441 = vmatprep.subr.bf16.mxu1 %v8529_v43 }
 0x222   : > { %2189 = vst.msk [vmem:[#allocation3 + $0x39] sm:$0xff] %vm225_vm0, %v2156_v39 }
 0x224   : > { %4443 = vmatpush1.bf16.msra.mxu1 %v4442_v56 }
 0x225   : > { %4444 = vmatprep.subr.bf16.mxu1 %v8529_v43 }
 0x228   : > { %4446 = vmatpush1.bf16.msra.mxu1 %v4445_v16 }
 0x229   : > { %v1725_v42 = vpop.f32.mrb[8].mxu0  ;;  %v7206_v51 = vld [vmem:[#allocation3 + $0x38] sm:$0xff]  ;;  %v2263_v25 = vld [vmem:[#allocation3 + $0x40] sm:$0x3]  ;;  %4447 = vmatprep.subr.bf16.mxu1 %v8529_v43 }
 0x22a   : > { %v1726_v52 = vadd.f32 %v7074_v37, %v1725_v42  ;;  %v1727_v34 = vpop.f32.mrb[9].mxu0  ;;  %v4973_v14 = vpack.i.bf16 %v2537_v8, %v7206_v51  ;;  %v2544_v57 = vrot.slane %v7206_v51, 2  ;;  %v2546_v27 = vrot.slane %v2263_v25, 2 }
 0x22b   : > { %v2368_v29 = vrot.slane %v7206_v51, 1  ;;  %v2370_v36 = vrot.slane %v2263_v25, 1  ;;  %v2362_v8 = vrot.slane %v7125_v44, 1 }
 0x22c   : > { %v1951_v47 = vadd.f32 %v6855_v18, %v1726_v52  ;;  %4974 = vrot.lane.b32.xlu1 %v4973_v14, %s5512_s9  ;;  %v7225_v23 = vsel %vm756_vm3, %v2543_v55, %v2544_v57  ;;  %v7228_v63 = vsel %vm756_vm3, %v2544_v57, %v2546_v27  ;;  %v2365_v18 = vrot.slane %v7142_v12, 1  ;;  %v2248_v12 = vld [vmem:[%s8373_s3 + $0xf0] sm:$0xff]  ;;  %v2249_v55 = vld [vmem:[%s8373_s3 + $0xf8] sm:$0xff]  ;;  %4449 = vmatpush1.bf16.msra.mxu1 %v4448_v20 }
 0x22d   : > { %v1730_v39 = vpop.f32.mrb[10].mxu0  ;;  %4301 = vmatprep.mubr.msk.f32.mxu0 %vm225_vm0, %v7225_v23  ;;  %v7233_v33 = vsel %vm579_vm2, %v2368_v29, %v2370_v36  ;;  %v7236_v11 = vsel %vm579_vm2, %v2367_v22, %v2368_v29  ;;  %4450 = vmatprep.subr.bf16.mxu1 %v8529_v43 }
 0x22e   : > { %vm2093_vm10 = vcmp.ge.f32.partialorder %v1951_v47, 0.0  ;;  %v2125_v13 = vmul.f32 0.2, %v1951_v47  ;;  %v1731_v56 = vadd.f32 %v7074_v37, %v1730_v39  ;;  %v1732_v19 = vpop.f32.mrb[11].mxu0  ;;  %4302 = vmatmul.mubr.msk.f32.vlgmr.msra.gmra.mrb[64].mxu0 %vm225_vm0, %v7228_v63  ;;  %v4983_v38 = vpack.i.bf16 %v7140_v24, %v7233_v33 }
 0x22f   : > { %v4978_v42 = vpack.i.bf16 %v7125_v44, %v7236_v11  ;;  %v7258_v24 = vsel %vm579_vm2, %v2362_v8, %v2363_v17  ;;  %v7262_v44 = vsel %vm579_vm2, %v2363_v17, %v2365_v18 }
 0x230   : > { %v2157_v25 = vsel %vm2093_vm10, %v1951_v47, %v2125_v13  ;;  %v1956_v52 = vadd.f32 %v6851_v2, %v1731_v56  ;;  %4984 = vrot.lane.b32.xlu0 %v4983_v38, %s5513_s10  ;;  %v4993_v14 = vpack.i.bf16 %v7262_v44, %v7228_v63  ;;  %v4451_v2 = vpack.c.bf16 %v2249_v55, %v2248_v12 }
 0x231   : > { %2190 = vst.msk [vmem:[#allocation3 + $0x49] sm:$0xff] %vm225_vm0, %v2157_v25  ;;  %4979 = vrot.lane.b32.xlu1 %v4978_v42, %s5513_s10  ;;  %v4988_v57 = vpack.i.bf16 %v7258_v24, %v7225_v23 }
 0x232   : > { %vm2094_vm11 = vcmp.ge.f32.partialorder %v1956_v52, 0.0  ;;  %v2126_v16 = vmul.f32 0.2, %v1956_v52  ;;  %v1735_v34 = vpop.f32.mrb[12].mxu0  ;;  %4452 = vmatpush1.bf16.msra.mxu1 %v4451_v2 }
 0x233   : > { %v1736_v27 = vadd.f32 %v7074_v37, %v1735_v34  ;;  %v1737_v0 = vpop.f32.mrb[13].mxu0  ;;  %v7271_v29 = vpop.f32.mrb[30].mxu1  ;;  %4461 = vmatprep.subr.bf16.mxu1 %v6909_v4 }
 0x234   : > { %v2158_v35 = vsel %vm2094_vm11, %v1956_v52, %v2126_v16  ;;  %4994 = vrot.lane.b32.xlu0 %v4993_v14, %s5511_s6  ;;  %v7276_v22 = vpop.f32.mrb[31].mxu1 }
 0x235   : > { %2191 = vst.msk [vmem:[#allocation3 + $0x51] sm:$0xff] %vm225_vm0, %v2158_v35  ;;  %v1961_v36 = vadd.f32 %v6873_v53, %v1736_v27  ;;  %4989 = vrot.lane.b32.xlu1 %v4988_v57, %s5511_s6 }
 0x237   : > { %vm2095_vm12 = vcmp.ge.f32.partialorder %v1961_v36, 0.0  ;;  %v2127_v47 = vmul.f32 0.2, %v1961_v36 }
 0x238   : > { %v7279_v17 = vld [vmem:[#allocation3 + $0x48] sm:$0xff] }
 0x239   : > { %v2159_v43 = vsel %vm2095_vm12, %v1961_v36, %v2127_v47  ;;  %v4998_v39 = vpack.i.bf16 %v7155_v30, %v7279_v17  ;;  %v2548_v56 = vrot.slane %v7279_v17, 2  ;;  %v2372_v25 = vrot.slane %v7279_v17, 1 }
 0x23a   : > { %2192 = vst.msk [vmem:[#allocation3 + $0x61] sm:$0xff] %vm225_vm0, %v2159_v43  ;;  %v1740_v18 = vpop.f32.mrb[14].mxu0 }
 0x23b   : > { %v1741_v53 = vadd.f32 %v7074_v37, %v1740_v18  ;;  %v1742_v20 = vpop.f32.mrb[15].mxu0  ;;  %4999 = vrot.lane.b32.xlu0 %v4998_v39, %s5512_s9 }
 0x23c   : > { %v7286_v13 = vld [vmem:[#allocation3 + $0x50] sm:$0xff]  ;;  %v2266_v19 = vld [vmem:[#allocation3 + $0x58] sm:$0x3] }
 0x23d   : > { %v1966_v38 = vadd.f32 %v6869_v31, %v1741_v53  ;;  %v5003_v8 = vpack.i.bf16 %v7152_v49, %v7286_v13  ;;  %v2549_v30 = vrot.slane %v7286_v13, 2  ;;  %v2375_v42 = vrot.slane %v2266_v19, 1 }
 0x23e   : > { %v2551_v12 = vrot.slane %v2266_v19, 2  ;;  %v2373_v55 = vrot.slane %v7286_v13, 1 }
 0x23f   : > { %vm2096_vm13 = vcmp.ge.f32.partialorder %v1966_v38, 0.0  ;;  %v2128_v52 = vmul.f32 0.2, %v1966_v38  ;;  %5004 = vrot.lane.b32.xlu1 %v5003_v8, %s5512_s9  ;;  %v7297_v16 = vsel %vm756_vm3, %v2548_v56, %v2549_v30 }
 0x240   : > { %4304 = vmatprep.mubr.msk.f32.mxu0 %vm225_vm0, %v7297_v16  ;;  %v7302_v31 = vsel %vm756_vm3, %v2549_v30, %v2551_v12  ;;  %v7305_v49 = vsel %vm579_vm2, %v2373_v55, %v2375_v42  ;;  %v7308_v34 = vsel %vm579_vm2, %v2372_v25, %v2373_v55  ;;  %v5018_v47 = vpack.i.bf16 %v7236_v11, %v7297_v16 }
 0x241   : > { %v2160_v14 = vsel %vm2096_vm13, %v1966_v38, %v2128_v52  ;;  %v1745_v2 = vpop.f32.mrb[16].mxu0  ;;  %4305 = vmatmul.mubr.msk.f32.gmra.mrb[66].mxu0 %vm225_vm0, %v7302_v31  ;;  %v5013_v57 = vpack.i.bf16 %v7206_v51, %v7305_v49  ;;  %v5008_v27 = vpack.i.bf16 %v7178_v7, %v7308_v34  ;;  %v5023_v51 = vpack.i.bf16 %v7233_v33, %v7302_v31  ;;  %v7326_v53 = vld [vmem:[#allocation3 + $0x60] sm:$0xff] }
 0x242   : > { %2193 = vst.msk [vmem:[#allocation3 + $0x69] sm:$0xff] %vm225_vm0, %v2160_v14  ;;  %v1746_v0 = vadd.f32 %v7074_v37, %v1745_v2  ;;  %v1747_v35 = vpop.f32.mrb[17].mxu0  ;;  %v5028_v56 = vpack.i.bf16 %v7225_v23, %v7326_v53  ;;  %v2553_v38 = vrot.slane %v7326_v53, 2 }
 0x243   : > { %5014 = vrot.lane.b32.xlu0 %v5013_v57, %s5513_s10  ;;  %5009 = vrot.lane.b32.xlu1 %v5008_v27, %s5513_s10  ;;  %v2377_v27 = vrot.slane %v7326_v53, 1 }
 0x244   : > { %v1971_v36 = vadd.f32 %v6892_v21, %v1746_v0 }
 0x245   : > { %v1750_v43 = vpop.f32.mrb[18].mxu0 }
 0x246   : > { %vm2097_vm14 = vcmp.ge.f32.partialorder %v1971_v36, 0.0  ;;  %v2129_v7 = vmul.f32 0.2, %v1971_v36  ;;  %v1751_v39 = vadd.f32 %v7074_v37, %v1750_v43  ;;  %v1752_v18 = vpop.f32.mrb[19].mxu0 }
 0x247   : > { %5024 = vrot.lane.b32.xlu0 %v5023_v51, %s5511_s6  ;;  %5019 = vrot.lane.b32.xlu1 %v5018_v47, %s5511_s6 }
 0x248   : > { %v2161_v20 = vsel %vm2097_vm14, %v1971_v36, %v2129_v7  ;;  %v1976_v21 = vadd.f32 %v6886_v1, %v1751_v39 }
 0x249   : > { %2194 = vst.msk [vmem:[#allocation3 + $0x79] sm:$0xff] %vm225_vm0, %v2161_v20  ;;  %v7334_v19 = vld [vmem:[#allocation3 + $0x68] sm:$0xff]  ;;  %v2269_v8 = vld [vmem:[#allocation3 + $0x70] sm:$0x3] }
 0x24a   : > { %vm2098_vm15 = vcmp.ge.f32.partialorder %v1976_v21, 0.0  ;;  %v2130_v30 = vmul.f32 0.2, %v1976_v21  ;;  %v1755_v42 = vpop.f32.mrb[20].mxu0  ;;  %v5033_v12 = vpack.i.bf16 %v7228_v63, %v7334_v19  ;;  %v2554_v55 = vrot.slane %v7334_v19, 2 }
 0x24b   : > { %v1756_v1 = vadd.f32 %v7074_v37, %v1755_v42  ;;  %5029 = vrot.lane.b32.xlu0 %v5028_v56, %s5512_s9  ;;  %v1757_v25 = vpop.f32.mrb[21].mxu0  ;;  %v2380_v52 = vrot.slane %v2269_v8, 1  ;;  %v2556_v23 = vrot.slane %v2269_v8, 2  ;;  %v2378_v14 = vrot.slane %v7334_v19, 1 }
 0x24c   : > { %v2162_v2 = vsel %vm2098_vm15, %v1976_v21, %v2130_v30  ;;  %5034 = vrot.lane.b32.xlu1 %v5033_v12, %s5512_s9  ;;  %v7345_v57 = vsel %vm756_vm3, %v2553_v38, %v2554_v55 }
 0x24d   : > { %2195 = vst.msk [vmem:[#allocation3 + $0x81] sm:$0xff] %vm225_vm0, %v2162_v2  ;;  %v1981_v63 = vadd.f32 %v6917_v61, %v1756_v1  ;;  %4307 = vmatprep.mubr.msk.f32.mxu0 %vm225_vm0, %v7345_v57  ;;  %v7353_v0 = vsel %vm756_vm3, %v2554_v55, %v2556_v23  ;;  %v7356_v35 = vsel %vm579_vm2, %v2378_v14, %v2380_v52 }
 0x24e   : > { %v1760_v36 = vpop.f32.mrb[22].mxu0  ;;  %4308 = vmatmul.mubr.msk.f32.gmra.mrb[68].mxu0 %vm225_vm0, %v7353_v0  ;;  %v5043_v47 = vpack.i.bf16 %v7286_v13, %v7356_v35  ;;  %v7363_v51 = vsel %vm579_vm2, %v2377_v27, %v2378_v14  ;;  %v5053_v13 = vpack.i.bf16 %v7305_v49, %v7353_v0  ;;  %v5048_v56 = vpack.i.bf16 %v7308_v34, %v7345_v57 }
 0x24f   : > { %vm2099_vm1 = vcmp.ge.f32.partialorder %v1981_v63, 0.0  ;;  %v2131_v61 = vmul.f32 0.2, %v1981_v63  ;;  %v1761_v43 = vadd.f32 %v7074_v37, %v1760_v36  ;;  %v1762_v7 = vpop.f32.mrb[23].mxu0  ;;  %v5038_v39 = vpack.i.bf16 %v7279_v17, %v7363_v51 }
 0x250   : > { %5044 = vrot.lane.b32.xlu0 %v5043_v47, %s5513_s10  ;;  %v7371_v21 = vld [vmem:[#allocation3 + $0x78] sm:$0xff] }
 0x251   : > { %v2163_v18 = vsel %vm2099_vm1, %v1981_v63, %v2131_v61  ;;  %v1986_v20 = vadd.f32 %v6911_v54, %v1761_v43  ;;  %5039 = vrot.lane.b32.xlu1 %v5038_v39, %s5513_s10  ;;  %v2558_v54 = vrot.slane %v7371_v21, 2  ;;  %v5058_v23 = vpack.i.bf16 %v7297_v16, %v7371_v21 }
 0x252   : > { %2196 = vst.msk [vmem:[#allocation3 + $0x91] sm:$0xff] %vm225_vm0, %v2163_v18  ;;  %v2382_v63 = vrot.slane %v7371_v21, 1 }
 0x253   : > { %vm2100_vm6 = vcmp.ge.f32.partialorder %v1986_v20, 0.0  ;;  %v2132_v38 = vmul.f32 0.2, %v1986_v20 }
 0x254   : > { %5054 = vrot.lane.b32.xlu0 %v5053_v13, %s5511_s6  ;;  %v7379_v17 = vld [vmem:[#allocation3 + $0x80] sm:$0xff]  ;;  %v2272_v8 = vld [vmem:[#allocation3 + $0x88] sm:$0x3] }
 0x255   : > { %v2164_v30 = vsel %vm2100_vm6, %v1986_v20, %v2132_v38  ;;  %5049 = vrot.lane.b32.xlu1 %v5048_v56, %s5511_s6  ;;  %v1765_v42 = vpop.f32.mrb[24].mxu0  ;;  %v2559_v12 = vrot.slane %v7379_v17, 2  ;;  %v5063_v55 = vpack.i.bf16 %v7302_v31, %v7379_v17  ;;  %v2385_v1 = vrot.slane %v2272_v8, 1 }
 0x256   : > { %2197 = vst.msk [vmem:[#allocation3 + $0x99] sm:$0xff] %vm225_vm0, %v2164_v30  ;;  %v1766_v25 = vadd.f32 %v7074_v37, %v1765_v42  ;;  %v1767_v52 = vpop.f32.mrb[25].mxu0  ;;  %v2561_v14 = vrot.slane %v2272_v8, 2  ;;  %v2383_v2 = vrot.slane %v7379_v17, 1 }
 0x257   : > { %v7392_v27 = vsel %vm756_vm3, %v2558_v54, %v2559_v12 }
 0x258   : > { %v1991_v36 = vadd.f32 %v6939_v40, %v1766_v25  ;;  %5059 = vrot.lane.b32.xlu0 %v5058_v23, %s5512_s9  ;;  %4310 = vmatprep.mubr.msk.f32.mxu0 %vm225_vm0, %v7392_v27  ;;  %v7400_v31 = vsel %vm756_vm3, %v2559_v12, %v2561_v14  ;;  %v7406_v47 = vsel %vm579_vm2, %v2383_v2, %v2385_v1 }
 0x259   : > { %5064 = vrot.lane.b32.xlu1 %v5063_v55, %s5512_s9  ;;  %v1770_v16 = vpop.f32.mrb[26].mxu0  ;;  %4311 = vmatmul.mubr.msk.f32.gmra.mrb[70].mxu0 %vm225_vm0, %v7400_v31  ;;  %v7409_v61 = vsel %vm579_vm2, %v2382_v63, %v2383_v2  ;;  %v7412_v39 = vld [vmem:[#allocation3 + $0x90] sm:$0xff]  ;;  %v5073_v18 = vpack.i.bf16 %v7334_v19, %v7406_v47 }
 0x25a   : > { %vm2101_vm7 = vcmp.ge.f32.partialorder %v1991_v36, 0.0  ;;  %v2133_v40 = vmul.f32 0.2, %v1991_v36  ;;  %v1771_v43 = vadd.f32 %v7074_v37, %v1770_v16  ;;  %v1772_v7 = vpop.f32.mrb[27].mxu0  ;;  %v5068_v20 = vpack.i.bf16 %v7326_v53, %v7409_v61 }
 0x25b   : > { %v2563_v19 = vrot.slane %v7412_v39, 2  ;;  %v5078_v53 = vpack.i.bf16 %v7363_v51, %v7392_v27 }
 0x25c   : > { %v2165_v13 = vsel %vm2101_vm7, %v1991_v36, %v2133_v40  ;;  %v1996_v56 = vadd.f32 %v6935_v58, %v1771_v43  ;;  %5074 = vrot.lane.b32.xlu0 %v5073_v18, %s5513_s10  ;;  %v5083_v58 = vpack.i.bf16 %v7356_v35, %v7400_v31  ;;  %v5088_v36 = vpack.i.bf16 %v7345_v57, %v7412_v39 }
 0x25d   : > { %v7419_v38 = vld [vmem:[#allocation3 + $0x98] sm:$0xff]  ;;  %2198 = vst.msk [vmem:[#allocation3 + $0xa9] sm:$0xff] %vm225_vm0, %v2165_v13  ;;  %5069 = vrot.lane.b32.xlu1 %v5068_v20, %s5513_s10  ;;  %v2275_v54 = vld [vmem:[#allocation3 + $0xa0] sm:$0x3]  ;;  %v2387_v40 = vrot.slane %v7412_v39, 1 }
 0x25e   : > { %vm2102_vm8 = vcmp.ge.f32.partialorder %v1996_v56, 0.0  ;;  %v2134_v8 = vmul.f32 0.2, %v1996_v56  ;;  %v1775_v30 = vpop.f32.mrb[28].mxu0  ;;  %v2564_v42 = vrot.slane %v7419_v38, 2  ;;  %v2566_v1 = vrot.slane %v2275_v54, 2 }
 0x25f   : > { %v1776_v12 = vadd.f32 %v7074_v37, %v1775_v30  ;;  %v1777_v55 = vpop.f32.mrb[29].mxu0  ;;  %v2390_v23 = vrot.slane %v2275_v54, 1  ;;  %v2388_v14 = vrot.slane %v7419_v38, 1  ;;  %v5093_v43 = vpack.i.bf16 %v7353_v0, %v7419_v38 }
 0x260   : > { %v2166_v25 = vsel %vm2102_vm8, %v1996_v56, %v2134_v8  ;;  %v7432_v52 = vsel %vm756_vm3, %v2563_v19, %v2564_v42  ;;  %5084 = vrot.lane.b32.xlu0 %v5083_v58, %s5511_s6  ;;  %v7440_v63 = vsel %vm756_vm3, %v2564_v42, %v2566_v1 }
 0x261   : > { %2199 = vst.msk [vmem:[#allocation3 + $0xb1] sm:$0xff] %vm225_vm0, %v2166_v25  ;;  %v2001_v2 = vadd.f32 %v6958_v32, %v1776_v12  ;;  %5079 = vrot.lane.b32.xlu1 %v5078_v53, %s5511_s6  ;;  %4313 = vmatprep.mubr.msk.f32.mxu0 %vm225_vm0, %v7432_v52  ;;  %v7453_v20 = vsel %vm579_vm2, %v2388_v14, %v2390_v23 }
 0x262   : > { %v1780_v16 = vpop.f32.mrb[30].mxu0  ;;  %4314 = vmatmul.mubr.msk.f32.gmra.mrb[72].mxu0 %vm225_vm0, %v7440_v63  ;;  %v7456_v57 = vsel %vm579_vm2, %v2387_v40, %v2388_v14  ;;  %v5103_v8 = vpack.i.bf16 %v7379_v17, %v7453_v20  ;;  %v5113_v25 = vpack.i.bf16 %v7406_v47, %v7440_v63 }
 0x263   : > { %vm2103_vm9 = vcmp.ge.f32.partialorder %v2001_v2, 0.0  ;;  %v2135_v32 = vmul.f32 0.2, %v2001_v2  ;;  %v1781_v7 = vadd.f32 %v7074_v37, %v1780_v16  ;;  %v1782_v18 = vpop.f32.mrb[31].mxu0  ;;  %v5098_v30 = vpack.i.bf16 %v7371_v21, %v7456_v57 }
 0x264   : > { %5089 = vrot.lane.b32.xlu0 %v5088_v36, %s5512_s9  ;;  %v7461_v0 = vld [vmem:[#allocation3 + $0xa8] sm:$0xff]  ;;  %v5108_v21 = vpack.i.bf16 %v7409_v61, %v7432_v52 }
 0x265   : > { %v2167_v13 = vsel %vm2103_vm9, %v2001_v2, %v2135_v32  ;;  %v2006_v56 = vadd.f32 %v6952_v28, %v1781_v7  ;;  %5094 = vrot.lane.b32.xlu1 %v5093_v43, %s5512_s9  ;;  %v2568_v58 = vrot.slane %v7461_v0, 2  ;;  %v2392_v7 = vrot.slane %v7461_v0, 1 }
 0x266   : > { %2200 = vst.msk [vmem:[#allocation3 + $0xc1] sm:$0xff] %vm225_vm0, %v2167_v13  ;;  %v5118_v18 = vpack.i.bf16 %v7392_v27, %v7461_v0 }
 0x267   : > { %vm2104_vm10 = vcmp.ge.f32.partialorder %v2006_v56, 0.0  ;;  %v2136_v54 = vmul.f32 0.2, %v2006_v56 }
 0x268   : > { %v7468_v19 = vld [vmem:[#allocation3 + $0xb0] sm:$0xff]  ;;  %v2278_v42 = vld [vmem:[#allocation3 + $0xb8] sm:$0x3]  ;;  %5104 = vrot.lane.b32.xlu0 %v5103_v8, %s5513_s10 }
 0x269   : > { %v2168_v28 = vsel %vm2104_vm10, %v2006_v56, %v2136_v54  ;;  %5099 = vrot.lane.b32.xlu1 %v5098_v30, %s5513_s10  ;;  %v1785_v53 = vpop.f32.mrb[32].mxu0  ;;  %v2569_v12 = vrot.slane %v7468_v19, 2  ;;  %v2571_v1 = vrot.slane %v2278_v42, 2  ;;  %v2395_v2 = vrot.slane %v2278_v42, 1 }
 0x26a   : > { %2201 = vst.msk [vmem:[#allocation3 + $0xc9] sm:$0xff] %vm225_vm0, %v2168_v28  ;;  %v1786_v17 = vadd.f32 %v7074_v37, %v1785_v53  ;;  %v1787_v55 = vpop.f32.mrb[33].mxu0  ;;  %v2393_v16 = vrot.slane %v7468_v19, 1  ;;  %v5123_v13 = vpack.i.bf16 %v7400_v31, %v7468_v19 }
 0x26b   : > { %v7481_v23 = vsel %vm756_vm3, %v2568_v58, %v2569_v12  ;;  %v7487_v36 = vsel %vm756_vm3, %v2569_v12, %v2571_v1 }
 0x26c   : > { %v2011_v14 = vadd.f32 %v6969_v5, %v1786_v17  ;;  %4316 = vmatprep.mubr.msk.f32.mxu0 %vm225_vm0, %v7481_v23  ;;  %5114 = vrot.lane.b32.xlu0 %v5113_v25, %s5511_s6  ;;  %v7504_v30 = vsel %vm579_vm2, %v2393_v16, %v2395_v2  ;;  %v7507_v42 = vsel %vm579_vm2, %v2392_v7, %v2393_v16 }
 0x26d   : > { %5109 = vrot.lane.b32.xlu1 %v5108_v21, %s5511_s6  ;;  %v1790_v40 = vpop.f32.mrb[34].mxu0  ;;  %4317 = vmatmul.mubr.msk.f32.gmra.mrb[74].mxu0 %vm225_vm0, %v7487_v36  ;;  %v7500_v56 = vld [vmem:[#allocation3 + $0xc0] sm:$0xff]  ;;  %v5133_v55 = vpack.i.bf16 %v7419_v38, %v7504_v30  ;;  %v5128_v1 = vpack.i.bf16 %v7412_v39, %v7507_v42  ;;  %v5138_v38 = vpack.i.bf16 %v7456_v57, %v7481_v23 }
 0x26e   : > { %vm2105_vm11 = vcmp.ge.f32.partialorder %v2011_v14, 0.0  ;;  %v2137_v43 = vmul.f32 0.2, %v2011_v14  ;;  %v1791_v32 = vadd.f32 %v7074_v37, %v1790_v40  ;;  %v1792_v5 = vpop.f32.mrb[35].mxu0  ;;  %v5143_v40 = vpack.i.bf16 %v7453_v20, %v7487_v36 }
 0x270   : > { %v2169_v54 = vsel %vm2105_vm11, %v2011_v14, %v2137_v43  ;;  %v2016_v8 = vadd.f32 %v6963_v50, %v1791_v32  ;;  %5119 = vrot.lane.b32.xlu0 %v5118_v18, %s5512_s9  ;;  %v2573_v50 = vrot.slane %v7500_v56, 2 }
 0x271   : > { %v7509_v28 = vld [vmem:[#allocation3 + $0xc8] sm:$0xff]  ;;  %2202 = vst.msk [vmem:[#allocation3 + $0xd9] sm:$0xff] %vm225_vm0, %v2169_v54  ;;  %5124 = vrot.lane.b32.xlu1 %v5123_v13, %s5512_s9  ;;  %v2281_v27 = vld [vmem:[#allocation3 + $0xd0] sm:$0x3] }
 0x272   : > { %vm2106_vm12 = vcmp.ge.f32.partialorder %v2016_v8, 0.0  ;;  %v2138_v31 = vmul.f32 0.2, %v2016_v8  ;;  %v1795_v53 = vpop.f32.mrb[36].mxu0  ;;  %v2574_v58 = vrot.slane %v7509_v28, 2  ;;  %v2576_v21 = vrot.slane %v2281_v27, 2 }
 0x273   : > { %v1796_v12 = vadd.f32 %v7074_v37, %v1795_v53  ;;  %v1797_v17 = vpop.f32.mrb[37].mxu0  ;;  %v2400_v5 = vrot.slane %v2281_v27, 1  ;;  %v2398_v7 = vrot.slane %v7509_v28, 1  ;;  %v5153_v27 = vpack.i.bf16 %v7440_v63, %v7509_v28 }
 0x274   : > { %v2170_v25 = vsel %vm2106_vm12, %v2016_v8, %v2138_v31  ;;  %v7522_v14 = vsel %vm756_vm3, %v2573_v50, %v2574_v58  ;;  %5134 = vrot.lane.b32.xlu0 %v5133_v55, %s5513_s10  ;;  %v7529_v16 = vsel %vm756_vm3, %v2574_v58, %v2576_v21  ;;  %v2397_v8 = vrot.slane %v7500_v56, 1 }
 0x275   : > { %2203 = vst.msk [vmem:[#allocation3 + $0xe1] sm:$0xff] %vm225_vm0, %v2170_v25  ;;  %v2021_v2 = vadd.f32 %v6981_v59, %v1796_v12  ;;  %5129 = vrot.lane.b32.xlu1 %v5128_v1, %s5513_s10  ;;  %4319 = vmatprep.mubr.msk.f32.mxu0 %vm225_vm0, %v7522_v14  ;;  %v5148_v31 = vpack.i.bf16 %v7432_v52, %v7500_v56 }
 0x276   : > { %v1800_v39 = vpop.f32.mrb[38].mxu0  ;;  %4320 = vmatmul.mubr.msk.f32.gmra.mrb[76].mxu0 %vm225_vm0, %v7529_v16  ;;  %v7558_v58 = vsel %vm579_vm2, %v2397_v8, %v2398_v7 }
 0x277   : > { %vm2107_vm13 = vcmp.ge.f32.partialorder %v2021_v2, 0.0  ;;  %v2139_v43 = vmul.f32 0.2, %v2021_v2  ;;  %v1801_v59 = vadd.f32 %v7074_v37, %v1800_v39  ;;  %v1802_v32 = vpop.f32.mrb[39].mxu0  ;;  %v5158_v39 = vpack.i.bf16 %v7461_v0, %v7558_v58 }
 0x278   : > { %5144 = vrot.lane.b32.xlu0 %v5143_v40, %s5511_s6  ;;  %v7544_v54 = vld [vmem:[#allocation3 + $0xd8] sm:$0xff] }
 0x279   : > { %v2171_v18 = vsel %vm2107_vm13, %v2021_v2, %v2139_v43  ;;  %v2026_v13 = vadd.f32 %v6975_v26, %v1801_v59  ;;  %5139 = vrot.lane.b32.xlu1 %v5138_v38, %s5511_s6  ;;  %v7555_v26 = vsel %vm579_vm2, %v2398_v7, %v2400_v5  ;;  %v2578_v55 = vrot.slane %v7544_v54, 2 }
 0x27a   : > { %2204 = vst.msk [vmem:[#allocation3 + $0xf1] sm:$0xff] %vm225_vm0, %v2171_v18  ;;  %v5163_v2 = vpack.i.bf16 %v7468_v19, %v7555_v26  ;;  %v5168_v5 = vpack.i.bf16 %v7507_v42, %v7522_v14  ;;  %v5173_v7 = vpack.i.bf16 %v7504_v30, %v7529_v16 }
 0x27b   : > { %vm2108_vm14 = vcmp.ge.f32.partialorder %v2026_v13, 0.0  ;;  %v2140_v53 = vmul.f32 0.2, %v2026_v13 }
 0x27c   : > { %v7552_v50 = vld [vmem:[#allocation3 + $0xe0] sm:$0xff]  ;;  %v2284_v12 = vld [vmem:[#allocation3 + $0xe8] sm:$0x3]  ;;  %5149 = vrot.lane.b32.xlu0 %v5148_v31, %s5512_s9 }
 0x27d   : > { %v2172_v17 = vsel %vm2108_vm14, %v2026_v13, %v2140_v53  ;;  %5154 = vrot.lane.b32.xlu1 %v5153_v27, %s5512_s9  ;;  %v1805_v52 = vpop.f32.mrb[40].mxu0  ;;  %v2579_v63 = vrot.slane %v7552_v50, 2  ;;  %v2581_v25 = vrot.slane %v2284_v12, 2  ;;  %v2403_v18 = vrot.slane %v7552_v50, 1 }
 0x27e   : > { %2205 = vst.msk [vmem:[#allocation3 + $0xf9] sm:$0xff] %vm225_vm0, %v2172_v17  ;;  %v1806_v1 = vadd.f32 %v7074_v37, %v1805_v52  ;;  %v1807_v21 = vpop.f32.mrb[41].mxu0  ;;  %v2405_v31 = vrot.slane %v2284_v12, 1  ;;  %v5178_v27 = vpack.i.bf16 %v7481_v23, %v7544_v54  ;;  %v2402_v17 = vrot.slane %v7544_v54, 1 }
 0x27f   : > { %v7569_v38 = vsel %vm756_vm3, %v2578_v55, %v2579_v63  ;;  %v7577_v43 = vsel %vm756_vm3, %v2579_v63, %v2581_v25  ;;  %v5183_v23 = vpack.i.bf16 %v7487_v36, %v7552_v50 }
 0x280   : > { %v2031_v40 = vadd.f32 %v6992_v3, %v1806_v1  ;;  %4322 = vmatprep.mubr.msk.f32.mxu0 %vm225_vm0, %v7569_v38  ;;  %5164 = vrot.lane.b32.xlu0 %v5163_v2, %s5513_s10  ;;  %v7606_v25 = vsel %vm579_vm2, %v2402_v17, %v2403_v18 }
 0x281   : > { %5159 = vrot.lane.b32.xlu1 %v5158_v39, %s5513_s10  ;;  %v1810_v59 = vpop.f32.mrb[42].mxu0  ;;  %4323 = vmatmul.mubr.msk.f32.gmra.mrb[78].mxu0 %vm225_vm0, %v7577_v43  ;;  %v7584_v3 = vld [vmem:[#allocation3 + $0xf0] sm:$0xff] }
 0x282   : > { %vm2109_vm15 = vcmp.ge.f32.partialorder %v2031_v40, 0.0  ;;  %v2141_v19 = vmul.f32 0.2, %v2031_v40  ;;  %v1811_v32 = vadd.f32 %v7074_v37, %v1810_v59  ;;  %v1812_v0 = vpop.f32.mrb[43].mxu0  ;;  %v7612_v59 = vsel %vm579_vm2, %v2403_v18, %v2405_v31 }
 0x283   : > { %v5188_v0 = vpack.i.bf16 %v7500_v56, %v7606_v25  ;;  %v5193_v18 = vpack.i.bf16 %v7509_v28, %v7612_v59  ;;  %v5198_v56 = vpack.i.bf16 %v7558_v58, %v7569_v38 }
 0x284   : > { %v2173_v13 = vsel %vm2109_vm15, %v2031_v40, %v2141_v19  ;;  %v2036_v8 = vadd.f32 %v6988_v46, %v1811_v32  ;;  %5174 = vrot.lane.b32.xlu0 %v5173_v7, %s5511_s6  ;;  %v2583_v46 = vrot.slane %v7584_v3, 2 }
 0x285   : > { %v7594_v53 = vld [vmem:[#allocation3 + $0xf8] sm:$0xff]  ;;  %2206 = vst.msk [vmem:[#allocation3 + $0x109] sm:$0xff] %vm225_vm0, %v2173_v13  ;;  %5169 = vrot.lane.b32.xlu1 %v5168_v5, %s5511_s6  ;;  %v2287_v52 = vld [vmem:[#allocation3 + $0x100] sm:$0x3] }
 0x286   : > { %vm2110_vm1 = vcmp.ge.f32.partialorder %v2036_v8, 0.0  ;;  %v2142_v55 = vmul.f32 0.2, %v2036_v8  ;;  %v1815_v63 = vpop.f32.mrb[44].mxu0  ;;  %v2584_v12 = vrot.slane %v7594_v53, 2  ;;  %v2586_v2 = vrot.slane %v2287_v52, 2 }
 0x287   : > { %v1816_v1 = vadd.f32 %v7074_v37, %v1815_v63  ;;  %v1817_v21 = vpop.f32.mrb[45].mxu0  ;;  %v2408_v28 = vrot.slane %v7594_v53, 1 }
 0x288   : > { %v2174_v39 = vsel %vm2110_vm1, %v2036_v8, %v2142_v55  ;;  %v7609_v40 = vsel %vm756_vm3, %v2583_v46, %v2584_v12  ;;  %5179 = vrot.lane.b32.xlu0 %v5178_v27, %s5512_s9  ;;  %v7619_v36 = vsel %vm756_vm3, %v2584_v12, %v2586_v2  ;;  %v2410_v27 = vrot.slane %v2287_v52, 1  ;;  %v7645_v55 = vld [vmem:[%s8372_s2] ss:$0 sm:$0xff] }
 0x289   : > { %2207 = vst.msk [vmem:[#allocation3 + $0x111] sm:$0xff] %vm225_vm0, %v2174_v39  ;;  %v2041_v19 = vadd.f32 %v7004_v45, %v1816_v1  ;;  %5184 = vrot.lane.b32.xlu1 %v5183_v23, %s5512_s9  ;;  %4325 = vmatprep.mubr.msk.f32.mxu0 %vm225_vm0, %v7609_v40  ;;  %v2407_v52 = vrot.slane %v7584_v3, 1  ;;  %v5208_v12 = vpack.i.bf16 %v7522_v14, %v7584_v3 }
 0x28a   : > { %v1820_v32 = vpop.f32.mrb[46].mxu0  ;;  %4326 = vmatmul.mubr.msk.f32.gmra.mrb[80].mxu0 %vm225_vm0, %v7619_v36  ;;  %v5213_v23 = vpack.i.bf16 %v7529_v16, %v7594_v53  ;;  %v7655_v21 = vsel %vm579_vm2, %v2408_v28, %v2410_v27 }
 0x28b   : > { %vm2111_vm6 = vcmp.ge.f32.partialorder %v2041_v19, 0.0  ;;  %v2143_v5 = vmul.f32 0.2, %v2041_v19  ;;  %v1821_v7 = vadd.f32 %v7074_v37, %v1820_v32  ;;  %v1822_v45 = vpop.f32.mrb[47].mxu0  ;;  %v5203_v37 = vpack.i.bf16 %v7555_v26, %v7577_v43 }
 0x28c   : > { %5194 = vrot.lane.b32.xlu0 %v5193_v18, %s5513_s10  ;;  %v7658_v2 = vsel %vm579_vm2, %v2407_v52, %v2408_v28  ;;  %v5223_v16 = vpack.i.bf16 %v7552_v50, %v7655_v21  ;;  %v7670_v18 = vld [vmem:[#allocation3 + $0x108] sm:$0xff]  ;;  %v5228_v50 = vpack.i.bf16 %v7606_v25, %v7609_v40 }
 0x28d   : > { %v2175_v13 = vsel %vm2111_vm6, %v2041_v19, %v2143_v5  ;;  %v2046_v8 = vadd.f32 %v6999_v9, %v1821_v7  ;;  %5189 = vrot.lane.b32.xlu1 %v5188_v0, %s5513_s10 }
 0x28e   : > { %2208 = vst.msk [vmem:[#allocation3 + $0x121] sm:$0xff] %vm225_vm0, %v2175_v13  ;;  %v7672_v13 = vpop.permute.xlu0 %4964 }
 0x28f   : > { %vm2112_vm7 = vcmp.ge.f32.partialorder %v2046_v8, 0.0  ;;  %v2144_v31 = vmul.f32 0.2, %v2046_v8 }
 0x290   : > { %5204 = vrot.lane.b32.xlu0 %v5203_v37, %s5511_s6  ;;  %v7667_v0 = vld [vmem:[#allocation3 + $0x110] sm:$0xff]  ;;  %v2290_v45 = vld [vmem:[#allocation3 + $0x118] sm:$0x3] }
 0x291   : > { %v2176_v17 = vsel %vm2112_vm7, %v2046_v8, %v2144_v31  ;;  %5199 = vrot.lane.b32.xlu1 %v5198_v56, %s5511_s6  ;;  %v1825_v9 = vpop.f32.mrb[48].mxu0  ;;  %v2413_v27 = vrot.slane %v7667_v0, 1  ;;  %v2415_v28 = vrot.slane %v2290_v45, 1 }
 0x292   : > { %2209 = vst.msk [vmem:[#allocation3 + $0x129] sm:$0xff] %vm225_vm0, %v2176_v17  ;;  %v1826_v63 = vadd.f32 %v7645_v55, %v1825_v9  ;;  %v1827_v46 = vpop.f32.mrb[49].mxu0  ;;  %v5238_v17 = vpack.i.bf16 %v7569_v38, %v7670_v18  ;;  %v2412_v38 = vrot.slane %v7670_v18, 1 }
 0x294   : > { %v2051_v1 = vadd.f32 %v7015_v10, %v1826_v63  ;;  %5209 = vrot.lane.b32.xlu0 %v5208_v12, %s5512_s9  ;;  %v5218_v10 = vpack.i.bf16 %v7544_v54, %v7658_v2  ;;  %v4960_v54 = vpop.permute.xlu1 %4959  ;;  %v4967_v63 = vunpack.i.h.bf16 %v7672_v13  ;;  %v4970_v12 = vpop.permute.xlu0 %4969 }
 0x295   : > { %5214 = vrot.lane.b32.xlu1 %v5213_v23, %s5512_s9  ;;  %v1830_v39 = vpop.f32.mrb[50].mxu0  ;;  %v4962_v46 = vunpack.i.h.bf16 %v4960_v54  ;;  %v4961_v52 = vunpack.i.l.bf16 %v4960_v54  ;;  %v4972_v54 = vunpack.i.h.bf16 %v4970_v12 }
 0x296   : > { %vm2113_vm8 = vcmp.ge.f32.partialorder %v2051_v1, 0.0  ;;  %v2145_v19 = vmul.f32 0.2, %v2051_v1  ;;  %v1831_v14 = vadd.f32 %v7645_v55, %v1830_v39  ;;  %v1832_v32 = vpop.f32.mrb[51].mxu0 }
 0x297   : > { %v2591_v32 = vrot.slane %v2290_v45, 2 }
 0x298   : > { %v2177_v5 = vsel %vm2113_vm8, %v2051_v1, %v2145_v19  ;;  %v2056_v7 = vadd.f32 %v7010_v60, %v1831_v14  ;;  %5224 = vrot.lane.b32.xlu0 %v5223_v16, %s5513_s10  ;;  %v5233_v60 = vpack.i.bf16 %v7612_v59, %v7619_v36  ;;  %v5243_v1 = vpack.i.bf16 %v7577_v43, %v7667_v0 }
 0x299   : > { %2210 = vst.msk [vmem:[#allocation3 + $0x139] sm:$0xff] %vm225_vm0, %v2177_v5  ;;  %5219 = vrot.lane.b32.xlu1 %v5218_v10, %s5513_s10  ;;  %v2589_v14 = vrot.slane %v7667_v0, 2  ;;  %v7698_v5 = vsel %vm579_vm2, %v2413_v27, %v2415_v28  ;;  %v7702_v43 = vsel %vm579_vm2, %v2412_v38, %v2413_v27  ;;  %v3247_v27 = vsel %vm225_vm0, %v7258_v24, %v4961_v52  ;;  %v5471_v28 = vld [vmem:[#allocation3 + $0x8] sm:$0xff] }
 0x29a   : > { %vm2114_vm9 = vcmp.ge.f32.partialorder %v2056_v7, 0.0  ;;  %v2146_v8 = vmul.f32 0.2, %v2056_v7  ;;  %v1835_v56 = vpop.f32.mrb[52].mxu0  ;;  %v7724_v24 = vld [vmem:[#allocation3 + $0x128] sm:$0xff] }
 0x29b   : > { %v1836_v37 = vadd.f32 %v7645_v55, %v1835_v56  ;;  %v1837_v31 = vpop.f32.mrb[53].mxu0 }
 0x29c   : > { %v2178_v9 = vsel %vm2114_vm9, %v2056_v7, %v2146_v8  ;;  %5234 = vrot.lane.b32.xlu0 %v5233_v60, %s5511_s6  ;;  %v4966_v7 = vunpack.i.l.bf16 %v7672_v13  ;;  %v4971_v8 = vunpack.i.l.bf16 %v4970_v12  ;;  %v5470_v60 = vld [vmem:[#allocation3] sm:$0xff]  ;;  %v5253_v31 = vpack.i.bf16 %v7594_v53, %v7698_v5 }
 0x29d   : > { %2211 = vst.msk [vmem:[#allocation3 + $0x141] sm:$0xff] %vm225_vm0, %v2178_v9  ;;  %v2061_v23 = vadd.f32 %v7023_v48, %v1836_v37  ;;  %5229 = vrot.lane.b32.xlu1 %v5228_v50, %s5511_s6  ;;  %v2588_v50 = vrot.slane %v7670_v18, 2  ;;  %v3151_v37 = vsel %vm225_vm0, %v5470_v60, %v4962_v46  ;;  %v3152_v9 = vsel %vm225_vm0, %v5471_v28, %v4967_v63 }
 0x29e   : > { %v1840_v39 = vpop.f32.mrb[54].mxu0  ;;  %v7692_v19 = vpop.permute.xlu1 %4974  ;;  %v5248_v12 = vpack.i.bf16 %v7584_v3, %v7702_v43  ;;  %v7718_v46 = vsel %vm756_vm3, %v2589_v14, %v2591_v32  ;;  %v3183_v63 = vsel %vm1407_vm4, %v3151_v37, %v4972_v54  ;;  %v3279_v32 = vsel %vm1407_vm4, %v3247_v27, %v4971_v8 }
 0x29f   : > { %vm2115_vm10 = vcmp.ge.f32.partialorder %v2061_v23, 0.0  ;;  %v2147_v16 = vmul.f32 0.2, %v2061_v23  ;;  %v1841_v10 = vadd.f32 %v7645_v55, %v1840_v39  ;;  %v1842_v48 = vpop.f32.mrb[55].mxu0  ;;  %v7722_v53 = vsel %vm756_vm3, %v2588_v50, %v2589_v14 }
 0x2a0   : > { %5239 = vrot.lane.b32.xlu0 %v5238_v17, %s5512_s9  ;;  %v4977_v14 = vunpack.i.h.bf16 %v7692_v19  ;;  %v5263_v60 = vpack.i.bf16 %v7655_v21, %v7718_v46  ;;  %v5258_v8 = vpack.i.bf16 %v7658_v2, %v7722_v53  ;;  %v3248_v37 = vsel %vm225_vm0, %v7262_v44, %v4966_v7 }
 0x2a1   : > { %v2179_v56 = vsel %vm2115_vm10, %v2061_v23, %v2147_v16  ;;  %v2066_v45 = vadd.f32 %v7019_v62, %v1841_v10  ;;  %5244 = vrot.lane.b32.xlu1 %v5243_v1, %s5512_s9  ;;  %v4976_v23 = vunpack.i.l.bf16 %v7692_v19  ;;  %v2293_v16 = vld [vmem:[#allocation3 + $0x130] sm:$0x3]  ;;  %v7730_v10 = vld [vmem:[#allocation3 + $0x120] sm:$0xff]  ;;  %v2418_v27 = vrot.slane %v7724_v24, 1 }
 0x2a2   : > { %2212 = vst.msk [vmem:[#allocation3 + $0x151] sm:$0xff] %vm225_vm0, %v2179_v56  ;;  %v4985_v13 = vpop.permute.xlu0 %4984  ;;  %v2420_v28 = vrot.slane %v2293_v16, 1  ;;  %v2596_v44 = vrot.slane %v2293_v16, 2 }
 0x2a3   : > { %vm2116_vm11 = vcmp.ge.f32.partialorder %v2066_v45, 0.0  ;;  %v2148_v62 = vmul.f32 0.2, %v2066_v45  ;;  %v4980_v17 = vpop.permute.xlu1 %4979  ;;  %v4986_v38 = vunpack.i.l.bf16 %v4985_v13 }
 0x2a4   : > { %v4982_v1 = vunpack.i.h.bf16 %v4980_v17  ;;  %v4981_v39 = vunpack.i.l.bf16 %v4980_v17  ;;  %5254 = vrot.lane.b32.xlu0 %v5253_v31, %s5513_s10  ;;  %v3280_v31 = vsel %vm1407_vm4, %v3248_v37, %v4976_v23  ;;  %v2417_v17 = vrot.slane %v7730_v10, 1 }
 0x2a5   : > { %v2180_v52 = vsel %vm2116_vm11, %v2066_v45, %v2148_v62  ;;  %5249 = vrot.lane.b32.xlu1 %v5248_v12, %s5513_s10  ;;  %v1845_v3 = vpop.f32.mrb[56].mxu0  ;;  %v4987_v45 = vunpack.i.h.bf16 %v4985_v13  ;;  %v3312_v13 = vsel %vm1440_vm5, %v3280_v31, %v4986_v38  ;;  %v2594_v12 = vrot.slane %v7724_v24, 2 }
 0x2a6   : > { %2213 = vst.msk [vmem:[#allocation3 + $0x159] sm:$0xff] %vm225_vm0, %v2180_v52  ;;  %v1846_v48 = vadd.f32 %v7645_v55, %v1845_v3  ;;  %v1847_v50 = vpop.f32.mrb[57].mxu0  ;;  %v3311_v54 = vsel %vm1440_vm5, %v3279_v32, %v4981_v39  ;;  %v3215_v56 = vsel %vm1440_vm5, %v3183_v63, %v4982_v1  ;;  %v3184_v1 = vsel %vm1407_vm4, %v3152_v9, %v4977_v14  ;;  %v7758_v52 = vpop.permute.xlu0 %4994  ;;  %v7773_v9 = vld [vmem:[#allocation3 + $0x140] sm:$0xff]  ;;  %v7775_v14 = vld [vmem:[#allocation3 + $0x148] sm:$0x3] }
 0x2a7   : > { %3477 = vmatprep.mubr.f32.mxu1 %v3311_v54  ;;  %v5268_v39 = vpack.i.bf16 %v7609_v40, %v7730_v10  ;;  %v5273_v63 = vpack.i.bf16 %v7619_v36, %v7724_v24  ;;  %v3216_v38 = vsel %vm1440_vm5, %v3184_v1, %v4987_v45  ;;  %v2593_v3 = vrot.slane %v7730_v10, 2  ;;  %v4990_v36 = vpop.permute.xlu1 %4989 }
 0x2a8   : > { %v2071_v19 = vadd.f32 %v7035_v15, %v1846_v48  ;;  %3478 = vmatmul.mubr.f32.vlgmr.msra.gmra.mrb[32].mxu1 %v3215_v56  ;;  %5264 = vrot.lane.b32.xlu0 %v5263_v60, %s5511_s6  ;;  %v7768_v40 = vsel %vm579_vm2, %v2417_v17, %v2418_v27  ;;  %v7778_v50 = vsel %vm756_vm3, %v2594_v12, %v2596_v44  ;;  %v4991_v31 = vunpack.i.l.bf16 %v4990_v36 }
 0x2a9   : > { %5259 = vrot.lane.b32.xlu1 %v5258_v8, %s5511_s6  ;;  %v1850_v62 = vpop.f32.mrb[58].mxu0  ;;  %3482 = vmatprep.mubr.f32.mxu1 %v3312_v13  ;;  %v7781_v54 = vsel %vm756_vm3, %v2593_v3, %v2594_v12  ;;  %v5278_v37 = vpack.i.bf16 %v7670_v18, %v7768_v40  ;;  %v2425_v13 = vrot.slane %v7775_v14, 1  ;;  %v5293_v18 = vpack.i.bf16 %v7698_v5, %v7778_v50 }
 0x2aa   : > { %vm2117_vm12 = vcmp.ge.f32.partialorder %v2071_v19, 0.0  ;;  %v2149_v15 = vmul.f32 0.2, %v2071_v19  ;;  %v1851_v7 = vadd.f32 %v7645_v55, %v1850_v62  ;;  %v1852_v23 = vpop.f32.mrb[59].mxu0  ;;  %4463 = vmatpush3.bf16.msra.mxu1 %v6909_v4  ;;  %v7765_v4 = vsel %vm579_vm2, %v2418_v27, %v2420_v28 }
 0x2ab   : > { %4462 = vmatprep.subr.bf16.mxu1 %v6947_v6  ;;  %v5283_v8 = vpack.i.bf16 %v7667_v0, %v7765_v4  ;;  %v2423_v28 = vrot.slane %v7773_v9, 1  ;;  %v4992_v62 = vunpack.i.h.bf16 %v4990_v36  ;;  %v5288_v17 = vpack.i.bf16 %v7702_v43, %v7781_v54 }
 0x2ac   : > { %v2181_v32 = vsel %vm2117_vm12, %v2071_v19, %v2149_v15  ;;  %v2076_v16 = vadd.f32 %v7033_v41, %v1851_v7  ;;  %3483 = vmatmul.mubr.f32.gmra.mrb[34].mxu1 %v3216_v38  ;;  %5269 = vrot.lane.b32.xlu0 %v5268_v39, %s5512_s9  ;;  %v7789_v19 = vld [vmem:[#allocation3 + $0x138] sm:$0xff]  ;;  %v5303_v7 = vpack.i.bf16 %v7718_v46, %v7773_v9  ;;  %v4997_v38 = vunpack.i.h.bf16 %v7758_v52 }
 0x2ad   : > { %2214 = vst.msk [vmem:[#allocation3 + $0x169] sm:$0xff] %vm225_vm0, %v2181_v32  ;;  %5274 = vrot.lane.b32.xlu1 %v5273_v63, %s5512_s9  ;;  %v5000_v56 = vpop.permute.xlu0 %4999  ;;  %v5298_v15 = vpack.i.bf16 %v7722_v53, %v7789_v19  ;;  %v3249_v3 = vsel %vm225_vm0, %v7236_v11, %v4991_v31  ;;  %v7813_v32 = vsel %vm579_vm2, %v2423_v28, %v2425_v13  ;;  %v4996_v36 = vunpack.i.l.bf16 %v7758_v52 }
 0x2ae   : > { %vm2118_vm13 = vcmp.ge.f32.partialorder %v2076_v16, 0.0  ;;  %v2150_v41 = vmul.f32 0.2, %v2076_v16  ;;  %v1855_v48 = vpop.f32.mrb[60].mxu0  ;;  %4464 = vmatpush3.bf16.msra.mxu1 %v6947_v6  ;;  %v5001_v12 = vunpack.i.l.bf16 %v5000_v56  ;;  %v5002_v23 = vunpack.i.h.bf16 %v5000_v56 }
 0x2af   : > { %v1856_v45 = vadd.f32 %v7645_v55, %v1855_v48  ;;  %v1857_v60 = vpop.f32.mrb[61].mxu0 }
 0x2b0   : > { %v2182_v27 = vsel %vm2118_vm13, %v2076_v16, %v2150_v41  ;;  %5284 = vrot.lane.b32.xlu0 %v5283_v8, %s5513_s10  ;;  %v3281_v52 = vsel %vm1407_vm4, %v3249_v3, %v5001_v12 }
 0x2b1   : > { %2215 = vst.msk [vmem:[#allocation3 + $0x171] sm:$0xff] %vm225_vm0, %v2182_v27  ;;  %v2081_v6 = vadd.f32 %v7276_v22, %v1856_v45  ;;  %5279 = vrot.lane.b32.xlu1 %v5278_v37, %s5513_s10  ;;  %v7797_v0 = vpop.permute.xlu1 %5004  ;;  %v2422_v22 = vrot.slane %v7789_v19, 1  ;;  %v5472_v45 = vld [vmem:[#allocation3 + $0x18] sm:$0xff] }
 0x2b2   : > { %v1860_v44 = vpop.f32.mrb[62].mxu0  ;;  %v3153_v11 = vsel %vm225_vm0, %v5472_v45, %v4992_v62  ;;  %v5006_v60 = vunpack.i.l.bf16 %v7797_v0  ;;  %v2601_v62 = vrot.slane %v7775_v14, 2  ;;  %v2598_v14 = vrot.slane %v7789_v19, 2 }
 0x2b3   : > { %vm2119_vm14 = vcmp.ge.f32.partialorder %v2081_v6, 0.0  ;;  %v2151_v1 = vmul.f32 0.2, %v2081_v6  ;;  %v1861_v39 = vadd.f32 %v7645_v55, %v1860_v44  ;;  %v1862_v63 = vpop.f32.mrb[63].mxu0  ;;  %v7816_v16 = vsel %vm579_vm2, %v2422_v22, %v2423_v28 }
 0x2b4   : > { %5294 = vrot.lane.b32.xlu0 %v5293_v18, %s5511_s6  ;;  %v3185_v27 = vsel %vm1407_vm4, %v3153_v11, %v5002_v23  ;;  %v5007_v18 = vunpack.i.h.bf16 %v7797_v0  ;;  %v3250_v22 = vsel %vm225_vm0, %v7233_v33, %v4996_v36  ;;  %v5313_v0 = vpack.i.bf16 %v7724_v24, %v7813_v32  ;;  %v5473_v33 = vld [vmem:[#allocation3 + $0x20] sm:$0xff] }
 0x2b5   : > { %v2183_v41 = vsel %vm2119_vm14, %v2081_v6, %v2151_v1  ;;  %v2086_v48 = vadd.f32 %v7271_v29, %v1861_v39  ;;  %v5015_v55 = vpop.permute.xlu0 %5014  ;;  %5289 = vrot.lane.b32.xlu1 %v5288_v17, %s5511_s6  ;;  %v5010_v56 = vpop.permute.xlu1 %5009  ;;  %v2599_v6 = vrot.slane %v7773_v9, 2  ;;  %v3282_v1 = vsel %vm1407_vm4, %v3250_v22, %v5006_v60  ;;  %v7846_v39 = vld [vmem:[#allocation3 + $0x158] sm:$0xff] }
 0x2b6   : > { %2216 = vst.msk [vmem:[#allocation3 + $0x181] sm:$0xff] %vm225_vm0, %v2183_v41  ;;  %v5012_v8 = vunpack.i.h.bf16 %v5010_v56  ;;  %v5011_v37 = vunpack.i.l.bf16 %v5010_v56  ;;  %v5016_v29 = vunpack.i.l.bf16 %v5015_v55  ;;  %v5017_v23 = vunpack.i.h.bf16 %v5015_v55  ;;  %v2299_v41 = vld [vmem:[#allocation3 + $0x160] sm:$0x3] }
 0x2b7   : > { %vm2120_vm15 = vcmp.ge.f32.partialorder %v2086_v48, 0.0  ;;  %v2152_v31 = vmul.f32 0.2, %v2086_v48  ;;  %v3154_v63 = vsel %vm225_vm0, %v5473_v33, %v4997_v38  ;;  %v7850_v3 = vsel %vm756_vm3, %v2599_v6, %v2601_v62 }
 0x2b8   : > { %v3313_v28 = vsel %vm1440_vm5, %v3281_v52, %v5011_v37  ;;  %v3217_v13 = vsel %vm1440_vm5, %v3185_v27, %v5012_v8  ;;  %5299 = vrot.lane.b32.xlu0 %v5298_v15, %s5512_s9  ;;  %v3314_v15 = vsel %vm1440_vm5, %v3282_v1, %v5016_v29  ;;  %8530 = vst [vmem:[#allocation15_spill] sm:$0xff] %v7850_v3  ;;  %v2428_v56 = vrot.slane %v7846_v39, 1 }
 0x2b9   : > { %v2184_v17 = vsel %vm2120_vm15, %v2086_v48, %v2152_v31  ;;  %v7833_v44 = vpop.permute.xlu0 %5024  ;;  %5304 = vrot.lane.b32.xlu1 %v5303_v7, %s5512_s9  ;;  %v5020_v12 = vpop.permute.xlu1 %5019  ;;  %3487 = vmatprep.mubr.f32.mxu1 %v3313_v28  ;;  %v5308_v7 = vpack.i.bf16 %v7730_v10, %v7816_v16  ;;  %v7853_v36 = vsel %vm756_vm3, %v2598_v14, %v2599_v6  ;;  %v7858_v48 = vld [vmem:[#allocation3 + $0x150] sm:$0xff]  ;;  %v2430_v8 = vrot.slane %v2299_v41, 1 }
 0x2ba   : > { %2217 = vst.msk [vmem:[#allocation3 + $0x189] sm:$0xff] %vm225_vm0, %v2184_v17  ;;  %3488 = vmatmul.mubr.f32.gmra.mrb[36].mxu1 %v3217_v13  ;;  %8531 = vst [vmem:[#allocation13_spill] sm:$0xff] %v7853_v36  ;;  %v3186_v10 = vsel %vm1407_vm4, %v3154_v63, %v5007_v18  ;;  %v5021_v45 = vunpack.i.l.bf16 %v5020_v12  ;;  %v5323_v11 = vpack.i.bf16 %v7765_v4, %v7850_v3  ;;  %v5022_v37 = vunpack.i.h.bf16 %v5020_v12 }
 0x2bb   : > { %3492 = vmatprep.mubr.f32.mxu1 %v3314_v15  ;;  %v3218_v38 = vsel %vm1440_vm5, %v3186_v10, %v5017_v23  ;;  %v5318_v60 = vpack.i.bf16 %v7768_v40, %v7853_v36  ;;  %v2427_v52 = vrot.slane %v7858_v48, 1  ;;  %v5328_v27 = vpack.i.bf16 %v7781_v54, %v7858_v48 }
 0x2bc   : > { %5314 = vrot.lane.b32.xlu0 %v5313_v0, %s5513_s10  ;;  %v5333_v13 = vpack.i.bf16 %v7778_v50, %v7846_v39  ;;  %v2604_v62 = vrot.slane %v7846_v39, 2  ;;  %v2603_v18 = vrot.slane %v7858_v48, 2  ;;  %v5026_v17 = vunpack.i.l.bf16 %v7833_v44 }
 0x2bd   : > { %v5030_v24 = vpop.permute.xlu0 %5029  ;;  %5309 = vrot.lane.b32.xlu1 %v5308_v7, %s5513_s10  ;;  %v7876_v6 = vsel %vm579_vm2, %v2427_v52, %v2428_v56  ;;  %v3251_v22 = vsel %vm225_vm0, %v7308_v34, %v5021_v45  ;;  %v7884_v23 = vsel %vm579_vm2, %v2428_v56, %v2430_v8  ;;  %v2606_v1 = vrot.slane %v2299_v41, 2  ;;  %v5474_v7 = vld [vmem:[#allocation3 + $0x30] sm:$0xff]  ;;  %v7895_v41 = vld [vmem:[#allocation3 + $0x178] sm:$0x3] }
 0x2be   : > { %v7860_v55 = vpop.permute.xlu1 %5034  ;;  %3493 = vmatmul.mubr.f32.gmra.mrb[38].mxu1 %v3218_v38  ;;  %v5032_v31 = vunpack.i.h.bf16 %v5030_v24  ;;  %v5031_v29 = vunpack.i.l.bf16 %v5030_v24  ;;  %v3155_v33 = vsel %vm225_vm0, %v5474_v7, %v5022_v37  ;;  %v5027_v63 = vunpack.i.h.bf16 %v7833_v44  ;;  %v7893_v38 = vld [vmem:[#allocation3 + $0x170] sm:$0xff] }
 0x2bf   : > { %v5036_v14 = vunpack.i.l.bf16 %v7860_v55  ;;  %v5037_v56 = vunpack.i.h.bf16 %v7860_v55  ;;  %v5343_v52 = vpack.i.bf16 %v7773_v9, %v7884_v23  ;;  %v7909_v55 = vsel %vm756_vm3, %v2604_v62, %v2606_v1 }
 0x2c0   : > { %5324 = vrot.lane.b32.xlu0 %v5323_v11, %s5511_s6  ;;  %v3283_v34 = vsel %vm1407_vm4, %v3251_v22, %v5031_v29  ;;  %v3187_v10 = vsel %vm1407_vm4, %v3155_v33, %v5032_v31  ;;  %v3252_v31 = vsel %vm225_vm0, %v7305_v49, %v5026_v17  ;;  %8532 = vst [vmem:[#allocation16_spill] sm:$0xff] %v7909_v55  ;;  %v5475_v49 = vld [vmem:[#allocation3 + $0x38] sm:$0xff]  ;;  %v7921_v17 = vld [vmem:[#allocation3 + $0x168] sm:$0xff] }
 0x2c1   : > { %5319 = vrot.lane.b32.xlu1 %v5318_v60, %s5511_s6  ;;  %v5338_v60 = vpack.i.bf16 %v7789_v19, %v7876_v6  ;;  %v3284_v29 = vsel %vm1407_vm4, %v3252_v31, %v5036_v14  ;;  %v2433_v19 = vrot.slane %v7893_v38, 1  ;;  %v5353_v1 = vpack.i.bf16 %v7813_v32, %v7909_v55 }
 0x2c2   : > { %v5045_v28 = vpop.permute.xlu0 %5044  ;;  %v2432_v33 = vrot.slane %v7921_v17, 1  ;;  %v2611_v31 = vrot.slane %v7895_v41, 2 }
 0x2c3   : > { %v5040_v12 = vpop.permute.xlu1 %5039  ;;  %v5046_v24 = vunpack.i.l.bf16 %v5045_v28  ;;  %v5047_v8 = vunpack.i.h.bf16 %v5045_v28  ;;  %v2435_v28 = vrot.slane %v7895_v41, 1 }
 0x2c4   : > { %v5042_v0 = vunpack.i.h.bf16 %v5040_v12  ;;  %v5041_v15 = vunpack.i.l.bf16 %v5040_v12  ;;  %5329 = vrot.lane.b32.xlu0 %v5328_v27, %s5512_s9  ;;  %v7913_v27 = vsel %vm756_vm3, %v2603_v18, %v2604_v62 }
 0x2c5   : > { %5334 = vrot.lane.b32.xlu1 %v5333_v13, %s5512_s9  ;;  %8533 = vst [vmem:[#allocation6_spill] sm:$0xff] %v7913_v27  ;;  %v3316_v9 = vsel %vm1440_vm5, %v3284_v29, %v5046_v24  ;;  %v3156_v13 = vsel %vm225_vm0, %v5475_v49, %v5027_v63  ;;  %v7930_v7 = vsel %vm579_vm2, %v2433_v19, %v2435_v28  ;;  %v5476_v49 = vld [vmem:[#allocation3 + $0x48] sm:$0xff] }
 0x2c6   : > { %v7898_v45 = vpop.permute.xlu0 %5054  ;;  %v3315_v11 = vsel %vm1440_vm5, %v3283_v34, %v5041_v15  ;;  %v3219_v44 = vsel %vm1440_vm5, %v3187_v10, %v5042_v0  ;;  %v3188_v62 = vsel %vm1407_vm4, %v3156_v13, %v5037_v56  ;;  %v5348_v0 = vpack.i.bf16 %v7816_v16, %v7913_v27 }
 0x2c7   : > { %v5050_v37 = vpop.permute.xlu1 %5049  ;;  %3497 = vmatprep.mubr.f32.mxu1 %v3315_v11  ;;  %v3220_v14 = vsel %vm1440_vm5, %v3188_v62, %v5047_v8  ;;  %v5358_v34 = vpack.i.bf16 %v7853_v36, %v7921_v17  ;;  %v5363_v10 = vpack.i.bf16 %v7850_v3, %v7893_v38  ;;  %v7940_v56 = vsel %vm579_vm2, %v2432_v33, %v2433_v19 }
 0x2c8   : > { %3498 = vmatmul.mubr.f32.gmra.mrb[40].mxu1 %v3219_v44  ;;  %5344 = vrot.lane.b32.xlu0 %v5343_v52, %s5513_s10  ;;  %v5051_v18 = vunpack.i.l.bf16 %v5050_v37  ;;  %v5052_v15 = vunpack.i.h.bf16 %v5050_v37  ;;  %v2609_v11 = vrot.slane %v7893_v38, 2  ;;  %v5056_v44 = vunpack.i.l.bf16 %v7898_v45 }
 0x2c9   : > { %5339 = vrot.lane.b32.xlu1 %v5338_v60, %s5513_s10  ;;  %3502 = vmatprep.mubr.f32.mxu1 %v3316_v9  ;;  %v5373_v52 = vpack.i.bf16 %v7846_v39, %v7930_v7  ;;  %v5057_v13 = vunpack.i.h.bf16 %v7898_v45 }
 0x2ca   : > { %v5060_v12 = vpop.permute.xlu0 %5059  ;;  %v3253_v37 = vsel %vm225_vm0, %v7363_v51, %v5051_v18  ;;  %v3157_v19 = vsel %vm225_vm0, %v5476_v49, %v5052_v15  ;;  %v5368_v15 = vpack.i.bf16 %v7858_v48, %v7940_v56  ;;  %v3254_v33 = vsel %vm225_vm0, %v7356_v35, %v5056_v44  ;;  %v7988_v49 = vld [vmem:[#allocation3 + $0x190] sm:$0x3] }
 0x2cb   : > { %v5065_v22 = vpop.permute.xlu1 %5064  ;;  %v5062_v63 = vunpack.i.h.bf16 %v5060_v12  ;;  %v5061_v24 = vunpack.i.l.bf16 %v5060_v12 }
 0x2cc   : > { %3503 = vmatmul.mubr.f32.gmra.mrb[42].mxu1 %v3220_v14  ;;  %5354 = vrot.lane.b32.xlu0 %v5353_v1, %s5511_s6  ;;  %v5066_v29 = vunpack.i.l.bf16 %v5065_v22  ;;  %v5067_v39 = vunpack.i.h.bf16 %v5065_v22  ;;  %v2608_v1 = vrot.slane %v7921_v17, 2 }
 0x2cd   : > { %5349 = vrot.lane.b32.xlu1 %v5348_v0, %s5511_s6  ;;  %v3285_v51 = vsel %vm1407_vm4, %v3253_v37, %v5061_v24  ;;  %v3189_v62 = vsel %vm1407_vm4, %v3157_v19, %v5062_v63  ;;  %v7965_v63 = vsel %vm756_vm3, %v2609_v11, %v2611_v31  ;;  %v7990_v19 = vld [vmem:[#allocation3 + $0x1a0] sm:$0xff] }
 0x2ce   : > { %v5075_v60 = vpop.permute.xlu0 %5074  ;;  %v3286_v22 = vsel %vm1407_vm4, %v3254_v33, %v5066_v29  ;;  %v7969_v24 = vsel %vm756_vm3, %v2608_v1, %v2609_v11  ;;  %v5383_v44 = vpack.i.bf16 %v7884_v23, %v7965_v63  ;;  %v7982_v11 = vld [vmem:[#allocation3 + $0x198] sm:$0xff]  ;;  %v2811_v1 = vrot.slane %v7988_v49, 1 }
 0x2cf   : > { %v5070_v8 = vpop.permute.xlu1 %5069  ;;  %v5076_v12 = vunpack.i.l.bf16 %v5075_v60  ;;  %v5077_v14 = vunpack.i.h.bf16 %v5075_v60 }
 0x2d0   : > { %v5072_v28 = vunpack.i.h.bf16 %v5070_v8  ;;  %v5071_v9 = vunpack.i.l.bf16 %v5070_v8  ;;  %5359 = vrot.lane.b32.xlu0 %v5358_v34, %s5512_s9  ;;  %v7971_v34 = vld [vmem:[#allocation3 + $0x188] sm:$0xff]  ;;  %v7980_v8 = vld [vmem:[#allocation3 + $0x180] sm:$0xff] }
 0x2d1   : > { %5364 = vrot.lane.b32.xlu1 %v5363_v10, %s5512_s9  ;;  %v3318_v48 = vsel %vm1440_vm5, %v3286_v22, %v5076_v12  ;;  %v5477_v10 = vld [vmem:[#allocation3 + $0x50] sm:$0xff] }
 0x2d2   : > { %v3317_v41 = vsel %vm1440_vm5, %v3285_v51, %v5071_v9  ;;  %v3221_v18 = vsel %vm1440_vm5, %v3189_v62, %v5072_v28  ;;  %v7958_v0 = vpop.permute.xlu0 %5084  ;;  %v3158_v35 = vsel %vm225_vm0, %v5477_v10, %v5057_v13  ;;  %v5378_v28 = vpack.i.bf16 %v7876_v6, %v7969_v24 }
 0x2d3   : > { %v5080_v45 = vpop.permute.xlu1 %5079  ;;  %3507 = vmatprep.mubr.f32.mxu1 %v3317_v41  ;;  %v3190_v60 = vsel %vm1407_vm4, %v3158_v35, %v5067_v39  ;;  %v2809_v9 = vrot.slane %v7971_v34, 1  ;;  %v3045_v62 = vrot.slane %v7982_v11, 1  ;;  %v2808_v39 = vrot.slane %v7980_v8, 1 }
 0x2d4   : > { %3508 = vmatmul.mubr.f32.gmra.mrb[44].mxu1 %v3221_v18  ;;  %5374 = vrot.lane.b32.xlu0 %v5373_v52, %s5513_s10  ;;  %v5081_v37 = vunpack.i.l.bf16 %v5080_v45  ;;  %v3222_v29 = vsel %vm1440_vm5, %v3190_v60, %v5077_v14  ;;  %v5082_v13 = vunpack.i.h.bf16 %v5080_v45  ;;  %v5388_v41 = vpack.i.bf16 %v7913_v27, %v7980_v8 }
 0x2d5   : > { %5369 = vrot.lane.b32.xlu1 %v5368_v15, %s5513_s10  ;;  %3512 = vmatprep.mubr.f32.mxu1 %v3318_v48  ;;  %v5398_v18 = vpack.i.bf16 %v7909_v55, %v7971_v34  ;;  %v3046_v14 = vrot.slane %v7990_v19, 1  ;;  %v5086_v45 = vunpack.i.l.bf16 %v7958_v0  ;;  %v8006_v48 = vsel %vm579_vm2, %v2808_v39, %v2809_v9 }
 0x2d6   : > { %v5090_v31 = vpop.permute.xlu0 %5089  ;;  %v3255_v22 = vsel %vm225_vm0, %v7409_v61, %v5081_v37  ;;  %v2846_v10 = vrot.slane %v7971_v34, 2 }
 0x2d7   : > { %v5095_v52 = vpop.permute.xlu1 %5094  ;;  %v5092_v12 = vunpack.i.h.bf16 %v5090_v31  ;;  %v5091_v51 = vunpack.i.l.bf16 %v5090_v31  ;;  %v5478_v31 = vld [vmem:[#allocation3 + $0x60] sm:$0xff] }
 0x2d8   : > { %3513 = vmatmul.mubr.f32.gmra.mrb[46].mxu1 %v3222_v29  ;;  %5384 = vrot.lane.b32.xlu0 %v5383_v44, %s5511_s6  ;;  %v5096_v35 = vunpack.i.l.bf16 %v5095_v52  ;;  %v3159_v29 = vsel %vm225_vm0, %v5478_v31, %v5082_v13  ;;  %v5097_v39 = vunpack.i.h.bf16 %v5095_v52  ;;  %v3256_v52 = vsel %vm225_vm0, %v7406_v47, %v5086_v45  ;;  %v5479_v47 = vld [vmem:[#allocation3 + $0x68] sm:$0xff] }
 0x2d9   : > { %5379 = vrot.lane.b32.xlu1 %v5378_v28, %s5511_s6  ;;  %v5087_v28 = vunpack.i.h.bf16 %v7958_v0  ;;  %v3287_v61 = vsel %vm1407_vm4, %v3255_v22, %v5091_v51  ;;  %v3191_v37 = vsel %vm1407_vm4, %v3159_v29, %v5092_v12  ;;  %v5403_v51 = vpack.i.bf16 %v7921_v17, %v8006_v48  ;;  %v8026_v12 = vld [vmem:[#allocation3 + $0x1a8] sm:$0x3] }
 0x2da   : > { %v5105_v15 = vpop.permute.xlu0 %5104 }
 0x2db   : > { %v5100_v33 = vpop.permute.xlu1 %5099  ;;  %v5106_v55 = vunpack.i.l.bf16 %v5105_v15  ;;  %v5107_v36 = vunpack.i.h.bf16 %v5105_v15  ;;  %v8030_v15 = vsel %vm579_vm2, %v2809_v9, %v2811_v1  ;;  %v3160_v45 = vsel %vm225_vm0, %v5479_v47, %v5087_v28 }
 0x2dc   : > { %v5102_v44 = vunpack.i.h.bf16 %v5100_v33  ;;  %v5101_v60 = vunpack.i.l.bf16 %v5100_v33  ;;  %5389 = vrot.lane.b32.xlu0 %v5388_v41, %s5512_s9  ;;  %v2845_v33 = vrot.slane %v7980_v8, 2  ;;  %v5393_v41 = vpack.i.bf16 %v7969_v24, %v7982_v11 }
 0x2dd   : > { %5399 = vrot.lane.b32.xlu1 %v5398_v18, %s5512_s9  ;;  %v3288_v18 = vsel %vm1407_vm4, %v3256_v52, %v5096_v35  ;;  %v3048_v9 = vrot.slane %v8026_v12, 1 }
 0x2de   : > { %v3319_v27 = vsel %vm1440_vm5, %v3287_v61, %v5101_v60  ;;  %v3223_v3 = vsel %vm1440_vm5, %v3191_v37, %v5102_v44  ;;  %v8018_v13 = vpop.permute.xlu0 %5114  ;;  %v8033_v22 = vsel %vm756_vm3, %v2845_v33, %v2846_v10  ;;  %v3320_v44 = vsel %vm1440_vm5, %v3288_v18, %v5106_v55 }
 0x2df   : > { %v5110_v0 = vpop.permute.xlu1 %5109  ;;  %3517 = vmatprep.mubr.f32.mxu1 %v3319_v27  ;;  %v2848_v27 = vrot.slane %v7988_v49, 2  ;;  %v5408_v49 = vpack.i.bf16 %v7893_v38, %v8030_v15  ;;  %v5413_v29 = vpack.i.bf16 %v7940_v56, %v8033_v22  ;;  %v3047_v61 = vsel %vm579_vm2, %v3045_v62, %v3046_v14 }
 0x2e0   : > { %3518 = vmatmul.mubr.f32.gmra.mrb[48].mxu1 %v3223_v3  ;;  %5394 = vrot.lane.b32.xlu0 %v5393_v41, %s5512_s9  ;;  %v3192_v3 = vsel %vm1407_vm4, %v3160_v45, %v5097_v39  ;;  %v5111_v1 = vunpack.i.l.bf16 %v5110_v0  ;;  %v5112_v55 = vunpack.i.h.bf16 %v5110_v0  ;;  %v3049_v38 = vsel %vm579_vm2, %v3046_v14, %v3048_v9 }
 0x2e1   : > { %5404 = vrot.lane.b32.xlu1 %v5403_v51, %s5513_s10  ;;  %3522 = vmatprep.mubr.f32.mxu1 %v3320_v44  ;;  %v3224_v31 = vsel %vm1440_vm5, %v3192_v3, %v5107_v36  ;;  %v8048_v28 = vsel %vm756_vm3, %v2846_v10, %v2848_v27  ;;  %v5116_v36 = vunpack.i.l.bf16 %v8018_v13  ;;  %v5418_v10 = vpack.i.bf16 %v7980_v8, %v3047_v61  ;;  %v5480_v27 = vld [vmem:[#allocation3 + $0x78] sm:$0xff]  ;;  %v5481_v61 = vld [vmem:[#allocation3 + $0x80] sm:$0xff] }
 0x2e2   : > { %v5120_v35 = vpop.permute.xlu0 %5119  ;;  %v5428_v0 = vpack.i.bf16 %v7930_v7, %v8048_v28  ;;  %v3257_v62 = vsel %vm225_vm0, %v7456_v57, %v5111_v1  ;;  %v3161_v44 = vsel %vm225_vm0, %v5480_v27, %v5112_v55  ;;  %v5117_v14 = vunpack.i.h.bf16 %v8018_v13 }
 0x2e3   : > { %v5125_v60 = vpop.permute.xlu1 %5124  ;;  %v5122_v37 = vunpack.i.h.bf16 %v5120_v35  ;;  %v5121_v39 = vunpack.i.l.bf16 %v5120_v35  ;;  %v5433_v13 = vpack.i.bf16 %v7971_v34, %v3049_v38 }
 0x2e4   : > { %3523 = vmatmul.mubr.f32.gmra.mrb[50].mxu1 %v3224_v31  ;;  %5409 = vrot.lane.b32.xlu0 %v5408_v49, %s5513_s10  ;;  %v5126_v51 = vunpack.i.l.bf16 %v5125_v60  ;;  %v5127_v3 = vunpack.i.h.bf16 %v5125_v60  ;;  %v5423_v31 = vpack.i.bf16 %v7965_v63, %v7990_v19 }
 0x2e5   : > { %5414 = vrot.lane.b32.xlu1 %v5413_v29, %s5511_s6  ;;  %v3289_v45 = vsel %vm1407_vm4, %v3257_v62, %v5121_v39  ;;  %v3193_v8 = vsel %vm1407_vm4, %v3161_v44, %v5122_v37  ;;  %v3258_v29 = vsel %vm225_vm0, %v7453_v20, %v5116_v36  ;;  %v3162_v37 = vsel %vm225_vm0, %v5481_v61, %v5117_v14 }
 0x2e6   : > { %v5135_v33 = vpop.permute.xlu0 %5134  ;;  %v3290_v55 = vsel %vm1407_vm4, %v3258_v29, %v5126_v51  ;;  %v3194_v34 = vsel %vm1407_vm4, %v3162_v37, %v5127_v3 }
 0x2e7   : > { %v5130_v41 = vpop.permute.xlu1 %5129  ;;  %v5136_v47 = vunpack.i.l.bf16 %v5135_v33  ;;  %v5137_v1 = vunpack.i.h.bf16 %v5135_v33 }
 0x2e8   : > { %v5132_v52 = vunpack.i.h.bf16 %v5130_v41  ;;  %v5131_v18 = vunpack.i.l.bf16 %v5130_v41  ;;  %5429 = vrot.lane.b32.xlu0 %v5428_v0, %s5511_s6 }
 0x2e9   : > { %5419 = vrot.lane.b32.xlu1 %v5418_v10, %s5513_s10  ;;  %v3322_v60 = vsel %vm1440_vm5, %v3290_v55, %v5136_v47  ;;  %v3226_v20 = vsel %vm1440_vm5, %v3194_v34, %v5137_v1  ;;  %v5482_v47 = vld [vmem:[#allocation3 + $0x90] sm:$0xff] }
 0x2ea   : > { %v3321_v57 = vsel %vm1440_vm5, %v3289_v45, %v5131_v18  ;;  %v3225_v9 = vsel %vm1440_vm5, %v3193_v8, %v5132_v52  ;;  %v5145_v35 = vpop.permute.xlu0 %5144 }
 0x2eb   : > { %v5140_v49 = vpop.permute.xlu1 %5139  ;;  %3527 = vmatprep.mubr.f32.mxu1 %v3321_v57  ;;  %v5146_v10 = vunpack.i.l.bf16 %v5145_v35  ;;  %v5147_v8 = vunpack.i.h.bf16 %v5145_v35 }
 0x2ec   : > { %3528 = vmatmul.mubr.f32.gmra.mrb[52].mxu1 %v3225_v9  ;;  %5434 = vrot.lane.b32.xlu0 %v5433_v13, %s5513_s10  ;;  %v5141_v39 = vunpack.i.l.bf16 %v5140_v49  ;;  %v5142_v36 = vunpack.i.h.bf16 %v5140_v49 }
 0x2ed   : > { %5424 = vrot.lane.b32.xlu1 %v5423_v31, %s5512_s9  ;;  %3532 = vmatprep.mubr.f32.mxu1 %v3322_v60  ;;  %v3260_v13 = vsel %vm225_vm0, %v7504_v30, %v5146_v10  ;;  %v5483_v60 = vld [vmem:[#allocation3 + $0x98] sm:$0xff] }
 0x2ee   : > { %v5150_v38 = vpop.permute.xlu0 %5149  ;;  %v3259_v18 = vsel %vm225_vm0, %v7507_v42, %v5141_v39  ;;  %v3163_v45 = vsel %vm225_vm0, %v5482_v47, %v5142_v36  ;;  %v3164_v61 = vsel %vm225_vm0, %v5483_v60, %v5147_v8 }
 0x2ef   : > { %v5155_v33 = vpop.permute.xlu1 %5154  ;;  %v5152_v41 = vunpack.i.h.bf16 %v5150_v38  ;;  %v5151_v0 = vunpack.i.l.bf16 %v5150_v38 }
 0x2f0   : > { %3533 = vmatmul.mubr.f32.gmra.mrb[54].mxu1 %v3226_v20  ;;  %v5156_v62 = vunpack.i.l.bf16 %v5155_v33  ;;  %v5157_v9 = vunpack.i.h.bf16 %v5155_v33 }
 0x2f1   : > { %v3291_v3 = vsel %vm1407_vm4, %v3259_v18, %v5151_v0  ;;  %v3195_v57 = vsel %vm1407_vm4, %v3163_v45, %v5152_v41 }
 0x2f2   : > { %v5165_v51 = vpop.permute.xlu0 %5164  ;;  %v3292_v55 = vsel %vm1407_vm4, %v3260_v13, %v5156_v62  ;;  %v3196_v37 = vsel %vm1407_vm4, %v3164_v61, %v5157_v9 }
 0x2f3   : > { %v5160_v52 = vpop.permute.xlu1 %5159  ;;  %v5166_v27 = vunpack.i.l.bf16 %v5165_v51  ;;  %v5167_v42 = vunpack.i.h.bf16 %v5165_v51 }
 0x2f4   : > { %v5162_v44 = vunpack.i.h.bf16 %v5160_v52  ;;  %v5161_v14 = vunpack.i.l.bf16 %v5160_v52 }
 0x2f5   : > { %v3324_v35 = vsel %vm1440_vm5, %v3292_v55, %v5166_v27  ;;  %v3228_v30 = vsel %vm1440_vm5, %v3196_v37, %v5167_v42 }
 0x2f6   : > { %v3323_v1 = vsel %vm1440_vm5, %v3291_v3, %v5161_v14  ;;  %v3227_v49 = vsel %vm1440_vm5, %v3195_v57, %v5162_v44  ;;  %v5175_v31 = vpop.permute.xlu0 %5174  ;;  %v5484_v44 = vld [vmem:[#allocation3 + $0xa8] sm:$0xff] }
 0x2f7   : > { %v5170_v29 = vpop.permute.xlu1 %5169  ;;  %3537 = vmatprep.mubr.f32.mxu1 %v3323_v1  ;;  %v5176_v41 = vunpack.i.l.bf16 %v5175_v31  ;;  %v5177_v47 = vunpack.i.h.bf16 %v5175_v31 }
 0x2f8   : > { %3538 = vmatmul.mubr.f32.gmra.mrb[56].mxu1 %v3227_v49  ;;  %v5171_v34 = vunpack.i.l.bf16 %v5170_v29  ;;  %v5172_v33 = vunpack.i.h.bf16 %v5170_v29 }
 0x2f9   : > { %3542 = vmatprep.mubr.f32.mxu1 %v3324_v35  ;;  %v3262_v49 = vsel %vm225_vm0, %v7555_v26, %v5176_v41  ;;  %v5485_v35 = vld [vmem:[#allocation3 + $0xb0] sm:$0xff] }
 0x2fa   : > { %v5180_v39 = vpop.permute.xlu0 %5179  ;;  %v3261_v51 = vsel %vm225_vm0, %v7558_v58, %v5171_v34  ;;  %v3165_v14 = vsel %vm225_vm0, %v5484_v44, %v5172_v33  ;;  %v3166_v60 = vsel %vm225_vm0, %v5485_v35, %v5177_v47 }
 0x2fb   : > { %v5185_v38 = vpop.permute.xlu1 %5184  ;;  %v5182_v20 = vunpack.i.h.bf16 %v5180_v39  ;;  %v5181_v36 = vunpack.i.l.bf16 %v5180_v39 }
 0x2fc   : > { %3543 = vmatmul.mubr.f32.gmra.mrb[58].mxu1 %v3228_v30  ;;  %v5186_v0 = vunpack.i.l.bf16 %v5185_v38  ;;  %v5187_v57 = vunpack.i.h.bf16 %v5185_v38 }
 0x2fd   : > { %v3293_v8 = vsel %vm1407_vm4, %v3261_v51, %v5181_v36  ;;  %v3197_v3 = vsel %vm1407_vm4, %v3165_v14, %v5182_v20 }
 0x2fe   : > { %v5195_v10 = vpop.permute.xlu0 %5194  ;;  %v3294_v31 = vsel %vm1407_vm4, %v3262_v49, %v5186_v0  ;;  %v3198_v61 = vsel %vm1407_vm4, %v3166_v60, %v5187_v57 }
 0x2ff   : > { %v5190_v62 = vpop.permute.xlu1 %5189  ;;  %v5196_v52 = vunpack.i.l.bf16 %v5195_v10  ;;  %v5197_v13 = vunpack.i.h.bf16 %v5195_v10 }
 0x300   : > { %v5192_v18 = vunpack.i.h.bf16 %v5190_v62  ;;  %v5191_v27 = vunpack.i.l.bf16 %v5190_v62 }
 0x301   : > { %v8097_v45 = vpop.f32.mrb[64].mxu0  ;;  %v3326_v55 = vsel %vm1440_vm5, %v3294_v31, %v5196_v52  ;;  %v3230_v26 = vsel %vm1440_vm5, %v3198_v61, %v5197_v13 }
 0x302   : > { %v8101_v9 = vpop.f32.mrb[65].mxu0  ;;  %v3325_v1 = vsel %vm1440_vm5, %v3293_v8, %v5191_v27  ;;  %v3229_v58 = vsel %vm1440_vm5, %v3197_v3, %v5192_v18  ;;  %v5205_v42 = vpop.permute.xlu0 %5204  ;;  %v5486_v18 = vld [vmem:[#allocation3 + $0xc0] sm:$0xff] }
 0x303   : > { %v5200_v29 = vpop.permute.xlu1 %5199  ;;  %3547 = vmatprep.mubr.f32.mxu1 %v3325_v1  ;;  %v5206_v20 = vunpack.i.l.bf16 %v5205_v42  ;;  %v5207_v44 = vunpack.i.h.bf16 %v5205_v42 }
 0x304   : > { %3548 = vmatmul.mubr.f32.gmra.mrb[60].mxu1 %v3229_v58  ;;  %v5201_v37 = vunpack.i.l.bf16 %v5200_v29  ;;  %v5202_v38 = vunpack.i.h.bf16 %v5200_v29  ;;  %v5487_v29 = vld [vmem:[#allocation3 + $0xc8] sm:$0xff] }
 0x305   : > { %3552 = vmatprep.mubr.f32.mxu1 %v3326_v55  ;;  %v3264_v1 = vsel %vm225_vm0, %v7612_v59, %v5206_v20  ;;  %v3168_v31 = vsel %vm225_vm0, %v5487_v29, %v5207_v44 }
 0x306   : > { %v5210_v34 = vpop.permute.xlu0 %5209  ;;  %v3263_v10 = vsel %vm225_vm0, %v7606_v25, %v5201_v37  ;;  %v3167_v27 = vsel %vm225_vm0, %v5486_v18, %v5202_v38 }
 0x307   : > { %v5215_v39 = vpop.permute.xlu1 %5214  ;;  %v5212_v30 = vunpack.i.h.bf16 %v5210_v34  ;;  %v5211_v33 = vunpack.i.l.bf16 %v5210_v34 }
 0x308   : > { %3553 = vmatmul.mubr.f32.gmra.mrb[62].mxu1 %v3230_v26  ;;  %v5216_v36 = vunpack.i.l.bf16 %v5215_v39  ;;  %v5217_v8 = vunpack.i.h.bf16 %v5215_v39 }
 0x309   : > { %v3295_v14 = vsel %vm1407_vm4, %v3263_v10, %v5211_v33  ;;  %v3199_v47 = vsel %vm1407_vm4, %v3167_v27, %v5212_v30 }
 0x30a   : > { %v5225_v41 = vpop.permute.xlu0 %5224  ;;  %v3296_v13 = vsel %vm1407_vm4, %v3264_v1, %v5216_v36  ;;  %v3200_v55 = vsel %vm1407_vm4, %v3168_v31, %v5217_v8 }
 0x30b   : > { %v5220_v0 = vpop.permute.xlu1 %5219  ;;  %v5226_v62 = vunpack.i.l.bf16 %v5225_v41  ;;  %v5227_v25 = vunpack.i.h.bf16 %v5225_v41 }
 0x30c   : > { %v5222_v51 = vunpack.i.h.bf16 %v5220_v0  ;;  %v5221_v52 = vunpack.i.l.bf16 %v5220_v0 }
 0x30d   : > { %v3328_v42 = vsel %vm1440_vm5, %v3296_v13, %v5226_v62  ;;  %v3232_v59 = vsel %vm1440_vm5, %v3200_v55, %v5227_v25 }
 0x30e   : > { %v3327_v3 = vsel %vm1440_vm5, %v3295_v14, %v5221_v52  ;;  %v3231_v57 = vsel %vm1440_vm5, %v3199_v47, %v5222_v51  ;;  %v5235_v58 = vpop.permute.xlu0 %5234  ;;  %v5488_v51 = vld [vmem:[#allocation3 + $0xd8] sm:$0xff] }
 0x30f   : > { %v5230_v49 = vpop.permute.xlu1 %5229  ;;  %3557 = vmatprep.mubr.f32.mxu1 %v3327_v3  ;;  %v5236_v30 = vunpack.i.l.bf16 %v5235_v58  ;;  %v5237_v18 = vunpack.i.h.bf16 %v5235_v58 }
 0x310   : > { %3558 = vmatmul.mubr.f32.gmra.mrb[64].mxu1 %v3231_v57  ;;  %v5231_v35 = vunpack.i.l.bf16 %v5230_v49  ;;  %v5232_v37 = vunpack.i.h.bf16 %v5230_v49  ;;  %v5489_v49 = vld [vmem:[#allocation3 + $0xe0] sm:$0xff] }
 0x311   : > { %3562 = vmatprep.mubr.f32.mxu1 %v3328_v42  ;;  %v3266_v3 = vsel %vm225_vm0, %v7655_v21, %v5236_v30  ;;  %v3170_v13 = vsel %vm225_vm0, %v5489_v49, %v5237_v18 }
 0x312   : > { %v5240_v60 = vpop.permute.xlu0 %5239  ;;  %v3265_v41 = vsel %vm225_vm0, %v7658_v2, %v5231_v35  ;;  %v3169_v52 = vsel %vm225_vm0, %v5488_v51, %v5232_v37 }
 0x313   : > { %v5245_v61 = vpop.permute.xlu1 %5244  ;;  %v5242_v39 = vunpack.i.h.bf16 %v5240_v60  ;;  %v5241_v26 = vunpack.i.l.bf16 %v5240_v60 }
 0x314   : > { %3563 = vmatmul.mubr.f32.gmra.mrb[66].mxu1 %v3232_v59  ;;  %v8126_v34 = vpop.f32.mrb[66].mxu0  ;;  %v5246_v33 = vunpack.i.l.bf16 %v5245_v61  ;;  %v5247_v14 = vunpack.i.h.bf16 %v5245_v61 }
 0x315   : > { %v8128_v38 = vpop.f32.mrb[67].mxu0  ;;  %v3297_v27 = vsel %vm1407_vm4, %v3265_v41, %v5241_v26  ;;  %v3201_v44 = vsel %vm1407_vm4, %v3169_v52, %v5242_v39 }
 0x316   : > { %v5255_v20 = vpop.permute.xlu0 %5254  ;;  %v3298_v25 = vsel %vm1407_vm4, %v3266_v3, %v5246_v33  ;;  %v3202_v42 = vsel %vm1407_vm4, %v3170_v13, %v5247_v14 }
 0x317   : > { %v5250_v36 = vpop.permute.xlu1 %5249  ;;  %v5256_v0 = vunpack.i.l.bf16 %v5255_v20  ;;  %v5257_v2 = vunpack.i.h.bf16 %v5255_v20 }
 0x318   : > { %v5252_v10 = vunpack.i.h.bf16 %v5250_v36  ;;  %v5251_v62 = vunpack.i.l.bf16 %v5250_v36 }
 0x319   : > { %v3330_v58 = vsel %vm1440_vm5, %v3298_v25, %v5256_v0  ;;  %v3234_v21 = vsel %vm1440_vm5, %v3202_v42, %v5257_v2 }
 0x31a   : > { %v3329_v47 = vsel %vm1440_vm5, %v3297_v27, %v5251_v62  ;;  %v3233_v8 = vsel %vm1440_vm5, %v3201_v44, %v5252_v10  ;;  %v5265_v57 = vpop.permute.xlu0 %5264  ;;  %v5490_v10 = vld [vmem:[#allocation3 + $0xf0] sm:$0xff] }
 0x31b   : > { %v5260_v1 = vpop.permute.xlu1 %5259  ;;  %3567 = vmatprep.mubr.f32.mxu1 %v3329_v47  ;;  %v5266_v37 = vunpack.i.l.bf16 %v5265_v57  ;;  %v5267_v51 = vunpack.i.h.bf16 %v5265_v57 }
 0x31c   : > { %3568 = vmatmul.mubr.f32.gmra.mrb[68].mxu1 %v3233_v8  ;;  %v5261_v29 = vunpack.i.l.bf16 %v5260_v1  ;;  %v5262_v35 = vunpack.i.h.bf16 %v5260_v1  ;;  %v5491_v1 = vld [vmem:[#allocation3 + $0xf8] sm:$0xff] }
 0x31d   : > { %3572 = vmatprep.mubr.f32.mxu1 %v3330_v58  ;;  %v3268_v47 = vsel %vm225_vm0, %v7698_v5, %v5266_v37  ;;  %v3172_v25 = vsel %vm225_vm0, %v5491_v1, %v5267_v51 }
 0x31e   : > { %v5270_v31 = vpop.permute.xlu0 %5269  ;;  %v3267_v20 = vsel %vm225_vm0, %v7702_v43, %v5261_v29  ;;  %v3171_v62 = vsel %vm225_vm0, %v5490_v10, %v5262_v35 }
 0x31f   : > { %v5275_v55 = vpop.permute.xlu1 %5274  ;;  %v5272_v60 = vunpack.i.h.bf16 %v5270_v31  ;;  %v5271_v61 = vunpack.i.l.bf16 %v5270_v31 }
 0x320   : > { %3573 = vmatmul.mubr.f32.gmra.mrb[70].mxu1 %v3234_v21  ;;  %v5276_v26 = vunpack.i.l.bf16 %v5275_v55  ;;  %v5277_v27 = vunpack.i.h.bf16 %v5275_v55 }
 0x321   : > { %v8144_v59 = vpop.f32.mrb[68].mxu0  ;;  %v3299_v52 = vsel %vm1407_vm4, %v3267_v20, %v5271_v61  ;;  %v3203_v18 = vsel %vm1407_vm4, %v3171_v62, %v5272_v60 }
 0x322   : > { %v8146_v39 = vpop.f32.mrb[69].mxu0  ;;  %v5285_v30 = vpop.permute.xlu0 %5284  ;;  %v3300_v2 = vsel %vm1407_vm4, %v3268_v47, %v5276_v26  ;;  %v3204_v58 = vsel %vm1407_vm4, %v3172_v25, %v5277_v27 }
 0x323   : > { %v5280_v33 = vpop.permute.xlu1 %5279  ;;  %v5286_v36 = vunpack.i.l.bf16 %v5285_v30  ;;  %v5287_v43 = vunpack.i.h.bf16 %v5285_v30 }
 0x324   : > { %v5282_v41 = vunpack.i.h.bf16 %v5280_v33  ;;  %v5281_v0 = vunpack.i.l.bf16 %v5280_v33 }
 0x325   : > { %v3332_v57 = vsel %vm1440_vm5, %v3300_v2, %v5286_v36  ;;  %v3236_v5 = vsel %vm1440_vm5, %v3204_v58, %v5287_v43 }
 0x326   : > { %v3331_v44 = vsel %vm1440_vm5, %v3299_v52, %v5281_v0  ;;  %v3235_v14 = vsel %vm1440_vm5, %v3203_v18, %v5282_v41  ;;  %v5295_v8 = vpop.permute.xlu0 %5294  ;;  %v5492_v41 = vld [vmem:[#allocation3 + $0x108] sm:$0xff] }
 0x327   : > { %v5290_v3 = vpop.permute.xlu1 %5289  ;;  %3577 = vmatprep.mubr.f32.mxu1 %v3331_v44  ;;  %v5296_v60 = vunpack.i.l.bf16 %v5295_v8  ;;  %v5297_v10 = vunpack.i.h.bf16 %v5295_v8 }
 0x328   : > { %3578 = vmatmul.mubr.f32.gmra.mrb[72].mxu1 %v3235_v14  ;;  %v5291_v49 = vunpack.i.l.bf16 %v5290_v3  ;;  %v5292_v29 = vunpack.i.h.bf16 %v5290_v3  ;;  %v5493_v3 = vld [vmem:[#allocation3 + $0x110] sm:$0xff] }
 0x329   : > { %3582 = vmatprep.mubr.f32.mxu1 %v3332_v57  ;;  %v3270_v44 = vsel %vm225_vm0, %v7765_v4, %v5296_v60  ;;  %v3174_v2 = vsel %vm225_vm0, %v5493_v3, %v5297_v10 }
 0x32a   : > { %v5300_v13 = vpop.permute.xlu0 %5299  ;;  %v3269_v30 = vsel %vm225_vm0, %v7768_v40, %v5291_v49  ;;  %v3173_v0 = vsel %vm225_vm0, %v5492_v41, %v5292_v29 }
 0x32b   : > { %v5305_v42 = vpop.permute.xlu1 %5304  ;;  %v5302_v55 = vunpack.i.h.bf16 %v5300_v13  ;;  %v5301_v21 = vunpack.i.l.bf16 %v5300_v13 }
 0x32c   : > { %3583 = vmatmul.mubr.f32.gmra.mrb[74].mxu1 %v3236_v5  ;;  %v8162_v31 = vpop.f32.mrb[70].mxu0  ;;  %v5306_v61 = vunpack.i.l.bf16 %v5305_v42  ;;  %v5307_v52 = vunpack.i.h.bf16 %v5305_v42 }
 0x32d   : > { %v8164_v35 = vpop.f32.mrb[71].mxu0  ;;  %v3301_v62 = vsel %vm1407_vm4, %v3269_v30, %v5301_v21  ;;  %v3205_v51 = vsel %vm1407_vm4, %v3173_v0, %v5302_v55 }
 0x32e   : > { %v5315_v37 = vpop.permute.xlu0 %5314  ;;  %v3302_v43 = vsel %vm1407_vm4, %v3270_v44, %v5306_v61  ;;  %v3206_v1 = vsel %vm1407_vm4, %v3174_v2, %v5307_v52 }
 0x32f   : > { %v5310_v26 = vpop.permute.xlu1 %5309  ;;  %v5316_v33 = vunpack.i.l.bf16 %v5315_v37  ;;  %v5317_v40 = vunpack.i.h.bf16 %v5315_v37 }
 0x330   : > { %v5312_v20 = vunpack.i.h.bf16 %v5310_v26  ;;  %v5311_v36 = vunpack.i.l.bf16 %v5310_v26 }
 0x331   : > { %v3334_v8 = vsel %vm1440_vm5, %v3302_v43, %v5316_v33  ;;  %v3238_v4 = vsel %vm1440_vm5, %v3206_v1, %v5317_v40 }
 0x332   : > { %v3333_v18 = vsel %vm1440_vm5, %v3301_v62, %v5311_v36  ;;  %v3237_v27 = vsel %vm1440_vm5, %v3205_v51, %v5312_v20  ;;  %v5325_v14 = vpop.permute.xlu0 %5324  ;;  %v5494_v20 = vld [vmem:[#allocation3 + $0x120] sm:$0xff] }
 0x333   : > { %v5320_v47 = vpop.permute.xlu1 %5319  ;;  %3587 = vmatprep.mubr.f32.mxu1 %v3333_v18  ;;  %v5326_v55 = vunpack.i.l.bf16 %v5325_v14  ;;  %v5327_v41 = vunpack.i.h.bf16 %v5325_v14 }
 0x334   : > { %3588 = vmatmul.mubr.f32.gmra.mrb[76].mxu1 %v3237_v27  ;;  %v5321_v49 = vunpack.i.l.bf16 %v5320_v47  ;;  %v5322_v42 = vunpack.i.h.bf16 %v5320_v47 }
 0x335   : > { %3592 = vmatprep.mubr.f32.mxu1 %v3334_v8  ;;  %v8178_v57 = vpop.f32.mrb[72].mxu0  ;;  %v5495_v8 = vld [vmem:[#allocation3 + $0x128] sm:$0xff] }
 0x336   : > { %v5330_v25 = vpop.permute.xlu0 %5329  ;;  %v8181_v58 = vpop.f32.mrb[73].mxu0  ;;  %v3271_v37 = vsel %vm225_vm0, %v7816_v16, %v5321_v49  ;;  %v3175_v36 = vsel %vm225_vm0, %v5494_v20, %v5322_v42  ;;  %v3272_v16 = vsel %vm225_vm0, %v7813_v32, %v5326_v55  ;;  %v3176_v3 = vsel %vm225_vm0, %v5495_v8, %v5327_v41 }
 0x337   : > { %v5335_v13 = vpop.permute.xlu1 %5334  ;;  %v5332_v5 = vunpack.i.h.bf16 %v5330_v25  ;;  %v5331_v29 = vunpack.i.l.bf16 %v5330_v25 }
 0x338   : > { %3593 = vmatmul.mubr.f32.gmra.mrb[78].mxu1 %v3238_v4  ;;  %v5336_v60 = vunpack.i.l.bf16 %v5335_v13  ;;  %v5337_v62 = vunpack.i.h.bf16 %v5335_v13 }
 0x339   : > { %v3303_v0 = vsel %vm1407_vm4, %v3271_v37, %v5331_v29  ;;  %v3207_v10 = vsel %vm1407_vm4, %v3175_v36, %v5332_v5 }
 0x33a   : > { %v5345_v21 = vpop.permute.xlu0 %5344  ;;  %v3304_v40 = vsel %vm1407_vm4, %v3272_v16, %v5336_v60  ;;  %v3208_v1 = vsel %vm1407_vm4, %v3176_v3, %v5337_v62 }
 0x33b   : > { %v5340_v61 = vpop.permute.xlu1 %5339  ;;  %v5346_v26 = vunpack.i.l.bf16 %v5345_v21  ;;  %v5347_v27 = vunpack.i.h.bf16 %v5345_v21 }
 0x33c   : > { %v5342_v30 = vunpack.i.h.bf16 %v5340_v61  ;;  %v5341_v33 = vunpack.i.l.bf16 %v5340_v61 }
 0x33d   : > { %v3336_v14 = vsel %vm1440_vm5, %v3304_v40, %v5346_v26  ;;  %v3240_v4 = vsel %vm1440_vm5, %v3208_v1, %v5347_v27 }
 0x33e   : > { %v5355_v51 = vpop.permute.xlu0 %5354  ;;  %v3335_v52 = vsel %vm1440_vm5, %v3303_v0, %v5341_v33  ;;  %v3239_v18 = vsel %vm1440_vm5, %v3207_v10, %v5342_v30  ;;  %v5496_v30 = vld [vmem:[#allocation3 + $0x138] sm:$0xff] }
 0x33f   : > { %v5350_v44 = vpop.permute.xlu1 %5349  ;;  %3597 = vmatprep.mubr.f32.mxu1 %v3335_v52  ;;  %v5356_v5 = vunpack.i.l.bf16 %v5355_v51  ;;  %v5357_v20 = vunpack.i.h.bf16 %v5355_v51 }
 0x340   : > { %3598 = vmatmul.mubr.f32.gmra.mrb[80].mxu1 %v3239_v18  ;;  %v8195_v47 = vpop.f32.mrb[74].mxu0  ;;  %v5351_v32 = vunpack.i.l.bf16 %v5350_v44  ;;  %v5352_v49 = vunpack.i.h.bf16 %v5350_v44 }
 0x341   : > { %3602 = vmatprep.mubr.f32.mxu1 %v3336_v14  ;;  %v8197_v43 = vpop.f32.mrb[75].mxu0  ;;  %v3274_v16 = vsel %vm225_vm0, %v7884_v23, %v5356_v5  ;;  %v5497_v14 = vld [vmem:[#allocation3 + $0x140] sm:$0xff] }
 0x342   : > { %v5360_v2 = vpop.permute.xlu0 %5359  ;;  %v3273_v60 = vsel %vm225_vm0, %v7876_v6, %v5351_v32  ;;  %v3177_v33 = vsel %vm225_vm0, %v5496_v30, %v5352_v49  ;;  %v3178_v8 = vsel %vm225_vm0, %v5497_v14, %v5357_v20 }
 0x343   : > { %v5365_v25 = vpop.permute.xlu1 %5364  ;;  %v5362_v13 = vunpack.i.h.bf16 %v5360_v2  ;;  %v5361_v42 = vunpack.i.l.bf16 %v5360_v2 }
 0x344   : > { %3603 = vmatmul.mubr.f32.gmra.mrb[82].mxu1 %v3240_v4  ;;  %v5366_v55 = vunpack.i.l.bf16 %v5365_v25  ;;  %v5367_v10 = vunpack.i.h.bf16 %v5365_v25 }
 0x345   : > { %v3305_v41 = vsel %vm1407_vm4, %v3273_v60, %v5361_v42  ;;  %v3209_v0 = vsel %vm1407_vm4, %v3177_v33, %v5362_v13 }
 0x346   : > { %v5375_v29 = vpop.permute.xlu0 %5374  ;;  %v3306_v51 = vsel %vm1407_vm4, %v3274_v16, %v5366_v55  ;;  %v3210_v2 = vsel %vm1407_vm4, %v3178_v8, %v5367_v10  ;;  %v5499_v8 = vld [vmem:[#allocation3 + $0x158] sm:$0xff] }
 0x347   : > { %v5370_v21 = vpop.permute.xlu1 %5369  ;;  %v5376_v61 = vunpack.i.l.bf16 %v5375_v29  ;;  %v5377_v27 = vunpack.i.h.bf16 %v5375_v29 }
 0x348   : > { %v5372_v37 = vunpack.i.h.bf16 %v5370_v21  ;;  %v5371_v26 = vunpack.i.l.bf16 %v5370_v21 }
 0x349   : > { %v8205_v36 = vpop.f32.mrb[76].mxu0  ;;  %v3338_v40 = vsel %vm1440_vm5, %v3306_v51, %v5376_v61  ;;  %v3242_v25 = vsel %vm1440_vm5, %v3210_v2, %v5377_v27 }
 0x34a   : > { %v5385_v62 = vpop.permute.xlu0 %5384  ;;  %v8209_v52 = vpop.f32.mrb[77].mxu0  ;;  %v3337_v18 = vsel %vm1440_vm5, %v3305_v41, %v5371_v26  ;;  %v3241_v6 = vsel %vm1440_vm5, %v3209_v0, %v5372_v37  ;;  %v5498_v37 = vld [vmem:[#allocation3 + $0x150] sm:$0xff] }
 0x34b   : > { %v5380_v44 = vpop.permute.xlu1 %5379  ;;  %3607 = vmatprep.mubr.f32.mxu1 %v3337_v18  ;;  %v5386_v42 = vunpack.i.l.bf16 %v5385_v62  ;;  %v5387_v30 = vunpack.i.h.bf16 %v5385_v62 }
 0x34c   : > { %3608 = vmatmul.mubr.f32.gmra.mrb[84].mxu1 %v3241_v6  ;;  %v5381_v1 = vunpack.i.l.bf16 %v5380_v44  ;;  %v5382_v23 = vunpack.i.h.bf16 %v5380_v44 }
 0x34d   : > { %3612 = vmatprep.mubr.f32.mxu1 %v3338_v40  ;;  %v3276_v44 = vsel %vm225_vm0, %v7930_v7, %v5386_v42 }
 0x34e   : > { %v5390_v3 = vpop.permute.xlu0 %5389  ;;  %v3275_v29 = vsel %vm225_vm0, %v7940_v56, %v5381_v1  ;;  %v3179_v26 = vsel %vm225_vm0, %v5498_v37, %v5382_v23 }
 0x34f   : > { %v5400_v32 = vpop.permute.xlu1 %5399  ;;  %v5392_v4 = vunpack.i.h.bf16 %v5390_v3  ;;  %v5391_v49 = vunpack.i.l.bf16 %v5390_v3  ;;  %v3180_v3 = vsel %vm225_vm0, %v5499_v8, %v5387_v30  ;;  %v3149_v8 = vrot.slane %v8026_v12, 2 }
 0x350   : > { %3613 = vmatmul.mubr.f32.gmra.mrb[86].mxu1 %v3242_v25  ;;  %v5401_v55 = vunpack.i.l.bf16 %v5400_v32  ;;  %v5402_v0 = vunpack.i.h.bf16 %v5400_v32 }
 0x351   : > { %v3307_v20 = vsel %vm1407_vm4, %v3275_v29, %v5391_v49  ;;  %v3211_v41 = vsel %vm1407_vm4, %v3179_v26, %v5392_v4 }
 0x352   : > { %v5395_v13 = vpop.permute.xlu0 %5394  ;;  %v3308_v40 = vsel %vm1407_vm4, %v3276_v44, %v5401_v55  ;;  %v3212_v1 = vsel %vm1407_vm4, %v3180_v3, %v5402_v0 }
 0x353   : > { %v5405_v5 = vpop.permute.xlu1 %5404  ;;  %v5397_v25 = vunpack.i.h.bf16 %v5395_v13  ;;  %v5396_v23 = vunpack.i.l.bf16 %v5395_v13 }
 0x354   : > { %v5407_v21 = vunpack.i.h.bf16 %v5405_v5  ;;  %v5406_v60 = vunpack.i.l.bf16 %v5405_v5  ;;  %v8222_v61 = vpop.f32.mrb[78].mxu0 }
 0x355   : > { %v8225_v33 = vpop.f32.mrb[79].mxu0 }
 0x356   : > { %v5410_v10 = vpop.permute.xlu0 %5409  ;;  %v3339_v18 = vsel %vm1440_vm5, %v3307_v20, %v5406_v60  ;;  %v3243_v56 = vsel %vm1440_vm5, %v3211_v41, %v5407_v21 }
 0x357   : > { %v5412_v6 = vunpack.i.h.bf16 %v5410_v10  ;;  %v5411_v16 = vunpack.i.l.bf16 %v5410_v10  ;;  %v5415_v27 = vpop.permute.xlu1 %5414  ;;  %3617 = vmatprep.mubr.f32.mxu1 %v3339_v18 }
 0x358   : > { %v5417_v62 = vunpack.i.h.bf16 %v5415_v27  ;;  %v5416_v51 = vunpack.i.l.bf16 %v5415_v27  ;;  %3618 = vmatmul.mubr.f32.gmra.mrb[88].mxu1 %v3243_v56  ;;  %v5500_v56 = vld [vmem:[#allocation3 + $0x170] sm:$0xff] }
 0x359   : > { %v3340_v14 = vsel %vm1440_vm5, %v3308_v40, %v5411_v16  ;;  %v3244_v49 = vsel %vm1440_vm5, %v3212_v1, %v5412_v6  ;;  %v8536_v40 = vld [vmem:[#allocation6_spill] sm:$0xff] }
 0x35a   : > { %v5430_v2 = vpop.permute.xlu0 %5429  ;;  %3622 = vmatprep.mubr.f32.mxu1 %v3340_v14  ;;  %v3277_v32 = vsel %vm225_vm0, %v8006_v48, %v5416_v51  ;;  %v3181_v7 = vsel %vm225_vm0, %v7921_v17, %v5417_v62  ;;  %v8535_v51 = vld [vmem:[#allocation15_spill] sm:$0xff]  ;;  %v8537_v14 = vld [vmem:[#allocation16_spill] sm:$0xff] }
 0x35b   : > { %v5420_v4 = vpop.permute.xlu1 %5419  ;;  %v5432_v29 = vunpack.i.h.bf16 %v5430_v2  ;;  %v5431_v55 = vunpack.i.l.bf16 %v5430_v2  ;;  %v3309_v60 = vsel %vm1407_vm4, %v3277_v32, %v5396_v23  ;;  %v3213_v37 = vsel %vm1407_vm4, %v3181_v7, %v5397_v25 }
 0x35c   : > { %v5422_v42 = vunpack.i.h.bf16 %v5420_v4  ;;  %v5421_v5 = vunpack.i.l.bf16 %v5420_v4  ;;  %3623 = vmatmul.mubr.f32.gmra.mrb[90].mxu1 %v3244_v49 }
 0x35d   : > { %v8242_v21 = vpop.f32.mrb[80].mxu0  ;;  %v3278_v18 = vsel %vm225_vm0, %v8030_v15, %v5431_v55  ;;  %v3182_v6 = vsel %vm225_vm0, %v5500_v56, %v5432_v29  ;;  %v8534_v15 = vld [vmem:[#allocation13_spill] sm:$0xff] }
 0x35e   : > { %v5435_v48 = vpop.permute.xlu0 %5434  ;;  %v8246_v26 = vpop.f32.mrb[81].mxu0  ;;  %v3341_v17 = vsel %vm1440_vm5, %v3309_v60, %v5421_v5  ;;  %v3245_v13 = vsel %vm1440_vm5, %v3213_v37, %v5422_v42 }
 0x35f   : > { %v5425_v30 = vpop.permute.xlu1 %5424  ;;  %3627 = vmatprep.mubr.f32.mxu1 %v3341_v17  ;;  %v5437_v0 = vunpack.i.h.bf16 %v5435_v48  ;;  %v5436_v10 = vunpack.i.l.bf16 %v5435_v48 }
 0x360   : > { %v5427_v20 = vunpack.i.h.bf16 %v5425_v30  ;;  %v5426_v41 = vunpack.i.l.bf16 %v5425_v30  ;;  %3628 = vmatmul.mubr.f32.gmra.mrb[92].mxu1 %v3245_v13 }
 0x362   : > { %v3310_v16 = vsel %vm1407_vm4, %v3278_v18, %v5426_v41  ;;  %v3214_v27 = vsel %vm1407_vm4, %v3182_v6, %v5427_v20 }
 0x363   : > { %v3342_v44 = vsel %vm1440_vm5, %v3310_v16, %v5436_v10  ;;  %v3246_v62 = vsel %vm1440_vm5, %v3214_v27, %v5437_v0 }
 0x364   : > { %3632 = vmatprep.mubr.f32.mxu1 %v3342_v44 }
 0x365   : > { %3633 = vmatmul.mubr.f32.gmra.mrb[94].mxu1 %v3246_v62 }
 0x366   : > { %4328 = vmatprep.mubr.msk.f32.mxu1 %vm225_vm0, %v7722_v53  ;;  %v3147_v53 = vrot.slane %v7990_v19, 2 }
 0x369   : > { %4329 = vmatmul.mubr.msk.f32.vlgmr.msra.gmra.mrb[96].mxu1 %vm225_vm0, %v7718_v46  ;;  %v3146_v46 = vrot.slane %v7982_v11, 2 }
 0x36a   : > { %4331 = vmatprep.mubr.msk.f32.mxu1 %vm225_vm0, %v7781_v54 }
 0x36b   : > { %v3148_v11 = vsel %vm756_vm3, %v3146_v46, %v3147_v53 }
 0x36d   : > { %4332 = vmatmul.mubr.msk.f32.gmra.mrb[98].mxu1 %vm225_vm0, %v7778_v50  ;;  %v8280_v50 = vld [vmem:[%s8374_s4] ss:$0 sm:$0xff] }
 0x36e   : > { %4334 = vmatprep.mubr.msk.f32.mxu1 %vm225_vm0, %v8534_v15 }
 0x371   : > { %4335 = vmatmul.mubr.msk.f32.gmra.mrb[100].mxu1 %vm225_vm0, %v8535_v51 }
 0x372   : > { %4337 = vmatprep.mubr.msk.f32.mxu1 %vm225_vm0, %v8536_v40 }
 0x375   : > { %4338 = vmatmul.mubr.msk.f32.gmra.mrb[102].mxu1 %vm225_vm0, %v8537_v14 }
 0x376   : > { %4340 = vmatprep.mubr.msk.f32.mxu1 %vm225_vm0, %v7969_v24 }
 0x379   : > { %4341 = vmatmul.mubr.msk.f32.gmra.mrb[104].mxu1 %vm225_vm0, %v7965_v63  ;;  %v3150_v63 = vsel %vm756_vm3, %v3147_v53, %v3149_v8 }
 0x37a   : > { %4343 = vmatprep.mubr.msk.f32.mxu1 %vm225_vm0, %v8033_v22 }
 0x37b   : > { %v3479_v54 = vpop.f32.mrb[32].mxu1 }
 0x37c   : > { %v3480_v24 = vadd.f32 %v8280_v50, %v3479_v54  ;;  %v3481_v3 = vpop.f32.mrb[33].mxu1 }
 0x37d   : > { %4344 = vmatmul.mubr.msk.f32.gmra.mrb[106].mxu1 %vm225_vm0, %v8048_v28 }
 0x37e   : > { %v3705_v19 = vadd.f32 %v8101_v9, %v3480_v24  ;;  %4346 = vmatprep.mubr.msk.f32.mxu1 %vm225_vm0, %v3148_v11 }
 0x37f   : > { %v3484_v2 = vpop.f32.mrb[34].mxu1 }
 0x380   : > { %v3895_v1 = vmul.f32 0.2, %v3705_v19  ;;  %v3485_v22 = vadd.f32 %v8280_v50, %v3484_v2  ;;  %v3486_v32 = vpop.f32.mrb[35].mxu1  ;;  %vm3863_vm2 = vcmp.ge.f32.partialorder %v3705_v19, 0.0 }
 0x381   : > { %4347 = vmatmul.mubr.msk.f32.gmra.mrb[108].mxu1 %vm225_vm0, %v3150_v63 }
 0x382   : > { %v3710_v12 = vadd.f32 %v8097_v45, %v3485_v22  ;;  %v3927_v7 = vsel %vm3863_vm2, %v3705_v19, %v3895_v1 }
 0x383   : > { %3959 = vxpose.xlu1.b32.start [1/16] (narrow) %v3927_v7, 32 }
 0x384   : > { %v3896_v9 = vmul.f32 0.2, %v3710_v12  ;;  %vm3864_vm4 = vcmp.ge.f32.partialorder %v3710_v12, 0.0 }
 0x386   : > { %v3928_v25 = vsel %vm3864_vm4, %v3710_v12, %v3896_v9 }
 0x387   : > { %3960 = vxpose.xlu1.b32.cont [2/16] (narrow) %v3928_v25, 32 }
 0x38d   : > { %v3489_v28 = vpop.f32.mrb[36].mxu1 }
 0x38e   : > { %v3490_v23 = vadd.f32 %v8280_v50, %v3489_v28  ;;  %v3491_v4 = vpop.f32.mrb[37].mxu1 }
 0x390   : > { %v3715_v49 = vadd.f32 %v8128_v38, %v3490_v23 }
 0x391   : > { %v3494_v42 = vpop.f32.mrb[38].mxu1 }
 0x392   : > { %v3897_v5 = vmul.f32 0.2, %v3715_v49  ;;  %v3495_v29 = vadd.f32 %v8280_v50, %v3494_v42  ;;  %v3496_v55 = vpop.f32.mrb[39].mxu1  ;;  %vm3865_vm3 = vcmp.ge.f32.partialorder %v3715_v49, 0.0 }
 0x394   : > { %v3720_v45 = vadd.f32 %v8126_v34, %v3495_v29  ;;  %v3929_v60 = vsel %vm3865_vm3, %v3715_v49, %v3897_v5 }
 0x395   : > { %3961 = vxpose.xlu1.b32.cont [3/16] (narrow) %v3929_v60, 32 }
 0x396   : > { %v3898_v37 = vmul.f32 0.2, %v3720_v45  ;;  %vm3866_vm0 = vcmp.ge.f32.partialorder %v3720_v45, 0.0 }
 0x398   : > { %v3930_v48 = vsel %vm3866_vm0, %v3720_v45, %v3898_v37 }
 0x399   : > { %3962 = vxpose.xlu1.b32.cont [4/16] (narrow) %v3930_v48, 32 }
 0x39b   : > { %v3499_v17 = vpop.f32.mrb[40].mxu1 }
 0x39c   : > { %v3500_v13 = vadd.f32 %v8280_v50, %v3499_v17  ;;  %v3501_v30 = vpop.f32.mrb[41].mxu1 }
 0x39e   : > { %v3725_v38 = vadd.f32 %v8146_v39, %v3500_v13 }
 0x39f   : > { %v3504_v20 = vpop.f32.mrb[42].mxu1 }
 0x3a0   : > { %v3899_v41 = vmul.f32 0.2, %v3725_v38  ;;  %v3505_v0 = vadd.f32 %v8280_v50, %v3504_v20  ;;  %v3506_v10 = vpop.f32.mrb[43].mxu1  ;;  %vm3867_vm5 = vcmp.ge.f32.partialorder %v3725_v38, 0.0 }
 0x3a2   : > { %v3730_v34 = vadd.f32 %v8144_v59, %v3505_v0  ;;  %v3931_v18 = vsel %vm3867_vm5, %v3725_v38, %v3899_v41 }
 0x3a3   : > { %3963 = vxpose.xlu1.b32.cont [5/16] (narrow) %v3931_v18, 32 }
 0x3a4   : > { %v3900_v56 = vmul.f32 0.2, %v3730_v34  ;;  %vm3868_vm1 = vcmp.ge.f32.partialorder %v3730_v34, 0.0 }
 0x3a6   : > { %v3932_v6 = vsel %vm3868_vm1, %v3730_v34, %v3900_v56 }
 0x3a7   : > { %v3509_v16 = vpop.f32.mrb[44].mxu1  ;;  %3964 = vxpose.xlu1.b32.cont [6/16] (narrow) %v3932_v6, 32 }
 0x3a8   : > { %v3510_v27 = vadd.f32 %v8280_v50, %v3509_v16  ;;  %v3511_v44 = vpop.f32.mrb[45].mxu1 }
 0x3aa   : > { %v3735_v39 = vadd.f32 %v8164_v35, %v3510_v27 }
 0x3ab   : > { %v3514_v62 = vpop.f32.mrb[46].mxu1 }
 0x3ac   : > { %v3901_v15 = vmul.f32 0.2, %v3735_v39  ;;  %v3515_v51 = vadd.f32 %v8280_v50, %v3514_v62  ;;  %v3516_v40 = vpop.f32.mrb[47].mxu1  ;;  %vm3869_vm6 = vcmp.ge.f32.partialorder %v3735_v39, 0.0 }
 0x3ae   : > { %v3740_v59 = vadd.f32 %v8162_v31, %v3515_v51  ;;  %v3933_v14 = vsel %vm3869_vm6, %v3735_v39, %v3901_v15 }
 0x3af   : > { %3965 = vxpose.xlu1.b32.cont [7/16] (narrow) %v3933_v14, 32 }
 0x3b0   : > { %v3902_v46 = vmul.f32 0.2, %v3740_v59  ;;  %vm3870_vm7 = vcmp.ge.f32.partialorder %v3740_v59, 0.0 }
 0x3b2   : > { %v3934_v53 = vsel %vm3870_vm7, %v3740_v59, %v3902_v46 }
 0x3b3   : > { %v3519_v54 = vpop.f32.mrb[48].mxu1  ;;  %3966 = vxpose.xlu1.b32.cont [8/16] (narrow) %v3934_v53, 32 }
 0x3b4   : > { %v3520_v8 = vadd.f32 %v8280_v50, %v3519_v54  ;;  %v3521_v24 = vpop.f32.mrb[49].mxu1 }
 0x3b6   : > { %v3745_v35 = vadd.f32 %v8181_v58, %v3520_v8 }
 0x3b7   : > { %v3524_v3 = vpop.f32.mrb[50].mxu1 }
 0x3b8   : > { %v3903_v11 = vmul.f32 0.2, %v3745_v35  ;;  %v3525_v19 = vadd.f32 %v8280_v50, %v3524_v3  ;;  %v3526_v2 = vpop.f32.mrb[51].mxu1  ;;  %vm3871_vm8 = vcmp.ge.f32.partialorder %v3745_v35, 0.0 }
 0x3ba   : > { %v3750_v31 = vadd.f32 %v8178_v57, %v3525_v19  ;;  %v3935_v63 = vsel %vm3871_vm8, %v3745_v35, %v3903_v11 }
 0x3bb   : > { %3967 = vxpose.xlu1.b32.cont [9/16] (narrow) %v3935_v63, 32 }
 0x3bc   : > { %v3904_v1 = vmul.f32 0.2, %v3750_v31  ;;  %vm3872_vm9 = vcmp.ge.f32.partialorder %v3750_v31, 0.0 }
 0x3be   : > { %v3936_v22 = vsel %vm3872_vm9, %v3750_v31, %v3904_v1 }
 0x3bf   : > { %v3529_v32 = vpop.f32.mrb[52].mxu1  ;;  %3968 = vxpose.xlu1.b32.cont [10/16] (narrow) %v3936_v22, 32 }
 0x3c0   : > { %v3530_v12 = vadd.f32 %v8280_v50, %v3529_v32  ;;  %v3531_v7 = vpop.f32.mrb[53].mxu1 }
 0x3c2   : > { %v3755_v58 = vadd.f32 %v8197_v43, %v3530_v12 }
 0x3c3   : > { %v3534_v9 = vpop.f32.mrb[54].mxu1 }
 0x3c4   : > { %v3905_v25 = vmul.f32 0.2, %v3755_v58  ;;  %v3535_v28 = vadd.f32 %v8280_v50, %v3534_v9  ;;  %v3536_v23 = vpop.f32.mrb[55].mxu1  ;;  %vm3873_vm10 = vcmp.ge.f32.partialorder %v3755_v58, 0.0 }
 0x3c6   : > { %v3760_v57 = vadd.f32 %v8195_v47, %v3535_v28  ;;  %v3937_v4 = vsel %vm3873_vm10, %v3755_v58, %v3905_v25 }
 0x3c7   : > { %3969 = vxpose.xlu1.b32.cont [11/16] (narrow) %v3937_v4, 32 }
 0x3c8   : > { %v3906_v49 = vmul.f32 0.2, %v3760_v57  ;;  %vm3874_vm11 = vcmp.ge.f32.partialorder %v3760_v57, 0.0 }
 0x3ca   : > { %v3938_v42 = vsel %vm3874_vm11, %v3760_v57, %v3906_v49 }
 0x3cb   : > { %v3539_v5 = vpop.f32.mrb[56].mxu1  ;;  %3970 = vxpose.xlu1.b32.cont [12/16] (narrow) %v3938_v42, 32 }
 0x3cc   : > { %v3540_v29 = vadd.f32 %v8280_v50, %v3539_v5  ;;  %v3541_v55 = vpop.f32.mrb[57].mxu1 }
 0x3ce   : > { %v3765_v43 = vadd.f32 %v8209_v52, %v3540_v29 }
 0x3cf   : > { %v3544_v45 = vpop.f32.mrb[58].mxu1 }
 0x3d0   : > { %v3907_v60 = vmul.f32 0.2, %v3765_v43  ;;  %v3545_v37 = vadd.f32 %v8280_v50, %v3544_v45  ;;  %v3546_v48 = vpop.f32.mrb[59].mxu1  ;;  %vm3875_vm12 = vcmp.ge.f32.partialorder %v3765_v43, 0.0 }
 0x3d2   : > { %v3770_v47 = vadd.f32 %v8205_v36, %v3545_v37  ;;  %v3939_v17 = vsel %vm3875_vm12, %v3765_v43, %v3907_v60 }
 0x3d3   : > { %3971 = vxpose.xlu1.b32.cont [13/16] (narrow) %v3939_v17, 32 }
 0x3d4   : > { %v3908_v13 = vmul.f32 0.2, %v3770_v47  ;;  %vm3876_vm13 = vcmp.ge.f32.partialorder %v3770_v47, 0.0 }
 0x3d6   : > { %v3940_v30 = vsel %vm3876_vm13, %v3770_v47, %v3908_v13 }
 0x3d7   : > { %v3549_v38 = vpop.f32.mrb[60].mxu1  ;;  %3972 = vxpose.xlu1.b32.cont [14/16] (narrow) %v3940_v30, 32 }
 0x3d8   : > { %v3550_v20 = vadd.f32 %v8280_v50, %v3549_v38  ;;  %v3551_v41 = vpop.f32.mrb[61].mxu1 }
 0x3da   : > { %v3775_v52 = vadd.f32 %v8225_v33, %v3550_v20 }
 0x3db   : > { %v3554_v0 = vpop.f32.mrb[62].mxu1 }
 0x3dc   : > { %v3909_v10 = vmul.f32 0.2, %v3775_v52  ;;  %v3555_v34 = vadd.f32 %v8280_v50, %v3554_v0  ;;  %v3556_v18 = vpop.f32.mrb[63].mxu1  ;;  %vm3877_vm14 = vcmp.ge.f32.partialorder %v3775_v52, 0.0 }
 0x3de   : > { %v3780_v36 = vadd.f32 %v8222_v61, %v3555_v34  ;;  %v3941_v56 = vsel %vm3877_vm14, %v3775_v52, %v3909_v10 }
 0x3df   : > { %3973 = vxpose.xlu1.b32.cont [15/16] (narrow) %v3941_v56, 32 }
 0x3e0   : > { %v3910_v6 = vmul.f32 0.2, %v3780_v36  ;;  %vm3878_vm15 = vcmp.ge.f32.partialorder %v3780_v36, 0.0 }
 0x3e2   : > { %v3942_v16 = vsel %vm3878_vm15, %v3780_v36, %v3910_v6 }
 0x3e3   : > { %v3559_v27 = vpop.f32.mrb[64].mxu1  ;;  %3974 = vxpose.xlu1.b32.end [16/16] (narrow) %v3942_v16, 32 }
 0x3e4   : > { %v3560_v44 = vadd.f32 %v8280_v50, %v3559_v27  ;;  %v3561_v39 = vpop.f32.mrb[65].mxu1 }
 0x3e6   : > { %v3785_v33 = vadd.f32 %v8246_v26, %v3560_v44 }
 0x3e7   : > { %v3564_v62 = vpop.f32.mrb[66].mxu1 }
 0x3e8   : > { %v3911_v15 = vmul.f32 0.2, %v3785_v33  ;;  %v3565_v51 = vadd.f32 %v8280_v50, %v3564_v62  ;;  %v3566_v40 = vpop.f32.mrb[67].mxu1  ;;  %vm3879_vm2 = vcmp.ge.f32.partialorder %v3785_v33, 0.0 }
 0x3ea   : > { %v3790_v61 = vadd.f32 %v8242_v21, %v3565_v51  ;;  %v3943_v59 = vsel %vm3879_vm2, %v3785_v33, %v3911_v15 }
 0x3eb   : > { %3991 = vxpose.xlu0.b32.start [1/16] (narrow) %v3943_v59, 32 }
 0x3ec   : > { %v3912_v14 = vmul.f32 0.2, %v3790_v61  ;;  %vm3880_vm4 = vcmp.ge.f32.partialorder %v3790_v61, 0.0 }
 0x3ee   : > { %v3944_v46 = vsel %vm3880_vm4, %v3790_v61, %v3912_v14 }
 0x3ef   : > { %v3569_v53 = vpop.f32.mrb[68].mxu1  ;;  %3992 = vxpose.xlu0.b32.cont [2/16] (narrow) %v3944_v46, 32 }
 0x3f0   : > { %v3571_v54 = vpop.f32.mrb[69].mxu1  ;;  %v3570_v55 = vadd.f32 %v8280_v50, %v3569_v53 }
 0x3f3   : > { %v3574_v8 = vpop.f32.mrb[70].mxu1 }
 0x3f4   : > { %v3576_v24 = vpop.f32.mrb[71].mxu1  ;;  %v3575_v29 = vadd.f32 %v8280_v50, %v3574_v8 }
 0x3fb   : > { %v3579_v35 = vpop.f32.mrb[72].mxu1 }
 0x3fc   : > { %v3581_v26 = vpop.f32.mrb[73].mxu1  ;;  %v3580_v17 = vadd.f32 %v8280_v50, %v3579_v35 }
 0x3ff   : > { %v3584_v3 = vpop.f32.mrb[74].mxu1 }
 0x400   : > { %v3586_v11 = vpop.f32.mrb[75].mxu1  ;;  %v3585_v47 = vadd.f32 %v8280_v50, %v3584_v3 }
 0x407   : > { %v3589_v19 = vpop.f32.mrb[76].mxu1 }
 0x408   : > { %v3591_v2 = vpop.f32.mrb[77].mxu1  ;;  %v3590_v18 = vadd.f32 %v8280_v50, %v3589_v19 }
 0x40b   : > { %v3594_v31 = vpop.f32.mrb[78].mxu1 }
 0x40c   : > { %v3596_v63 = vpop.f32.mrb[79].mxu1  ;;  %v3595_v34 = vadd.f32 %v8280_v50, %v3594_v31 }
 0x413   : > { %v3599_v1 = vpop.f32.mrb[80].mxu1 }
 0x414   : > { %v3601_v21 = vpop.f32.mrb[81].mxu1  ;;  %v3600_v62 = vadd.f32 %v8280_v50, %v3599_v1 }
 0x417   : > { %v3604_v22 = vpop.f32.mrb[82].mxu1 }
 0x418   : > { %v3606_v32 = vpop.f32.mrb[83].mxu1  ;;  %v3605_v33 = vadd.f32 %v8280_v50, %v3604_v22 }
 0x41f   : > { %v3609_v12 = vpop.f32.mrb[84].mxu1 }
 0x420   : > { %v3611_v7 = vpop.f32.mrb[85].mxu1  ;;  %v3610_v54 = vadd.f32 %v8280_v50, %v3609_v12 }
 0x423   : > { %v3614_v58 = vpop.f32.mrb[86].mxu1 }
 0x424   : > { %v3616_v9 = vpop.f32.mrb[87].mxu1  ;;  %v3615_v53 = vadd.f32 %v8280_v50, %v3614_v58 }
 0x427   : > { %v3975_v45 = vpop.trf.xlu1 }
 0x428   : > { %4023 = vst [vmem:[%s8340_s12] sm:$0xff] %v3975_v45 }
 0x42b   : > { %v8329_v25 = vpop.f32.mrb[88].mxu1  ;;  %v3976_v38 = vpop.trf.xlu1 }
 0x42c   : > { %v3621_v28 = vpop.f32.mrb[89].mxu1  ;;  %4025 = vst [vmem:[%s8340_s12 + $0x10] sm:$0xff] %v3976_v38  ;;  %v3620_v2 = vadd.f32 %v8280_v50, %v8329_v25 }
 0x42f   : > { %v3624_v23 = vpop.f32.mrb[90].mxu1  ;;  %v3977_v56 = vpop.trf.xlu1 }
 0x430   : > { %v3626_v57 = vpop.f32.mrb[91].mxu1  ;;  %4027 = vst [vmem:[%s8340_s12 + $0x20] sm:$0xff] %v3977_v56  ;;  %v3625_v19 = vadd.f32 %v8280_v50, %v3624_v23 }
 0x433   : > { %v8331_v4 = vpop.f32.mrb[92].mxu1  ;;  %v3978_v51 = vpop.trf.xlu1 }
 0x434   : > { %v3631_v49 = vpop.f32.mrb[93].mxu1  ;;  %4029 = vst [vmem:[%s8340_s12 + $0x30] sm:$0xff] %v3978_v51  ;;  %v3630_v7 = vadd.f32 %v8280_v50, %v8331_v4 }
 0x438   : > { %v8333_v42 = vpop.f32.mrb[94].mxu1 }
 0x439   : > { %v3636_v5 = vpop.f32.mrb[95].mxu1  ;;  %v3635_v12 = vadd.f32 %v8280_v50, %v8333_v42 }
 0x43c   : > { %v4330_v43 = vpop.f32.mrb[96].mxu1 }
 0x43d   : > { %v3800_v60 = vadd.f32 %v4330_v43, %v3575_v29  ;;  %v3794_v37 = vpop.f32.mrb[97].mxu1 }
 0x43e   : > { %v3795_v48 = vadd.f32 %v3794_v37, %v3570_v55 }
 0x43f   : > { %v3914_v52 = vmul.f32 0.2, %v3800_v60  ;;  %vm3882_vm0 = vcmp.ge.f32.partialorder %v3800_v60, 0.0 }
 0x440   : > { %vm3881_vm3 = vcmp.ge.f32.partialorder %v3795_v48, 0.0  ;;  %v3913_v13 = vmul.f32 0.2, %v3795_v48  ;;  %v4333_v30 = vpop.f32.mrb[98].mxu1 }
 0x441   : > { %v3810_v20 = vadd.f32 %v4333_v30, %v3585_v47  ;;  %v3804_v41 = vpop.f32.mrb[99].mxu1  ;;  %v3946_v39 = vsel %vm3882_vm0, %v3800_v60, %v3914_v52 }
 0x442   : > { %v3805_v0 = vadd.f32 %v3804_v41, %v3580_v17  ;;  %v3945_v10 = vsel %vm3881_vm3, %v3795_v48, %v3913_v13 }
 0x443   : > { %3993 = vxpose.xlu0.b32.cont [3/16] (narrow) %v3945_v10, 32  ;;  %v3916_v59 = vmul.f32 0.2, %v3810_v20  ;;  %vm3884_vm1 = vcmp.ge.f32.partialorder %v3810_v20, 0.0 }
 0x444   : > { %v4336_v36 = vpop.f32.mrb[100].mxu1  ;;  %v3915_v27 = vmul.f32 0.2, %v3805_v0  ;;  %vm3883_vm5 = vcmp.ge.f32.partialorder %v3805_v0, 0.0 }
 0x445   : > { %v3820_v6 = vadd.f32 %v4336_v36, %v3595_v34  ;;  %v3814_v16 = vpop.f32.mrb[101].mxu1  ;;  %v3948_v11 = vsel %vm3884_vm1, %v3810_v20, %v3916_v59 }
 0x446   : > { %v3815_v44 = vadd.f32 %v3814_v16, %v3590_v18  ;;  %v3947_v46 = vsel %vm3883_vm5, %v3805_v0, %v3915_v27 }
 0x447   : > { %3994 = vxpose.xlu0.b32.cont [4/16] (narrow) %v3946_v39, 32  ;;  %v3918_v21 = vmul.f32 0.2, %v3820_v6  ;;  %vm3886_vm7 = vcmp.ge.f32.partialorder %v3820_v6, 0.0 }
 0x448   : > { %v4339_v15 = vpop.f32.mrb[102].mxu1  ;;  %v3917_v26 = vmul.f32 0.2, %v3815_v44  ;;  %vm3885_vm6 = vcmp.ge.f32.partialorder %v3815_v44, 0.0 }
 0x449   : > { %v3830_v40 = vadd.f32 %v4339_v15, %v3605_v33  ;;  %v3824_v61 = vpop.f32.mrb[103].mxu1  ;;  %v3950_v25 = vsel %vm3886_vm7, %v3820_v6, %v3918_v21 }
 0x44a   : > { %v3825_v14 = vadd.f32 %v3824_v61, %v3600_v62  ;;  %v3949_v32 = vsel %vm3885_vm6, %v3815_v44, %v3917_v26 }
 0x44b   : > { %3995 = vxpose.xlu0.b32.cont [5/16] (narrow) %v3947_v46, 32  ;;  %v3920_v49 = vmul.f32 0.2, %v3830_v40  ;;  %vm3888_vm9 = vcmp.ge.f32.partialorder %v3830_v40, 0.0 }
 0x44c   : > { %v4342_v8 = vpop.f32.mrb[104].mxu1  ;;  %v3919_v23 = vmul.f32 0.2, %v3825_v14  ;;  %vm3887_vm8 = vcmp.ge.f32.partialorder %v3825_v14, 0.0 }
 0x44d   : > { %v3840_v24 = vadd.f32 %v4342_v8, %v3615_v53  ;;  %v3834_v35 = vpop.f32.mrb[105].mxu1  ;;  %v3952_v55 = vsel %vm3888_vm9, %v3830_v40, %v3920_v49 }
 0x44e   : > { %v3835_v3 = vadd.f32 %v3834_v35, %v3610_v54  ;;  %v3951_v5 = vsel %vm3887_vm8, %v3825_v14, %v3919_v23 }
 0x44f   : > { %3996 = vxpose.xlu0.b32.cont [6/16] (narrow) %v3948_v11, 32  ;;  %v3922_v42 = vmul.f32 0.2, %v3840_v24  ;;  %vm3890_vm11 = vcmp.ge.f32.partialorder %v3840_v24, 0.0 }
 0x450   : > { %v4345_v31 = vpop.f32.mrb[106].mxu1  ;;  %v3921_v29 = vmul.f32 0.2, %v3835_v3  ;;  %vm3889_vm10 = vcmp.ge.f32.partialorder %v3835_v3, 0.0 }
 0x451   : > { %v3850_v63 = vadd.f32 %v4345_v31, %v3625_v19  ;;  %v3844_v1 = vpop.f32.mrb[107].mxu1  ;;  %v3954_v4 = vsel %vm3890_vm11, %v3840_v24, %v3922_v42 }
 0x452   : > { %v3845_v22 = vadd.f32 %v3844_v1, %v3620_v2  ;;  %v3953_v43 = vsel %vm3889_vm10, %v3835_v3, %v3921_v29 }
 0x453   : > { %3997 = vxpose.xlu0.b32.cont [7/16] (narrow) %v3949_v32, 32  ;;  %v3924_v45 = vmul.f32 0.2, %v3850_v63  ;;  %vm3892_vm13 = vcmp.ge.f32.partialorder %v3850_v63, 0.0 }
 0x454   : > { %v4348_v58 = vpop.f32.mrb[108].mxu1  ;;  %v3923_v50 = vmul.f32 0.2, %v3845_v22  ;;  %vm3891_vm12 = vcmp.ge.f32.partialorder %v3845_v22, 0.0 }
 0x455   : > { %v3860_v9 = vadd.f32 %v4348_v58, %v3635_v12  ;;  %v3854_v28 = vpop.f32.mrb[109].mxu1  ;;  %v3956_v48 = vsel %vm3892_vm13, %v3850_v63, %v3924_v45 }
 0x456   : > { %v3855_v57 = vadd.f32 %v3854_v28, %v3630_v7  ;;  %v3955_v60 = vsel %vm3891_vm12, %v3845_v22, %v3923_v50 }
 0x457   : > { %3998 = vxpose.xlu0.b32.cont [8/16] (narrow) %v3950_v25, 32  ;;  %v3926_v47 = vmul.f32 0.2, %v3860_v9  ;;  %vm3894_vm15 = vcmp.ge.f32.partialorder %v3860_v9, 0.0 }
 0x458   : > { %v3925_v37 = vmul.f32 0.2, %v3855_v57  ;;  %vm3893_vm14 = vcmp.ge.f32.partialorder %v3855_v57, 0.0 }
 0x459   : > { %v3958_v13 = vsel %vm3894_vm15, %v3860_v9, %v3926_v47 }
 0x45a   : > { %v3957_v17 = vsel %vm3893_vm14, %v3855_v57, %v3925_v37 }
 0x45b   : > { %3999 = vxpose.xlu0.b32.cont [9/16] (narrow) %v3951_v5, 32 }
 0x45f   : > { %4000 = vxpose.xlu0.b32.cont [10/16] (narrow) %v3952_v55, 32 }
 0x463   : > { %4001 = vxpose.xlu0.b32.cont [11/16] (narrow) %v3953_v43, 32 }
 0x467   : > { %4002 = vxpose.xlu0.b32.cont [12/16] (narrow) %v3954_v4, 32 }
 0x46b   : > { %4003 = vxpose.xlu0.b32.cont [13/16] (narrow) %v3955_v60, 32 }
 0x46f   : > { %4004 = vxpose.xlu0.b32.cont [14/16] (narrow) %v3956_v48, 32 }
 0x473   : > { %4005 = vxpose.xlu0.b32.cont [15/16] (narrow) %v3957_v17, 32 }
 0x477   : > { %4006 = vxpose.xlu0.b32.end [16/16] (narrow) %v3958_v13, 32 }
 0x4bb   : > { %v4007_v30 = vpop.trf.xlu0 }
 0x4bc   : > { %4024 = vst [vmem:[%s8340_s12 + $0x8] sm:$0xff] %v4007_v30 }
 0x4bf   : > { %v4008_v38 = vpop.trf.xlu0 }
 0x4c0   : > { %4026 = vst [vmem:[%s8340_s12 + $0x18] sm:$0xff] %v4008_v38 }
 0x4c3   : > { %v4009_v20 = vpop.trf.xlu0 }
 0x4c4   : > { %4028 = vst [vmem:[%s8340_s12 + $0x28] sm:$0xff] %v4009_v20 }
 0x4c7   : > { %v4010_v41 = vpop.trf.xlu0 }
 0x4c8   : > { %4030 = vst [vmem:[%s8340_s12 + $0x38] sm:$0xff] %v4010_v41 }
 0x4c9 PF: > { %s15_s18 = sadd.s32 1, %s5507_s18  }
 0x4ca   : > { %p12_p4 = scmp.ge.s32.totalorder %s15_s18, 4  }
 0x4cc   :  { %14 = sbr.rel (!%p12_p4) target bundleno = 1 (0x1), region = 72 }

</bundles_post_ra>
